<compile_context>
chip_gen: v7x
topology: tpu7x:2x2x1
jax: 0.10.0
libtpu: 0.0.40
codegen_flags: <defaults>
</compile_context>

<pallas_src>
import math
import functools

import jax
import jax.numpy as jnp
from jax.experimental import pallas as pl
from jax.experimental.pallas import tpu as pltpu


# -----------------------------------------------------------------------------
# Fused whole-forward kernel (one grid step per block of Bblk batch elements)
# -----------------------------------------------------------------------------

def _fused_decoder_kernel(
        x_ref,               # (Bblk, Tpad, C) f32  replicate-padded input block
        convw_ref,           # (K, C, C)       bf16 conv taps (in_ch, out_ch)
        convb_ref,           # (1, C)          f32
        pe_ref,              # (Bblk*T, C)     f32  positional encoding (tiled)
        embw_ref, embb_ref,  # (C, C) bf16, (1, C) f32
        wqkv_ref,            # (L, 3, H, C, Dh) bf16  head-major q/k/v weights
        bqkv_ref,            # (L, 3, H, 1, Dh) f32
        wo_ref,              # (L, H, Dh, C)    bf16  head-major out-projection
        bo_ref,              # (L, 1, C)        f32
        ln1g_ref, ln1b_ref,  # (L, 1, C)        f32
        w1_ref, b1_ref,      # (L, C, I) bf16, (L, 1, I) f32
        w2_ref, b2_ref,      # (L, I, C) bf16, (L, 1, C) f32
        ln2g_ref, ln2b_ref,  # (L, 1, C)        f32
        wheads_ref,          # (C, Nout_pad)    bf16  fused+padded output heads
        o_ref,               # (Bblk*T, Nout_pad) f32
        *, num_layers, num_heads, slope, eps_in, eps_ln):
    bf16 = jnp.bfloat16
    Bb = x_ref.shape[0]
    K = convw_ref.shape[0]
    T = x_ref.shape[1] - (K - 1)
    C = embw_ref.shape[0]
    H = num_heads
    Dh = C // H
    scale = 1.0 / math.sqrt(Dh)

    # ---- expander: Conv1d (replicate pad from wrapper) + LeakyReLU + InstanceNorm1d ----
    # Conv/LeakyReLU/InstanceNorm are per batch element; results are stacked into a
    # flat (Bb*T, C) slab that every subsequent matmul consumes.
    parts = []
    for b in range(Bb):                                   # static unroll (Bb small)
        xp = x_ref[b]                                     # (Tpad, C) f32
        acc = jnp.zeros((T, C), jnp.float32)
        for k in range(K):                                # static unroll over taps
            acc = acc + jnp.dot(xp[k:k + T, :].astype(bf16), convw_ref[k],
                                preferred_element_type=jnp.float32)
        acc = acc + convb_ref[...]
        acc = jnp.where(acc >= 0, acc, slope * acc)       # LeakyReLU(slope)
        mu = jnp.mean(acc, axis=0, keepdims=True)         # InstanceNorm over time
        var = jnp.mean((acc - mu) ** 2, axis=0, keepdims=True)
        parts.append((acc - mu) * jax.lax.rsqrt(var + eps_in))
    x = jnp.concatenate(parts, axis=0) if Bb > 1 else parts[0]   # (M, C) f32

    # ---- decoder_linear_embedding + decoder_pos_embedding (fused epilogue) ----
    x = (jnp.dot(x.astype(bf16), embw_ref[...], preferred_element_type=jnp.float32)
         + embb_ref[...] + pe_ref[...])                   # (M, C) f32

    # ---- decoder_transformer: post-LN encoder layers (dummy mask == no mask) ----
    for l in range(num_layers):                           # static unroll (L small)
        xb = x.astype(bf16)

        # Head-major QKV projections over the full flattened batch:
        # no lane sub-slicing anywhere; head index lives on leading weight dims.
        q_h, k_h, v_h = [], [], []
        for h in range(H):
            q_h.append(jnp.dot(xb, wqkv_ref[l, 0, h],
                               preferred_element_type=jnp.float32) + bqkv_ref[l, 0, h])
            k_h.append(jnp.dot(xb, wqkv_ref[l, 1, h],
                               preferred_element_type=jnp.float32) + bqkv_ref[l, 1, h])
            v_h.append(jnp.dot(xb, wqkv_ref[l, 2, h],
                               preferred_element_type=jnp.float32) + bqkv_ref[l, 2, h])

        # Attention per batch element; per-element rows are sublane-aligned T-slabs.
        proj_parts = []
        for b in range(Bb):
            r0 = b * T
            proj_b = jnp.zeros((T, C), jnp.float32)
            for h in range(H):
                qb = q_h[h][r0:r0 + T, :].astype(bf16)    # (T, Dh)
                kb = k_h[h][r0:r0 + T, :].astype(bf16)
                vb = v_h[h][r0:r0 + T, :].astype(bf16)
                # scores: 'td,sd->ts' (contract Dh of both) -> (T, T) f32
                s = jax.lax.dot_general(qb, kb, (((1,), (1,)), ((), ())),
                                        preferred_element_type=jnp.float32) * scale
                m = jnp.max(s, axis=-1, keepdims=True)
                p = jnp.exp(s - m)
                p = p * pl.reciprocal(jnp.sum(p, axis=-1, keepdims=True), approx=True)
                a = jnp.dot(p.astype(bf16), vb, preferred_element_type=jnp.float32)
                # fold per-head output straight into the out-projection accumulation
                proj_b = proj_b + jnp.dot(a.astype(bf16), wo_ref[l, h],
                                          preferred_element_type=jnp.float32)
            proj_parts.append(proj_b)
        proj = jnp.concatenate(proj_parts, axis=0) if Bb > 1 else proj_parts[0]
        proj = proj + bo_ref[l]

        # Add & LayerNorm 1  (f32 elementwise)
        y = proj + x
        mu = jnp.mean(y, axis=-1, keepdims=True)
        var = jnp.mean((y - mu) ** 2, axis=-1, keepdims=True)
        x = (y - mu) * jax.lax.rsqrt(var + eps_ln) * ln1g_ref[l] + ln1b_ref[l]

        # FFN with GELU (tanh approx; see TODO above), bf16 MXU operands
        hdn = jnp.dot(x.astype(bf16), w1_ref[l],
                      preferred_element_type=jnp.float32) + b1_ref[l]
        c0 = math.sqrt(2.0 / math.pi)
        hdn = 0.5 * hdn * (1.0 + jnp.tanh(c0 * (hdn + 0.044715 * hdn * hdn * hdn)))
        ff = jnp.dot(hdn.astype(bf16), w2_ref[l],
                     preferred_element_type=jnp.float32) + b2_ref[l]

        # Add & LayerNorm 2
        y = ff + x
        mu = jnp.mean(y, axis=-1, keepdims=True)
        var = jnp.mean((y - mu) ** 2, axis=-1, keepdims=True)
        x = (y - mu) * jax.lax.rsqrt(var + eps_ln) * ln2g_ref[l] + ln2b_ref[l]

    # ---- fused, lane-dense (128-padded) output heads; single unmasked store ----
    o_ref[...] = jnp.dot(x.astype(bf16), wheads_ref[...],
                         preferred_element_type=jnp.float32)


# -----------------------------------------------------------------------------
# Parameters + forward (glue in plain JAX, compute in one pallas_call)
# -----------------------------------------------------------------------------

def sinusoidal_pe(T, C):
    position = jnp.arange(T, dtype=jnp.float32)[:, None]
    div_term = jnp.exp(jnp.arange(0, C, 2, dtype=jnp.float32) *
                       (-math.log(10000.0) / C))
    pe = jnp.zeros((T, C), jnp.float32)
    pe = pe.at[:, 0::2].set(jnp.sin(position * div_term))
    pe = pe.at[:, 1::2].set(jnp.cos(position * div_term))
    return pe


def init_params(key, cfg):
    C = cfg["latent_dim"]
    I = cfg["intermediate_size"]
    K = cfg["conv_kernel_size"]
    L = cfg["num_layers"]
    H = cfg["num_heads"]
    Dh = C // H
    Nout = cfg["nfeats"] + cfg["n_emotion"]
    Nout_pad = ((Nout + 127) // 128) * 128          # lane-dense output head

    keys = jax.random.split(key, 8)

    def nrm(k, shape, scale=0.02):
        return scale * jax.random.normal(k, shape, jnp.float32)

    bf16 = jnp.bfloat16
    p = {}
    # expander[0]: Conv1d(C, C, K, padding=K//2, padding_mode='replicate')
    p["conv_w"] = nrm(keys[0], (K, C, C)).astype(bf16)       # (tap, in_ch, out_ch)
    p["conv_b"] = nrm(keys[1], (1, C))
    # decoder_linear_embedding: Linear(C, C)
    p["emb_w"] = nrm(keys[2], (C, C)).astype(bf16)
    p["emb_b"] = jnp.zeros((1, C), jnp.float32)
    # transformer layers: head-major QKV / out-projection weights
    #   wqkv_hm[l, 0/1/2, h] == W{q,k,v}[:, h*Dh:(h+1)*Dh];  wo_hm[l, h] == W_o[h*Dh:(h+1)*Dh, :]
    p["wqkv_hm"] = nrm(keys[3], (L, 3, H, C, Dh)).astype(bf16)
    p["bqkv_hm"] = jnp.zeros((L, 3, H, 1, Dh), jnp.float32)
    p["wo_hm"] = nrm(keys[4], (L, H, Dh, C)).astype(bf16)
    p["bo"] = jnp.zeros((L, 1, C), jnp.float32)
    p["ln1_g"] = jnp.ones((L, 1, C), jnp.float32)
    p["ln1_b"] = jnp.zeros((L, 1, C), jnp.float32)
    p["w1"] = nrm(keys[5], (L, C, I)).astype(bf16)
    p["b1"] = jnp.zeros((L, 1, I), jnp.float32)
    p["w2"] = nrm(keys[6], (L, I, C)).astype(bf16)
    p["b2"] = jnp.zeros((L, 1, C), jnp.float32)
    p["ln2_g"] = jnp.ones((L, 1, C), jnp.float32)
    p["ln2_b"] = jnp.zeros((L, 1, C), jnp.float32)
    # fused output heads (both bias=False), zero-padded to a 128-lane multiple:
    #   columns [0, nfeats) = feature_mapping_reverse, [nfeats, Nout) = ..._emotion
    w_heads = nrm(keys[7], (C, Nout))
    p["w_heads_pad"] = jnp.pad(w_heads, ((0, 0), (0, Nout_pad - Nout))).astype(bf16)
    return p


def transformer_decoder_forward(params, inputs, cfg):
    """inputs: (B, T, latent_dim) float32 -> (pred_recons, pred_emotion)."""
    B, T, C = inputs.shape
    K = cfg["conv_kernel_size"]
    pad = K // 2
    Tpad = T + 2 * pad
    H = cfg["num_heads"]
    L = cfg["num_layers"]
    nfeats = cfg["nfeats"]
    Nout = nfeats + cfg["n_emotion"]
    Nout_pad = params["w_heads_pad"].shape[1]

    # ---- batch blocking: aim for M = Bblk*T rows per grid step (fills MXU M-dim) ----
    Bblk = max(1, min(B, max(1, 128 // T)))
    nblocks = (B + Bblk - 1) // Bblk
    Bpad = nblocks * Bblk
    M = Bblk * T

    # replicate padding along time (== Conv1d padding_mode='replicate'); pad batch to Bpad
    x_pad = jnp.pad(inputs, ((0, 0), (pad, pad), (0, 0)), mode="edge")   # (B, Tpad, C)
    if Bpad > B:
        x_pad = jnp.pad(x_pad, ((0, Bpad - B), (0, 0), (0, 0)))
    pe_flat = jnp.tile(sinusoidal_pe(T, C), (Bblk, 1))                   # (M, C)

    kernel = functools.partial(
        _fused_decoder_kernel,
        num_layers=L, num_heads=H,
        slope=cfg["leaky_relu_slope"], eps_in=1e-5, eps_ln=1e-5)

    def const_spec(shape):
        zeros = (0,) * len(shape)
        return pl.BlockSpec(shape, lambda i: zeros)

    out_flat = pl.pallas_call(
        kernel,
        out_shape=jax.ShapeDtypeStruct((Bpad * T, Nout_pad), jnp.float32),
        grid=(nblocks,),
        in_specs=[
            pl.BlockSpec((Bblk, Tpad, C), lambda i: (i, 0, 0)),   # x_pad block
            const_spec(params["conv_w"].shape),
            const_spec(params["conv_b"].shape),
            const_spec((M, C)),                                   # pe_flat
            const_spec(params["emb_w"].shape),
            const_spec(params["emb_b"].shape),
            const_spec(params["wqkv_hm"].shape),
            const_spec(params["bqkv_hm"].shape),
            const_spec(params["wo_hm"].shape),
            const_spec(params["bo"].shape),
            const_spec(params["ln1_g"].shape),
            const_spec(params["ln1_b"].shape),
            const_spec(params["w1"].shape),
            const_spec(params["b1"].shape),
            const_spec(params["w2"].shape),
            const_spec(params["b2"].shape),
            const_spec(params["ln2_g"].shape),
            const_spec(params["ln2_b"].shape),
            const_spec(params["w_heads_pad"].shape),
        ],
        out_specs=pl.BlockSpec((M, Nout_pad), lambda i: (i, 0)),  # lane-dense flat slab
        compiler_params=pltpu.CompilerParams(
            dimension_semantics=("parallel",)),
    )(x_pad, params["conv_w"], params["conv_b"], pe_flat,
      params["emb_w"], params["emb_b"],
      params["wqkv_hm"], params["bqkv_hm"], params["wo_hm"], params["bo"],
      params["ln1_g"], params["ln1_b"],
      params["w1"], params["b1"], params["w2"], params["b2"],
      params["ln2_g"], params["ln2_b"], params["w_heads_pad"])

    out = out_flat.reshape(Bpad, T, Nout_pad)[:B]
    pred_recons = out[..., :nfeats]
    pred_emotion = out[..., nfeats:Nout]
    return pred_recons, pred_emotion


# -----------------------------------------------------------------------------

if __name__ == "__main__":
    cfg = dict(
        latent_dim=32,
        num_heads=4,
        num_layers=2,
        intermediate_size=64,
        nfeats=16,
        n_emotion=8,
        conv_kernel_size=5,
        leaky_relu_slope=0.2,
    )
    key = jax.random.PRNGKey(0)
    pkey, xkey = jax.random.split(key)
    params = init_params(pkey, cfg)

    B, T = 2, 8
    x = jax.random.normal(xkey, (B, T, cfg["latent_dim"]), jnp.float32)

    pred_recons, pred_emotion = transformer_decoder_forward(params, x, cfg)
    jax.block_until_ready((pred_recons, pred_emotion))

    assert pred_recons.shape == (B, T, cfg["nfeats"])
    assert pred_emotion.shape == (B, T, cfg["n_emotion"])
    assert bool(jnp.all(jnp.isfinite(pred_recons)))
    assert bool(jnp.all(jnp.isfinite(pred_emotion)))
    print("KERNEL_OK")
</pallas_src>

<mosaic_0001>
module attributes {stable_mosaic.version = 11 : i64} {
  func.func @_fused_decoder_kernel(%arg0: i32, %arg1: memref<2x12x32xf32, #tpu.memory_space<vmem>>, %arg2: memref<5x32x32xbf16, #tpu.memory_space<vmem>>, %arg3: memref<1x32xf32, #tpu.memory_space<vmem>>, %arg4: memref<16x32xf32, #tpu.memory_space<vmem>>, %arg5: memref<32x32xbf16, #tpu.memory_space<vmem>>, %arg6: memref<1x32xf32, #tpu.memory_space<vmem>>, %arg7: memref<2x3x4x32x8xbf16, #tpu.memory_space<vmem>>, %arg8: memref<2x3x4x1x8xf32, #tpu.memory_space<vmem>>, %arg9: memref<2x4x8x32xbf16, #tpu.memory_space<vmem>>, %arg10: memref<2x1x32xf32, #tpu.memory_space<vmem>>, %arg11: memref<2x1x32xf32, #tpu.memory_space<vmem>>, %arg12: memref<2x1x32xf32, #tpu.memory_space<vmem>>, %arg13: memref<2x32x64xbf16, #tpu.memory_space<vmem>>, %arg14: memref<2x1x64xf32, #tpu.memory_space<vmem>>, %arg15: memref<2x64x32xbf16, #tpu.memory_space<vmem>>, %arg16: memref<2x1x32xf32, #tpu.memory_space<vmem>>, %arg17: memref<2x1x32xf32, #tpu.memory_space<vmem>>, %arg18: memref<2x1x32xf32, #tpu.memory_space<vmem>>, %arg19: memref<32x128xbf16, #tpu.memory_space<vmem>>, %arg20: memref<16x128xf32, #tpu.memory_space<vmem>>) attributes {dimension_semantics = [#tpu.dimension_semantics<parallel>], iteration_bounds = array<i64: 1>, scalar_prefetch = 0 : i64, scratch_operands = 0 : i64, tpu.core_type = #tpu.core_type<tc>, window_params = [{transform_indices = @transform_0, window_bounds = array<i64: 2, 12, 32>}, {pipeline_mode = #tpu.pipeline_mode<synchronous>, transform_indices = @transform_1, window_bounds = array<i64: 5, 32, 32>}, {pipeline_mode = #tpu.pipeline_mode<synchronous>, transform_indices = @transform_2, window_bounds = array<i64: 1, 32>}, {pipeline_mode = #tpu.pipeline_mode<synchronous>, transform_indices = @transform_3, window_bounds = array<i64: 16, 32>}, {pipeline_mode = #tpu.pipeline_mode<synchronous>, transform_indices = @transform_4, window_bounds = array<i64: 32, 32>}, {pipeline_mode = #tpu.pipeline_mode<synchronous>, transform_indices = @transform_5, window_bounds = array<i64: 1, 32>}, {pipeline_mode = #tpu.pipeline_mode<synchronous>, transform_indices = @transform_6, window_bounds = array<i64: 2, 3, 4, 32, 8>}, {pipeline_mode = #tpu.pipeline_mode<synchronous>, transform_indices = @transform_7, window_bounds = array<i64: 2, 3, 4, 1, 8>}, {pipeline_mode = #tpu.pipeline_mode<synchronous>, transform_indices = @transform_8, window_bounds = array<i64: 2, 4, 8, 32>}, {pipeline_mode = #tpu.pipeline_mode<synchronous>, transform_indices = @transform_9, window_bounds = array<i64: 2, 1, 32>}, {pipeline_mode = #tpu.pipeline_mode<synchronous>, transform_indices = @transform_10, window_bounds = array<i64: 2, 1, 32>}, {pipeline_mode = #tpu.pipeline_mode<synchronous>, transform_indices = @transform_11, window_bounds = array<i64: 2, 1, 32>}, {pipeline_mode = #tpu.pipeline_mode<synchronous>, transform_indices = @transform_12, window_bounds = array<i64: 2, 32, 64>}, {pipeline_mode = #tpu.pipeline_mode<synchronous>, transform_indices = @transform_13, window_bounds = array<i64: 2, 1, 64>}, {pipeline_mode = #tpu.pipeline_mode<synchronous>, transform_indices = @transform_14, window_bounds = array<i64: 2, 64, 32>}, {pipeline_mode = #tpu.pipeline_mode<synchronous>, transform_indices = @transform_15, window_bounds = array<i64: 2, 1, 32>}, {pipeline_mode = #tpu.pipeline_mode<synchronous>, transform_indices = @transform_16, window_bounds = array<i64: 2, 1, 32>}, {pipeline_mode = #tpu.pipeline_mode<synchronous>, transform_indices = @transform_17, window_bounds = array<i64: 2, 1, 32>}, {pipeline_mode = #tpu.pipeline_mode<synchronous>, transform_indices = @transform_18, window_bounds = array<i64: 32, 128>}, {transform_indices = @transform_19, window_bounds = array<i64: 16, 128>}]} {
    %c0 = arith.constant 0 : index
    %c0_0 = arith.constant 0 : index
    %c0_1 = arith.constant 0 : index
    %0 = vector.load %arg1[%c0, %c0_0, %c0_1] : memref<2x12x32xf32, #tpu.memory_space<vmem>>, vector<1x12x32xf32>
    %1 = vector.shape_cast %0 : vector<1x12x32xf32> to vector<12x32xf32>
    %cst = arith.constant 0.000000e+00 : f32
    %2 = vector.broadcast %cst : f32 to vector<8x32xf32>
    %3 = vector.extract_strided_slice %1 {offsets = [0, 0], sizes = [8, 32], strides = [1, 1]} : vector<12x32xf32> to vector<8x32xf32>
    %4 = arith.truncf %3 : vector<8x32xf32> to vector<8x32xbf16>
    %c0_2 = arith.constant 0 : index
    %c0_3 = arith.constant 0 : index
    %c0_4 = arith.constant 0 : index
    %5 = vector.load %arg2[%c0_2, %c0_3, %c0_4] : memref<5x32x32xbf16, #tpu.memory_space<vmem>>, vector<1x32x32xbf16>
    %6 = vector.shape_cast %5 : vector<1x32x32xbf16> to vector<32x32xbf16>
    %cst_5 = arith.constant dense<0.000000e+00> : vector<8x32xf32>
    %7 = tpu.matmul %4, %6, %cst_5 {dimension_numbers = #tpu.dot_dimension_numbers<[1], [0], [0], [1], [0, 0, 1, 1], [], []>} : vector<8x32xbf16>, vector<32x32xbf16>, vector<8x32xf32> -> vector<8x32xf32>
    %8 = arith.addf %2, %7 : vector<8x32xf32>
    %9 = vector.extract_strided_slice %1 {offsets = [1, 0], sizes = [8, 32], strides = [1, 1]} : vector<12x32xf32> to vector<8x32xf32>
    %10 = arith.truncf %9 : vector<8x32xf32> to vector<8x32xbf16>
    %c1 = arith.constant 1 : index
    %c0_6 = arith.constant 0 : index
    %c0_7 = arith.constant 0 : index
    %11 = vector.load %arg2[%c1, %c0_6, %c0_7] : memref<5x32x32xbf16, #tpu.memory_space<vmem>>, vector<1x32x32xbf16>
    %12 = vector.shape_cast %11 : vector<1x32x32xbf16> to vector<32x32xbf16>
    %cst_8 = arith.constant dense<0.000000e+00> : vector<8x32xf32>
    %13 = tpu.matmul %10, %12, %cst_8 {dimension_numbers = #tpu.dot_dimension_numbers<[1], [0], [0], [1], [0, 0, 1, 1], [], []>} : vector<8x32xbf16>, vector<32x32xbf16>, vector<8x32xf32> -> vector<8x32xf32>
    %14 = arith.addf %8, %13 : vector<8x32xf32>
    %15 = vector.extract_strided_slice %1 {offsets = [2, 0], sizes = [8, 32], strides = [1, 1]} : vector<12x32xf32> to vector<8x32xf32>
    %16 = arith.truncf %15 : vector<8x32xf32> to vector<8x32xbf16>
    %c2 = arith.constant 2 : index
    %c0_9 = arith.constant 0 : index
    %c0_10 = arith.constant 0 : index
    %17 = vector.load %arg2[%c2, %c0_9, %c0_10] : memref<5x32x32xbf16, #tpu.memory_space<vmem>>, vector<1x32x32xbf16>
    %18 = vector.shape_cast %17 : vector<1x32x32xbf16> to vector<32x32xbf16>
    %cst_11 = arith.constant dense<0.000000e+00> : vector<8x32xf32>
    %19 = tpu.matmul %16, %18, %cst_11 {dimension_numbers = #tpu.dot_dimension_numbers<[1], [0], [0], [1], [0, 0, 1, 1], [], []>} : vector<8x32xbf16>, vector<32x32xbf16>, vector<8x32xf32> -> vector<8x32xf32>
    %20 = arith.addf %14, %19 : vector<8x32xf32>
    %21 = vector.extract_strided_slice %1 {offsets = [3, 0], sizes = [8, 32], strides = [1, 1]} : vector<12x32xf32> to vector<8x32xf32>
    %22 = arith.truncf %21 : vector<8x32xf32> to vector<8x32xbf16>
    %c3 = arith.constant 3 : index
    %c0_12 = arith.constant 0 : index
    %c0_13 = arith.constant 0 : index
    %23 = vector.load %arg2[%c3, %c0_12, %c0_13] : memref<5x32x32xbf16, #tpu.memory_space<vmem>>, vector<1x32x32xbf16>
    %24 = vector.shape_cast %23 : vector<1x32x32xbf16> to vector<32x32xbf16>
    %cst_14 = arith.constant dense<0.000000e+00> : vector<8x32xf32>
    %25 = tpu.matmul %22, %24, %cst_14 {dimension_numbers = #tpu.dot_dimension_numbers<[1], [0], [0], [1], [0, 0, 1, 1], [], []>} : vector<8x32xbf16>, vector<32x32xbf16>, vector<8x32xf32> -> vector<8x32xf32>
    %26 = arith.addf %20, %25 : vector<8x32xf32>
    %27 = vector.extract_strided_slice %1 {offsets = [4, 0], sizes = [8, 32], strides = [1, 1]} : vector<12x32xf32> to vector<8x32xf32>
    %28 = arith.truncf %27 : vector<8x32xf32> to vector<8x32xbf16>
    %c4 = arith.constant 4 : index
    %c0_15 = arith.constant 0 : index
    %c0_16 = arith.constant 0 : index
    %29 = vector.load %arg2[%c4, %c0_15, %c0_16] : memref<5x32x32xbf16, #tpu.memory_space<vmem>>, vector<1x32x32xbf16>
    %30 = vector.shape_cast %29 : vector<1x32x32xbf16> to vector<32x32xbf16>
    %cst_17 = arith.constant dense<0.000000e+00> : vector<8x32xf32>
    %31 = tpu.matmul %28, %30, %cst_17 {dimension_numbers = #tpu.dot_dimension_numbers<[1], [0], [0], [1], [0, 0, 1, 1], [], []>} : vector<8x32xbf16>, vector<32x32xbf16>, vector<8x32xf32> -> vector<8x32xf32>
    %32 = arith.addf %26, %31 : vector<8x32xf32>
    %c0_18 = arith.constant 0 : index
    %c0_19 = arith.constant 0 : index
    %33 = vector.load %arg3[%c0_18, %c0_19] : memref<1x32xf32, #tpu.memory_space<vmem>>, vector<1x32xf32>
    %34 = vector.broadcast %33 : vector<1x32xf32> to vector<8x32xf32>
    %35 = arith.addf %32, %34 : vector<8x32xf32>
    %cst_20 = arith.constant 0.000000e+00 : f32
    %36 = vector.broadcast %cst_20 : f32 to vector<8x32xf32>
    %37 = arith.cmpf oge, %35, %36 : vector<8x32xf32>
    %cst_21 = arith.constant 2.000000e-01 : f32
    %38 = vector.broadcast %cst_21 : f32 to vector<8x32xf32>
    %39 = arith.mulf %38, %35 : vector<8x32xf32>
    %40 = arith.select %37, %35, %39 : vector<8x32xi1>, vector<8x32xf32>
    %cst_22 = arith.constant dense<0.000000e+00> : vector<32xf32>
    %41 = vector.multi_reduction <add>, %40, %cst_22 [0] : vector<8x32xf32> to vector<32xf32>
    %42 = vector.shape_cast %41 : vector<32xf32> to vector<1x32xf32>
    %cst_23 = arith.constant 8.000000e+00 : f32
    %43 = vector.broadcast %cst_23 : f32 to vector<1x32xf32>
    %44 = arith.divf %42, %43 : vector<1x32xf32>
    %45 = vector.broadcast %44 : vector<1x32xf32> to vector<8x32xf32>
    %46 = arith.subf %40, %45 : vector<8x32xf32>
    %47 = arith.mulf %46, %46 : vector<8x32xf32>
    %cst_24 = arith.constant dense<0.000000e+00> : vector<32xf32>
    %48 = vector.multi_reduction <add>, %47, %cst_24 [0] : vector<8x32xf32> to vector<32xf32>
    %49 = vector.shape_cast %48 : vector<32xf32> to vector<1x32xf32>
    %cst_25 = arith.constant 8.000000e+00 : f32
    %50 = vector.broadcast %cst_25 : f32 to vector<1x32xf32>
    %51 = arith.divf %49, %50 : vector<1x32xf32>
    %52 = vector.broadcast %44 : vector<1x32xf32> to vector<8x32xf32>
    %53 = arith.subf %40, %52 : vector<8x32xf32>
    %cst_26 = arith.constant 9.99999974E-6 : f32
    %54 = vector.broadcast %cst_26 : f32 to vector<1x32xf32>
    %55 = arith.addf %51, %54 : vector<1x32xf32>
    %56 = math.rsqrt %55 : vector<1x32xf32>
    %57 = vector.broadcast %56 : vector<1x32xf32> to vector<8x32xf32>
    %58 = arith.mulf %53, %57 : vector<8x32xf32>
    %c1_27 = arith.constant 1 : index
    %c0_28 = arith.constant 0 : index
    %c0_29 = arith.constant 0 : index
    %59 = vector.load %arg1[%c1_27, %c0_28, %c0_29] : memref<2x12x32xf32, #tpu.memory_space<vmem>>, vector<1x12x32xf32>
    %60 = vector.shape_cast %59 : vector<1x12x32xf32> to vector<12x32xf32>
    %cst_30 = arith.constant 0.000000e+00 : f32
    %61 = vector.broadcast %cst_30 : f32 to vector<8x32xf32>
    %62 = vector.extract_strided_slice %60 {offsets = [0, 0], sizes = [8, 32], strides = [1, 1]} : vector<12x32xf32> to vector<8x32xf32>
    %63 = arith.truncf %62 : vector<8x32xf32> to vector<8x32xbf16>
    %c0_31 = arith.constant 0 : index
    %c0_32 = arith.constant 0 : index
    %c0_33 = arith.constant 0 : index
    %64 = vector.load %arg2[%c0_31, %c0_32, %c0_33] : memref<5x32x32xbf16, #tpu.memory_space<vmem>>, vector<1x32x32xbf16>
    %65 = vector.shape_cast %64 : vector<1x32x32xbf16> to vector<32x32xbf16>
    %cst_34 = arith.constant dense<0.000000e+00> : vector<8x32xf32>
    %66 = tpu.matmul %63, %65, %cst_34 {dimension_numbers = #tpu.dot_dimension_numbers<[1], [0], [0], [1], [0, 0, 1, 1], [], []>} : vector<8x32xbf16>, vector<32x32xbf16>, vector<8x32xf32> -> vector<8x32xf32>
    %67 = arith.addf %61, %66 : vector<8x32xf32>
    %68 = vector.extract_strided_slice %60 {offsets = [1, 0], sizes = [8, 32], strides = [1, 1]} : vector<12x32xf32> to vector<8x32xf32>
    %69 = arith.truncf %68 : vector<8x32xf32> to vector<8x32xbf16>
    %c1_35 = arith.constant 1 : index
    %c0_36 = arith.constant 0 : index
    %c0_37 = arith.constant 0 : index
    %70 = vector.load %arg2[%c1_35, %c0_36, %c0_37] : memref<5x32x32xbf16, #tpu.memory_space<vmem>>, vector<1x32x32xbf16>
    %71 = vector.shape_cast %70 : vector<1x32x32xbf16> to vector<32x32xbf16>
    %cst_38 = arith.constant dense<0.000000e+00> : vector<8x32xf32>
    %72 = tpu.matmul %69, %71, %cst_38 {dimension_numbers = #tpu.dot_dimension_numbers<[1], [0], [0], [1], [0, 0, 1, 1], [], []>} : vector<8x32xbf16>, vector<32x32xbf16>, vector<8x32xf32> -> vector<8x32xf32>
    %73 = arith.addf %67, %72 : vector<8x32xf32>
    %74 = vector.extract_strided_slice %60 {offsets = [2, 0], sizes = [8, 32], strides = [1, 1]} : vector<12x32xf32> to vector<8x32xf32>
    %75 = arith.truncf %74 : vector<8x32xf32> to vector<8x32xbf16>
    %c2_39 = arith.constant 2 : index
    %c0_40 = arith.constant 0 : index
    %c0_41 = arith.constant 0 : index
    %76 = vector.load %arg2[%c2_39, %c0_40, %c0_41] : memref<5x32x32xbf16, #tpu.memory_space<vmem>>, vector<1x32x32xbf16>
    %77 = vector.shape_cast %76 : vector<1x32x32xbf16> to vector<32x32xbf16>
    %cst_42 = arith.constant dense<0.000000e+00> : vector<8x32xf32>
    %78 = tpu.matmul %75, %77, %cst_42 {dimension_numbers = #tpu.dot_dimension_numbers<[1], [0], [0], [1], [0, 0, 1, 1], [], []>} : vector<8x32xbf16>, vector<32x32xbf16>, vector<8x32xf32> -> vector<8x32xf32>
    %79 = arith.addf %73, %78 : vector<8x32xf32>
    %80 = vector.extract_strided_slice %60 {offsets = [3, 0], sizes = [8, 32], strides = [1, 1]} : vector<12x32xf32> to vector<8x32xf32>
    %81 = arith.truncf %80 : vector<8x32xf32> to vector<8x32xbf16>
    %c3_43 = arith.constant 3 : index
    %c0_44 = arith.constant 0 : index
    %c0_45 = arith.constant 0 : index
    %82 = vector.load %arg2[%c3_43, %c0_44, %c0_45] : memref<5x32x32xbf16, #tpu.memory_space<vmem>>, vector<1x32x32xbf16>
    %83 = vector.shape_cast %82 : vector<1x32x32xbf16> to vector<32x32xbf16>
    %cst_46 = arith.constant dense<0.000000e+00> : vector<8x32xf32>
    %84 = tpu.matmul %81, %83, %cst_46 {dimension_numbers = #tpu.dot_dimension_numbers<[1], [0], [0], [1], [0, 0, 1, 1], [], []>} : vector<8x32xbf16>, vector<32x32xbf16>, vector<8x32xf32> -> vector<8x32xf32>
    %85 = arith.addf %79, %84 : vector<8x32xf32>
    %86 = vector.extract_strided_slice %60 {offsets = [4, 0], sizes = [8, 32], strides = [1, 1]} : vector<12x32xf32> to vector<8x32xf32>
    %87 = arith.truncf %86 : vector<8x32xf32> to vector<8x32xbf16>
    %c4_47 = arith.constant 4 : index
    %c0_48 = arith.constant 0 : index
    %c0_49 = arith.constant 0 : index
    %88 = vector.load %arg2[%c4_47, %c0_48, %c0_49] : memref<5x32x32xbf16, #tpu.memory_space<vmem>>, vector<1x32x32xbf16>
    %89 = vector.shape_cast %88 : vector<1x32x32xbf16> to vector<32x32xbf16>
    %cst_50 = arith.constant dense<0.000000e+00> : vector<8x32xf32>
    %90 = tpu.matmul %87, %89, %cst_50 {dimension_numbers = #tpu.dot_dimension_numbers<[1], [0], [0], [1], [0, 0, 1, 1], [], []>} : vector<8x32xbf16>, vector<32x32xbf16>, vector<8x32xf32> -> vector<8x32xf32>
    %91 = arith.addf %85, %90 : vector<8x32xf32>
    %c0_51 = arith.constant 0 : index
    %c0_52 = arith.constant 0 : index
    %92 = vector.load %arg3[%c0_51, %c0_52] : memref<1x32xf32, #tpu.memory_space<vmem>>, vector<1x32xf32>
    %93 = vector.broadcast %92 : vector<1x32xf32> to vector<8x32xf32>
    %94 = arith.addf %91, %93 : vector<8x32xf32>
    %cst_53 = arith.constant 0.000000e+00 : f32
    %95 = vector.broadcast %cst_53 : f32 to vector<8x32xf32>
    %96 = arith.cmpf oge, %94, %95 : vector<8x32xf32>
    %cst_54 = arith.constant 2.000000e-01 : f32
    %97 = vector.broadcast %cst_54 : f32 to vector<8x32xf32>
    %98 = arith.mulf %97, %94 : vector<8x32xf32>
    %99 = arith.select %96, %94, %98 : vector<8x32xi1>, vector<8x32xf32>
    %cst_55 = arith.constant dense<0.000000e+00> : vector<32xf32>
    %100 = vector.multi_reduction <add>, %99, %cst_55 [0] : vector<8x32xf32> to vector<32xf32>
    %101 = vector.shape_cast %100 : vector<32xf32> to vector<1x32xf32>
    %cst_56 = arith.constant 8.000000e+00 : f32
    %102 = vector.broadcast %cst_56 : f32 to vector<1x32xf32>
    %103 = arith.divf %101, %102 : vector<1x32xf32>
    %104 = vector.broadcast %103 : vector<1x32xf32> to vector<8x32xf32>
    %105 = arith.subf %99, %104 : vector<8x32xf32>
    %106 = arith.mulf %105, %105 : vector<8x32xf32>
    %cst_57 = arith.constant dense<0.000000e+00> : vector<32xf32>
    %107 = vector.multi_reduction <add>, %106, %cst_57 [0] : vector<8x32xf32> to vector<32xf32>
    %108 = vector.shape_cast %107 : vector<32xf32> to vector<1x32xf32>
    %cst_58 = arith.constant 8.000000e+00 : f32
    %109 = vector.broadcast %cst_58 : f32 to vector<1x32xf32>
    %110 = arith.divf %108, %109 : vector<1x32xf32>
    %111 = vector.broadcast %103 : vector<1x32xf32> to vector<8x32xf32>
    %112 = arith.subf %99, %111 : vector<8x32xf32>
    %cst_59 = arith.constant 9.99999974E-6 : f32
    %113 = vector.broadcast %cst_59 : f32 to vector<1x32xf32>
    %114 = arith.addf %110, %113 : vector<1x32xf32>
    %115 = math.rsqrt %114 : vector<1x32xf32>
    %116 = vector.broadcast %115 : vector<1x32xf32> to vector<8x32xf32>
    %117 = arith.mulf %112, %116 : vector<8x32xf32>
    %118 = tpu.concatenate %58, %117 in 0 : vector<8x32xf32>, vector<8x32xf32> -> vector<16x32xf32>
    %119 = arith.truncf %118 : vector<16x32xf32> to vector<16x32xbf16>
    %c0_60 = arith.constant 0 : index
    %c0_61 = arith.constant 0 : index
    %120 = vector.load %arg5[%c0_60, %c0_61] : memref<32x32xbf16, #tpu.memory_space<vmem>>, vector<32x32xbf16>
    %cst_62 = arith.constant dense<0.000000e+00> : vector<16x32xf32>
    %121 = tpu.matmul %119, %120, %cst_62 {dimension_numbers = #tpu.dot_dimension_numbers<[1], [0], [0], [1], [0, 0, 1, 1], [], []>} : vector<16x32xbf16>, vector<32x32xbf16>, vector<16x32xf32> -> vector<16x32xf32>
    %c0_63 = arith.constant 0 : index
    %c0_64 = arith.constant 0 : index
    %122 = vector.load %arg6[%c0_63, %c0_64] : memref<1x32xf32, #tpu.memory_space<vmem>>, vector<1x32xf32>
    %123 = vector.broadcast %122 : vector<1x32xf32> to vector<16x32xf32>
    %124 = arith.addf %121, %123 : vector<16x32xf32>
    %c0_65 = arith.constant 0 : index
    %c0_66 = arith.constant 0 : index
    %125 = vector.load %arg4[%c0_65, %c0_66] : memref<16x32xf32, #tpu.memory_space<vmem>>, vector<16x32xf32>
    %126 = arith.addf %124, %125 : vector<16x32xf32>
    %127 = arith.truncf %126 : vector<16x32xf32> to vector<16x32xbf16>
    %c0_67 = arith.constant 0 : index
    %c0_68 = arith.constant 0 : index
    %c0_69 = arith.constant 0 : index
    %c0_70 = arith.constant 0 : index
    %c0_71 = arith.constant 0 : index
    %128 = vector.load %arg7[%c0_67, %c0_68, %c0_69, %c0_70, %c0_71] : memref<2x3x4x32x8xbf16, #tpu.memory_space<vmem>>, vector<1x1x1x32x8xbf16>
    %129 = vector.shape_cast %128 : vector<1x1x1x32x8xbf16> to vector<32x8xbf16>
    %cst_72 = arith.constant dense<0.000000e+00> : vector<16x8xf32>
    %130 = tpu.matmul %127, %129, %cst_72 {dimension_numbers = #tpu.dot_dimension_numbers<[1], [0], [0], [1], [0, 0, 1, 1], [], []>} : vector<16x32xbf16>, vector<32x8xbf16>, vector<16x8xf32> -> vector<16x8xf32>
    %c0_73 = arith.constant 0 : index
    %c0_74 = arith.constant 0 : index
    %c0_75 = arith.constant 0 : index
    %c0_76 = arith.constant 0 : index
    %c0_77 = arith.constant 0 : index
    %131 = vector.load %arg8[%c0_73, %c0_74, %c0_75, %c0_76, %c0_77] : memref<2x3x4x1x8xf32, #tpu.memory_space<vmem>>, vector<1x1x1x1x8xf32>
    %132 = vector.shape_cast %131 : vector<1x1x1x1x8xf32> to vector<1x8xf32>
    %133 = vector.broadcast %132 : vector<1x8xf32> to vector<16x8xf32>
    %134 = arith.addf %130, %133 : vector<16x8xf32>
    %c0_78 = arith.constant 0 : index
    %c1_79 = arith.constant 1 : index
    %c0_80 = arith.constant 0 : index
    %c0_81 = arith.constant 0 : index
    %c0_82 = arith.constant 0 : index
    %135 = vector.load %arg7[%c0_78, %c1_79, %c0_80, %c0_81, %c0_82] : memref<2x3x4x32x8xbf16, #tpu.memory_space<vmem>>, vector<1x1x1x32x8xbf16>
    %136 = vector.shape_cast %135 : vector<1x1x1x32x8xbf16> to vector<32x8xbf16>
    %cst_83 = arith.constant dense<0.000000e+00> : vector<16x8xf32>
    %137 = tpu.matmul %127, %136, %cst_83 {dimension_numbers = #tpu.dot_dimension_numbers<[1], [0], [0], [1], [0, 0, 1, 1], [], []>} : vector<16x32xbf16>, vector<32x8xbf16>, vector<16x8xf32> -> vector<16x8xf32>
    %c0_84 = arith.constant 0 : index
    %c1_85 = arith.constant 1 : index
    %c0_86 = arith.constant 0 : index
    %c0_87 = arith.constant 0 : index
    %c0_88 = arith.constant 0 : index
    %138 = vector.load %arg8[%c0_84, %c1_85, %c0_86, %c0_87, %c0_88] : memref<2x3x4x1x8xf32, #tpu.memory_space<vmem>>, vector<1x1x1x1x8xf32>
    %139 = vector.shape_cast %138 : vector<1x1x1x1x8xf32> to vector<1x8xf32>
    %140 = vector.broadcast %139 : vector<1x8xf32> to vector<16x8xf32>
    %141 = arith.addf %137, %140 : vector<16x8xf32>
    %c0_89 = arith.constant 0 : index
    %c2_90 = arith.constant 2 : index
    %c0_91 = arith.constant 0 : index
    %c0_92 = arith.constant 0 : index
    %c0_93 = arith.constant 0 : index
    %142 = vector.load %arg7[%c0_89, %c2_90, %c0_91, %c0_92, %c0_93] : memref<2x3x4x32x8xbf16, #tpu.memory_space<vmem>>, vector<1x1x1x32x8xbf16>
    %143 = vector.shape_cast %142 : vector<1x1x1x32x8xbf16> to vector<32x8xbf16>
    %cst_94 = arith.constant dense<0.000000e+00> : vector<16x8xf32>
    %144 = tpu.matmul %127, %143, %cst_94 {dimension_numbers = #tpu.dot_dimension_numbers<[1], [0], [0], [1], [0, 0, 1, 1], [], []>} : vector<16x32xbf16>, vector<32x8xbf16>, vector<16x8xf32> -> vector<16x8xf32>
    %c0_95 = arith.constant 0 : index
    %c2_96 = arith.constant 2 : index
    %c0_97 = arith.constant 0 : index
    %c0_98 = arith.constant 0 : index
    %c0_99 = arith.constant 0 : index
    %145 = vector.load %arg8[%c0_95, %c2_96, %c0_97, %c0_98, %c0_99] : memref<2x3x4x1x8xf32, #tpu.memory_space<vmem>>, vector<1x1x1x1x8xf32>
    %146 = vector.shape_cast %145 : vector<1x1x1x1x8xf32> to vector<1x8xf32>
    %147 = vector.broadcast %146 : vector<1x8xf32> to vector<16x8xf32>
    %148 = arith.addf %144, %147 : vector<16x8xf32>
    %c0_100 = arith.constant 0 : index
    %c0_101 = arith.constant 0 : index
    %c1_102 = arith.constant 1 : index
    %c0_103 = arith.constant 0 : index
    %c0_104 = arith.constant 0 : index
    %149 = vector.load %arg7[%c0_100, %c0_101, %c1_102, %c0_103, %c0_104] : memref<2x3x4x32x8xbf16, #tpu.memory_space<vmem>>, vector<1x1x1x32x8xbf16>
    %150 = vector.shape_cast %149 : vector<1x1x1x32x8xbf16> to vector<32x8xbf16>
    %cst_105 = arith.constant dense<0.000000e+00> : vector<16x8xf32>
    %151 = tpu.matmul %127, %150, %cst_105 {dimension_numbers = #tpu.dot_dimension_numbers<[1], [0], [0], [1], [0, 0, 1, 1], [], []>} : vector<16x32xbf16>, vector<32x8xbf16>, vector<16x8xf32> -> vector<16x8xf32>
    %c0_106 = arith.constant 0 : index
    %c0_107 = arith.constant 0 : index
    %c1_108 = arith.constant 1 : index
    %c0_109 = arith.constant 0 : index
    %c0_110 = arith.constant 0 : index
    %152 = vector.load %arg8[%c0_106, %c0_107, %c1_108, %c0_109, %c0_110] : memref<2x3x4x1x8xf32, #tpu.memory_space<vmem>>, vector<1x1x1x1x8xf32>
    %153 = vector.shape_cast %152 : vector<1x1x1x1x8xf32> to vector<1x8xf32>
    %154 = vector.broadcast %153 : vector<1x8xf32> to vector<16x8xf32>
    %155 = arith.addf %151, %154 : vector<16x8xf32>
    %c0_111 = arith.constant 0 : index
    %c1_112 = arith.constant 1 : index
    %c1_113 = arith.constant 1 : index
    %c0_114 = arith.constant 0 : index
    %c0_115 = arith.constant 0 : index
    %156 = vector.load %arg7[%c0_111, %c1_112, %c1_113, %c0_114, %c0_115] : memref<2x3x4x32x8xbf16, #tpu.memory_space<vmem>>, vector<1x1x1x32x8xbf16>
    %157 = vector.shape_cast %156 : vector<1x1x1x32x8xbf16> to vector<32x8xbf16>
    %cst_116 = arith.constant dense<0.000000e+00> : vector<16x8xf32>
    %158 = tpu.matmul %127, %157, %cst_116 {dimension_numbers = #tpu.dot_dimension_numbers<[1], [0], [0], [1], [0, 0, 1, 1], [], []>} : vector<16x32xbf16>, vector<32x8xbf16>, vector<16x8xf32> -> vector<16x8xf32>
    %c0_117 = arith.constant 0 : index
    %c1_118 = arith.constant 1 : index
    %c1_119 = arith.constant 1 : index
    %c0_120 = arith.constant 0 : index
    %c0_121 = arith.constant 0 : index
    %159 = vector.load %arg8[%c0_117, %c1_118, %c1_119, %c0_120, %c0_121] : memref<2x3x4x1x8xf32, #tpu.memory_space<vmem>>, vector<1x1x1x1x8xf32>
    %160 = vector.shape_cast %159 : vector<1x1x1x1x8xf32> to vector<1x8xf32>
    %161 = vector.broadcast %160 : vector<1x8xf32> to vector<16x8xf32>
    %162 = arith.addf %158, %161 : vector<16x8xf32>
    %c0_122 = arith.constant 0 : index
    %c2_123 = arith.constant 2 : index
    %c1_124 = arith.constant 1 : index
    %c0_125 = arith.constant 0 : index
    %c0_126 = arith.constant 0 : index
    %163 = vector.load %arg7[%c0_122, %c2_123, %c1_124, %c0_125, %c0_126] : memref<2x3x4x32x8xbf16, #tpu.memory_space<vmem>>, vector<1x1x1x32x8xbf16>
    %164 = vector.shape_cast %163 : vector<1x1x1x32x8xbf16> to vector<32x8xbf16>
    %cst_127 = arith.constant dense<0.000000e+00> : vector<16x8xf32>
    %165 = tpu.matmul %127, %164, %cst_127 {dimension_numbers = #tpu.dot_dimension_numbers<[1], [0], [0], [1], [0, 0, 1, 1], [], []>} : vector<16x32xbf16>, vector<32x8xbf16>, vector<16x8xf32> -> vector<16x8xf32>
    %c0_128 = arith.constant 0 : index
    %c2_129 = arith.constant 2 : index
    %c1_130 = arith.constant 1 : index
    %c0_131 = arith.constant 0 : index
    %c0_132 = arith.constant 0 : index
    %166 = vector.load %arg8[%c0_128, %c2_129, %c1_130, %c0_131, %c0_132] : memref<2x3x4x1x8xf32, #tpu.memory_space<vmem>>, vector<1x1x1x1x8xf32>
    %167 = vector.shape_cast %166 : vector<1x1x1x1x8xf32> to vector<1x8xf32>
    %168 = vector.broadcast %167 : vector<1x8xf32> to vector<16x8xf32>
    %169 = arith.addf %165, %168 : vector<16x8xf32>
    %c0_133 = arith.constant 0 : index
    %c0_134 = arith.constant 0 : index
    %c2_135 = arith.constant 2 : index
    %c0_136 = arith.constant 0 : index
    %c0_137 = arith.constant 0 : index
    %170 = vector.load %arg7[%c0_133, %c0_134, %c2_135, %c0_136, %c0_137] : memref<2x3x4x32x8xbf16, #tpu.memory_space<vmem>>, vector<1x1x1x32x8xbf16>
    %171 = vector.shape_cast %170 : vector<1x1x1x32x8xbf16> to vector<32x8xbf16>
    %cst_138 = arith.constant dense<0.000000e+00> : vector<16x8xf32>
    %172 = tpu.matmul %127, %171, %cst_138 {dimension_numbers = #tpu.dot_dimension_numbers<[1], [0], [0], [1], [0, 0, 1, 1], [], []>} : vector<16x32xbf16>, vector<32x8xbf16>, vector<16x8xf32> -> vector<16x8xf32>
    %c0_139 = arith.constant 0 : index
    %c0_140 = arith.constant 0 : index
    %c2_141 = arith.constant 2 : index
    %c0_142 = arith.constant 0 : index
    %c0_143 = arith.constant 0 : index
    %173 = vector.load %arg8[%c0_139, %c0_140, %c2_141, %c0_142, %c0_143] : memref<2x3x4x1x8xf32, #tpu.memory_space<vmem>>, vector<1x1x1x1x8xf32>
    %174 = vector.shape_cast %173 : vector<1x1x1x1x8xf32> to vector<1x8xf32>
    %175 = vector.broadcast %174 : vector<1x8xf32> to vector<16x8xf32>
    %176 = arith.addf %172, %175 : vector<16x8xf32>
    %c0_144 = arith.constant 0 : index
    %c1_145 = arith.constant 1 : index
    %c2_146 = arith.constant 2 : index
    %c0_147 = arith.constant 0 : index
    %c0_148 = arith.constant 0 : index
    %177 = vector.load %arg7[%c0_144, %c1_145, %c2_146, %c0_147, %c0_148] : memref<2x3x4x32x8xbf16, #tpu.memory_space<vmem>>, vector<1x1x1x32x8xbf16>
    %178 = vector.shape_cast %177 : vector<1x1x1x32x8xbf16> to vector<32x8xbf16>
    %cst_149 = arith.constant dense<0.000000e+00> : vector<16x8xf32>
    %179 = tpu.matmul %127, %178, %cst_149 {dimension_numbers = #tpu.dot_dimension_numbers<[1], [0], [0], [1], [0, 0, 1, 1], [], []>} : vector<16x32xbf16>, vector<32x8xbf16>, vector<16x8xf32> -> vector<16x8xf32>
    %c0_150 = arith.constant 0 : index
    %c1_151 = arith.constant 1 : index
    %c2_152 = arith.constant 2 : index
    %c0_153 = arith.constant 0 : index
    %c0_154 = arith.constant 0 : index
    %180 = vector.load %arg8[%c0_150, %c1_151, %c2_152, %c0_153, %c0_154] : memref<2x3x4x1x8xf32, #tpu.memory_space<vmem>>, vector<1x1x1x1x8xf32>
    %181 = vector.shape_cast %180 : vector<1x1x1x1x8xf32> to vector<1x8xf32>
    %182 = vector.broadcast %181 : vector<1x8xf32> to vector<16x8xf32>
    %183 = arith.addf %179, %182 : vector<16x8xf32>
    %c0_155 = arith.constant 0 : index
    %c2_156 = arith.constant 2 : index
    %c2_157 = arith.constant 2 : index
    %c0_158 = arith.constant 0 : index
    %c0_159 = arith.constant 0 : index
    %184 = vector.load %arg7[%c0_155, %c2_156, %c2_157, %c0_158, %c0_159] : memref<2x3x4x32x8xbf16, #tpu.memory_space<vmem>>, vector<1x1x1x32x8xbf16>
    %185 = vector.shape_cast %184 : vector<1x1x1x32x8xbf16> to vector<32x8xbf16>
    %cst_160 = arith.constant dense<0.000000e+00> : vector<16x8xf32>
    %186 = tpu.matmul %127, %185, %cst_160 {dimension_numbers = #tpu.dot_dimension_numbers<[1], [0], [0], [1], [0, 0, 1, 1], [], []>} : vector<16x32xbf16>, vector<32x8xbf16>, vector<16x8xf32> -> vector<16x8xf32>
    %c0_161 = arith.constant 0 : index
    %c2_162 = arith.constant 2 : index
    %c2_163 = arith.constant 2 : index
    %c0_164 = arith.constant 0 : index
    %c0_165 = arith.constant 0 : index
    %187 = vector.load %arg8[%c0_161, %c2_162, %c2_163, %c0_164, %c0_165] : memref<2x3x4x1x8xf32, #tpu.memory_space<vmem>>, vector<1x1x1x1x8xf32>
    %188 = vector.shape_cast %187 : vector<1x1x1x1x8xf32> to vector<1x8xf32>
    %189 = vector.broadcast %188 : vector<1x8xf32> to vector<16x8xf32>
    %190 = arith.addf %186, %189 : vector<16x8xf32>
    %c0_166 = arith.constant 0 : index
    %c0_167 = arith.constant 0 : index
    %c3_168 = arith.constant 3 : index
    %c0_169 = arith.constant 0 : index
    %c0_170 = arith.constant 0 : index
    %191 = vector.load %arg7[%c0_166, %c0_167, %c3_168, %c0_169, %c0_170] : memref<2x3x4x32x8xbf16, #tpu.memory_space<vmem>>, vector<1x1x1x32x8xbf16>
    %192 = vector.shape_cast %191 : vector<1x1x1x32x8xbf16> to vector<32x8xbf16>
    %cst_171 = arith.constant dense<0.000000e+00> : vector<16x8xf32>
    %193 = tpu.matmul %127, %192, %cst_171 {dimension_numbers = #tpu.dot_dimension_numbers<[1], [0], [0], [1], [0, 0, 1, 1], [], []>} : vector<16x32xbf16>, vector<32x8xbf16>, vector<16x8xf32> -> vector<16x8xf32>
    %c0_172 = arith.constant 0 : index
    %c0_173 = arith.constant 0 : index
    %c3_174 = arith.constant 3 : index
    %c0_175 = arith.constant 0 : index
    %c0_176 = arith.constant 0 : index
    %194 = vector.load %arg8[%c0_172, %c0_173, %c3_174, %c0_175, %c0_176] : memref<2x3x4x1x8xf32, #tpu.memory_space<vmem>>, vector<1x1x1x1x8xf32>
    %195 = vector.shape_cast %194 : vector<1x1x1x1x8xf32> to vector<1x8xf32>
    %196 = vector.broadcast %195 : vector<1x8xf32> to vector<16x8xf32>
    %197 = arith.addf %193, %196 : vector<16x8xf32>
    %c0_177 = arith.constant 0 : index
    %c1_178 = arith.constant 1 : index
    %c3_179 = arith.constant 3 : index
    %c0_180 = arith.constant 0 : index
    %c0_181 = arith.constant 0 : index
    %198 = vector.load %arg7[%c0_177, %c1_178, %c3_179, %c0_180, %c0_181] : memref<2x3x4x32x8xbf16, #tpu.memory_space<vmem>>, vector<1x1x1x32x8xbf16>
    %199 = vector.shape_cast %198 : vector<1x1x1x32x8xbf16> to vector<32x8xbf16>
    %cst_182 = arith.constant dense<0.000000e+00> : vector<16x8xf32>
    %200 = tpu.matmul %127, %199, %cst_182 {dimension_numbers = #tpu.dot_dimension_numbers<[1], [0], [0], [1], [0, 0, 1, 1], [], []>} : vector<16x32xbf16>, vector<32x8xbf16>, vector<16x8xf32> -> vector<16x8xf32>
    %c0_183 = arith.constant 0 : index
    %c1_184 = arith.constant 1 : index
    %c3_185 = arith.constant 3 : index
    %c0_186 = arith.constant 0 : index
    %c0_187 = arith.constant 0 : index
    %201 = vector.load %arg8[%c0_183, %c1_184, %c3_185, %c0_186, %c0_187] : memref<2x3x4x1x8xf32, #tpu.memory_space<vmem>>, vector<1x1x1x1x8xf32>
    %202 = vector.shape_cast %201 : vector<1x1x1x1x8xf32> to vector<1x8xf32>
    %203 = vector.broadcast %202 : vector<1x8xf32> to vector<16x8xf32>
    %204 = arith.addf %200, %203 : vector<16x8xf32>
    %c0_188 = arith.constant 0 : index
    %c2_189 = arith.constant 2 : index
    %c3_190 = arith.constant 3 : index
    %c0_191 = arith.constant 0 : index
    %c0_192 = arith.constant 0 : index
    %205 = vector.load %arg7[%c0_188, %c2_189, %c3_190, %c0_191, %c0_192] : memref<2x3x4x32x8xbf16, #tpu.memory_space<vmem>>, vector<1x1x1x32x8xbf16>
    %206 = vector.shape_cast %205 : vector<1x1x1x32x8xbf16> to vector<32x8xbf16>
    %cst_193 = arith.constant dense<0.000000e+00> : vector<16x8xf32>
    %207 = tpu.matmul %127, %206, %cst_193 {dimension_numbers = #tpu.dot_dimension_numbers<[1], [0], [0], [1], [0, 0, 1, 1], [], []>} : vector<16x32xbf16>, vector<32x8xbf16>, vector<16x8xf32> -> vector<16x8xf32>
    %c0_194 = arith.constant 0 : index
    %c2_195 = arith.constant 2 : index
    %c3_196 = arith.constant 3 : index
    %c0_197 = arith.constant 0 : index
    %c0_198 = arith.constant 0 : index
    %208 = vector.load %arg8[%c0_194, %c2_195, %c3_196, %c0_197, %c0_198] : memref<2x3x4x1x8xf32, #tpu.memory_space<vmem>>, vector<1x1x1x1x8xf32>
    %209 = vector.shape_cast %208 : vector<1x1x1x1x8xf32> to vector<1x8xf32>
    %210 = vector.broadcast %209 : vector<1x8xf32> to vector<16x8xf32>
    %211 = arith.addf %207, %210 : vector<16x8xf32>
    %cst_199 = arith.constant 0.000000e+00 : f32
    %212 = vector.broadcast %cst_199 : f32 to vector<8x32xf32>
    %213 = vector.extract_strided_slice %134 {offsets = [0, 0], sizes = [8, 8], strides = [1, 1]} : vector<16x8xf32> to vector<8x8xf32>
    %214 = arith.truncf %213 : vector<8x8xf32> to vector<8x8xbf16>
    %215 = vector.extract_strided_slice %141 {offsets = [0, 0], sizes = [8, 8], strides = [1, 1]} : vector<16x8xf32> to vector<8x8xf32>
    %216 = arith.truncf %215 : vector<8x8xf32> to vector<8x8xbf16>
    %217 = vector.extract_strided_slice %148 {offsets = [0, 0], sizes = [8, 8], strides = [1, 1]} : vector<16x8xf32> to vector<8x8xf32>
    %218 = arith.truncf %217 : vector<8x8xf32> to vector<8x8xbf16>
    %cst_200 = arith.constant dense<0.000000e+00> : vector<8x8xf32>
    %219 = tpu.matmul %214, %216, %cst_200 {dimension_numbers = #tpu.dot_dimension_numbers<[1], [1], [0], [0], [0, 0, 1, 0], [], []>} : vector<8x8xbf16>, vector<8x8xbf16>, vector<8x8xf32> -> vector<8x8xf32>
    %cst_201 = arith.constant 0.353553385 : f32
    %220 = vector.broadcast %cst_201 : f32 to vector<8x8xf32>
    %221 = arith.mulf %219, %220 : vector<8x8xf32>
    %cst_202 = arith.constant dense<0xFF800000> : vector<8xf32>
    %222 = vector.multi_reduction <maximumf>, %221, %cst_202 [1] : vector<8x8xf32> to vector<8xf32>
    %223 = vector.shape_cast %222 : vector<8xf32> to vector<8x1xf32>
    %224 = vector.broadcast %223 : vector<8x1xf32> to vector<8x8xf32>
    %225 = arith.subf %221, %224 : vector<8x8xf32>
    %226 = math.exp %225 : vector<8x8xf32>
    %cst_203 = arith.constant dense<0.000000e+00> : vector<8xf32>
    %227 = vector.multi_reduction <add>, %226, %cst_203 [1] : vector<8x8xf32> to vector<8xf32>
    %228 = vector.shape_cast %227 : vector<8xf32> to vector<8x1xf32>
    %229 = tpu.reciprocal %228 {approx = true} : vector<8x1xf32> -> vector<8x1xf32>
    %230 = vector.broadcast %229 : vector<8x1xf32> to vector<8x8xf32>
    %231 = arith.mulf %226, %230 : vector<8x8xf32>
    %232 = arith.truncf %231 : vector<8x8xf32> to vector<8x8xbf16>
    %cst_204 = arith.constant dense<0.000000e+00> : vector<8x8xf32>
    %233 = tpu.matmul %232, %218, %cst_204 {dimension_numbers = #tpu.dot_dimension_numbers<[1], [0], [0], [1], [0, 0, 1, 1], [], []>} : vector<8x8xbf16>, vector<8x8xbf16>, vector<8x8xf32> -> vector<8x8xf32>
    %234 = arith.truncf %233 : vector<8x8xf32> to vector<8x8xbf16>
    %c0_205 = arith.constant 0 : index
    %c0_206 = arith.constant 0 : index
    %c0_207 = arith.constant 0 : index
    %c0_208 = arith.constant 0 : index
    %235 = vector.load %arg9[%c0_205, %c0_206, %c0_207, %c0_208] : memref<2x4x8x32xbf16, #tpu.memory_space<vmem>>, vector<1x1x8x32xbf16>
    %236 = vector.shape_cast %235 : vector<1x1x8x32xbf16> to vector<8x32xbf16>
    %cst_209 = arith.constant dense<0.000000e+00> : vector<8x32xf32>
    %237 = tpu.matmul %234, %236, %cst_209 {dimension_numbers = #tpu.dot_dimension_numbers<[1], [0], [0], [1], [0, 0, 1, 1], [], []>} : vector<8x8xbf16>, vector<8x32xbf16>, vector<8x32xf32> -> vector<8x32xf32>
    %238 = arith.addf %212, %237 : vector<8x32xf32>
    %239 = vector.extract_strided_slice %155 {offsets = [0, 0], sizes = [8, 8], strides = [1, 1]} : vector<16x8xf32> to vector<8x8xf32>
    %240 = arith.truncf %239 : vector<8x8xf32> to vector<8x8xbf16>
    %241 = vector.extract_strided_slice %162 {offsets = [0, 0], sizes = [8, 8], strides = [1, 1]} : vector<16x8xf32> to vector<8x8xf32>
    %242 = arith.truncf %241 : vector<8x8xf32> to vector<8x8xbf16>
    %243 = vector.extract_strided_slice %169 {offsets = [0, 0], sizes = [8, 8], strides = [1, 1]} : vector<16x8xf32> to vector<8x8xf32>
    %244 = arith.truncf %243 : vector<8x8xf32> to vector<8x8xbf16>
    %cst_210 = arith.constant dense<0.000000e+00> : vector<8x8xf32>
    %245 = tpu.matmul %240, %242, %cst_210 {dimension_numbers = #tpu.dot_dimension_numbers<[1], [1], [0], [0], [0, 0, 1, 0], [], []>} : vector<8x8xbf16>, vector<8x8xbf16>, vector<8x8xf32> -> vector<8x8xf32>
    %cst_211 = arith.constant 0.353553385 : f32
    %246 = vector.broadcast %cst_211 : f32 to vector<8x8xf32>
    %247 = arith.mulf %245, %246 : vector<8x8xf32>
    %cst_212 = arith.constant dense<0xFF800000> : vector<8xf32>
    %248 = vector.multi_reduction <maximumf>, %247, %cst_212 [1] : vector<8x8xf32> to vector<8xf32>
    %249 = vector.shape_cast %248 : vector<8xf32> to vector<8x1xf32>
    %250 = vector.broadcast %249 : vector<8x1xf32> to vector<8x8xf32>
    %251 = arith.subf %247, %250 : vector<8x8xf32>
    %252 = math.exp %251 : vector<8x8xf32>
    %cst_213 = arith.constant dense<0.000000e+00> : vector<8xf32>
    %253 = vector.multi_reduction <add>, %252, %cst_213 [1] : vector<8x8xf32> to vector<8xf32>
    %254 = vector.shape_cast %253 : vector<8xf32> to vector<8x1xf32>
    %255 = tpu.reciprocal %254 {approx = true} : vector<8x1xf32> -> vector<8x1xf32>
    %256 = vector.broadcast %255 : vector<8x1xf32> to vector<8x8xf32>
    %257 = arith.mulf %252, %256 : vector<8x8xf32>
    %258 = arith.truncf %257 : vector<8x8xf32> to vector<8x8xbf16>
    %cst_214 = arith.constant dense<0.000000e+00> : vector<8x8xf32>
    %259 = tpu.matmul %258, %244, %cst_214 {dimension_numbers = #tpu.dot_dimension_numbers<[1], [0], [0], [1], [0, 0, 1, 1], [], []>} : vector<8x8xbf16>, vector<8x8xbf16>, vector<8x8xf32> -> vector<8x8xf32>
    %260 = arith.truncf %259 : vector<8x8xf32> to vector<8x8xbf16>
    %c0_215 = arith.constant 0 : index
    %c1_216 = arith.constant 1 : index
    %c0_217 = arith.constant 0 : index
    %c0_218 = arith.constant 0 : index
    %261 = vector.load %arg9[%c0_215, %c1_216, %c0_217, %c0_218] : memref<2x4x8x32xbf16, #tpu.memory_space<vmem>>, vector<1x1x8x32xbf16>
    %262 = vector.shape_cast %261 : vector<1x1x8x32xbf16> to vector<8x32xbf16>
    %cst_219 = arith.constant dense<0.000000e+00> : vector<8x32xf32>
    %263 = tpu.matmul %260, %262, %cst_219 {dimension_numbers = #tpu.dot_dimension_numbers<[1], [0], [0], [1], [0, 0, 1, 1], [], []>} : vector<8x8xbf16>, vector<8x32xbf16>, vector<8x32xf32> -> vector<8x32xf32>
    %264 = arith.addf %238, %263 : vector<8x32xf32>
    %265 = vector.extract_strided_slice %176 {offsets = [0, 0], sizes = [8, 8], strides = [1, 1]} : vector<16x8xf32> to vector<8x8xf32>
    %266 = arith.truncf %265 : vector<8x8xf32> to vector<8x8xbf16>
    %267 = vector.extract_strided_slice %183 {offsets = [0, 0], sizes = [8, 8], strides = [1, 1]} : vector<16x8xf32> to vector<8x8xf32>
    %268 = arith.truncf %267 : vector<8x8xf32> to vector<8x8xbf16>
    %269 = vector.extract_strided_slice %190 {offsets = [0, 0], sizes = [8, 8], strides = [1, 1]} : vector<16x8xf32> to vector<8x8xf32>
    %270 = arith.truncf %269 : vector<8x8xf32> to vector<8x8xbf16>
    %cst_220 = arith.constant dense<0.000000e+00> : vector<8x8xf32>
    %271 = tpu.matmul %266, %268, %cst_220 {dimension_numbers = #tpu.dot_dimension_numbers<[1], [1], [0], [0], [0, 0, 1, 0], [], []>} : vector<8x8xbf16>, vector<8x8xbf16>, vector<8x8xf32> -> vector<8x8xf32>
    %cst_221 = arith.constant 0.353553385 : f32
    %272 = vector.broadcast %cst_221 : f32 to vector<8x8xf32>
    %273 = arith.mulf %271, %272 : vector<8x8xf32>
    %cst_222 = arith.constant dense<0xFF800000> : vector<8xf32>
    %274 = vector.multi_reduction <maximumf>, %273, %cst_222 [1] : vector<8x8xf32> to vector<8xf32>
    %275 = vector.shape_cast %274 : vector<8xf32> to vector<8x1xf32>
    %276 = vector.broadcast %275 : vector<8x1xf32> to vector<8x8xf32>
    %277 = arith.subf %273, %276 : vector<8x8xf32>
    %278 = math.exp %277 : vector<8x8xf32>
    %cst_223 = arith.constant dense<0.000000e+00> : vector<8xf32>
    %279 = vector.multi_reduction <add>, %278, %cst_223 [1] : vector<8x8xf32> to vector<8xf32>
    %280 = vector.shape_cast %279 : vector<8xf32> to vector<8x1xf32>
    %281 = tpu.reciprocal %280 {approx = true} : vector<8x1xf32> -> vector<8x1xf32>
    %282 = vector.broadcast %281 : vector<8x1xf32> to vector<8x8xf32>
    %283 = arith.mulf %278, %282 : vector<8x8xf32>
    %284 = arith.truncf %283 : vector<8x8xf32> to vector<8x8xbf16>
    %cst_224 = arith.constant dense<0.000000e+00> : vector<8x8xf32>
    %285 = tpu.matmul %284, %270, %cst_224 {dimension_numbers = #tpu.dot_dimension_numbers<[1], [0], [0], [1], [0, 0, 1, 1], [], []>} : vector<8x8xbf16>, vector<8x8xbf16>, vector<8x8xf32> -> vector<8x8xf32>
    %286 = arith.truncf %285 : vector<8x8xf32> to vector<8x8xbf16>
    %c0_225 = arith.constant 0 : index
    %c2_226 = arith.constant 2 : index
    %c0_227 = arith.constant 0 : index
    %c0_228 = arith.constant 0 : index
    %287 = vector.load %arg9[%c0_225, %c2_226, %c0_227, %c0_228] : memref<2x4x8x32xbf16, #tpu.memory_space<vmem>>, vector<1x1x8x32xbf16>
    %288 = vector.shape_cast %287 : vector<1x1x8x32xbf16> to vector<8x32xbf16>
    %cst_229 = arith.constant dense<0.000000e+00> : vector<8x32xf32>
    %289 = tpu.matmul %286, %288, %cst_229 {dimension_numbers = #tpu.dot_dimension_numbers<[1], [0], [0], [1], [0, 0, 1, 1], [], []>} : vector<8x8xbf16>, vector<8x32xbf16>, vector<8x32xf32> -> vector<8x32xf32>
    %290 = arith.addf %264, %289 : vector<8x32xf32>
    %291 = vector.extract_strided_slice %197 {offsets = [0, 0], sizes = [8, 8], strides = [1, 1]} : vector<16x8xf32> to vector<8x8xf32>
    %292 = arith.truncf %291 : vector<8x8xf32> to vector<8x8xbf16>
    %293 = vector.extract_strided_slice %204 {offsets = [0, 0], sizes = [8, 8], strides = [1, 1]} : vector<16x8xf32> to vector<8x8xf32>
    %294 = arith.truncf %293 : vector<8x8xf32> to vector<8x8xbf16>
    %295 = vector.extract_strided_slice %211 {offsets = [0, 0], sizes = [8, 8], strides = [1, 1]} : vector<16x8xf32> to vector<8x8xf32>
    %296 = arith.truncf %295 : vector<8x8xf32> to vector<8x8xbf16>
    %cst_230 = arith.constant dense<0.000000e+00> : vector<8x8xf32>
    %297 = tpu.matmul %292, %294, %cst_230 {dimension_numbers = #tpu.dot_dimension_numbers<[1], [1], [0], [0], [0, 0, 1, 0], [], []>} : vector<8x8xbf16>, vector<8x8xbf16>, vector<8x8xf32> -> vector<8x8xf32>
    %cst_231 = arith.constant 0.353553385 : f32
    %298 = vector.broadcast %cst_231 : f32 to vector<8x8xf32>
    %299 = arith.mulf %297, %298 : vector<8x8xf32>
    %cst_232 = arith.constant dense<0xFF800000> : vector<8xf32>
    %300 = vector.multi_reduction <maximumf>, %299, %cst_232 [1] : vector<8x8xf32> to vector<8xf32>
    %301 = vector.shape_cast %300 : vector<8xf32> to vector<8x1xf32>
    %302 = vector.broadcast %301 : vector<8x1xf32> to vector<8x8xf32>
    %303 = arith.subf %299, %302 : vector<8x8xf32>
    %304 = math.exp %303 : vector<8x8xf32>
    %cst_233 = arith.constant dense<0.000000e+00> : vector<8xf32>
    %305 = vector.multi_reduction <add>, %304, %cst_233 [1] : vector<8x8xf32> to vector<8xf32>
    %306 = vector.shape_cast %305 : vector<8xf32> to vector<8x1xf32>
    %307 = tpu.reciprocal %306 {approx = true} : vector<8x1xf32> -> vector<8x1xf32>
    %308 = vector.broadcast %307 : vector<8x1xf32> to vector<8x8xf32>
    %309 = arith.mulf %304, %308 : vector<8x8xf32>
    %310 = arith.truncf %309 : vector<8x8xf32> to vector<8x8xbf16>
    %cst_234 = arith.constant dense<0.000000e+00> : vector<8x8xf32>
    %311 = tpu.matmul %310, %296, %cst_234 {dimension_numbers = #tpu.dot_dimension_numbers<[1], [0], [0], [1], [0, 0, 1, 1], [], []>} : vector<8x8xbf16>, vector<8x8xbf16>, vector<8x8xf32> -> vector<8x8xf32>
    %312 = arith.truncf %311 : vector<8x8xf32> to vector<8x8xbf16>
    %c0_235 = arith.constant 0 : index
    %c3_236 = arith.constant 3 : index
    %c0_237 = arith.constant 0 : index
    %c0_238 = arith.constant 0 : index
    %313 = vector.load %arg9[%c0_235, %c3_236, %c0_237, %c0_238] : memref<2x4x8x32xbf16, #tpu.memory_space<vmem>>, vector<1x1x8x32xbf16>
    %314 = vector.shape_cast %313 : vector<1x1x8x32xbf16> to vector<8x32xbf16>
    %cst_239 = arith.constant dense<0.000000e+00> : vector<8x32xf32>
    %315 = tpu.matmul %312, %314, %cst_239 {dimension_numbers = #tpu.dot_dimension_numbers<[1], [0], [0], [1], [0, 0, 1, 1], [], []>} : vector<8x8xbf16>, vector<8x32xbf16>, vector<8x32xf32> -> vector<8x32xf32>
    %316 = arith.addf %290, %315 : vector<8x32xf32>
    %cst_240 = arith.constant 0.000000e+00 : f32
    %317 = vector.broadcast %cst_240 : f32 to vector<8x32xf32>
    %318 = vector.extract_strided_slice %134 {offsets = [8, 0], sizes = [8, 8], strides = [1, 1]} : vector<16x8xf32> to vector<8x8xf32>
    %319 = arith.truncf %318 : vector<8x8xf32> to vector<8x8xbf16>
    %320 = vector.extract_strided_slice %141 {offsets = [8, 0], sizes = [8, 8], strides = [1, 1]} : vector<16x8xf32> to vector<8x8xf32>
    %321 = arith.truncf %320 : vector<8x8xf32> to vector<8x8xbf16>
    %322 = vector.extract_strided_slice %148 {offsets = [8, 0], sizes = [8, 8], strides = [1, 1]} : vector<16x8xf32> to vector<8x8xf32>
    %323 = arith.truncf %322 : vector<8x8xf32> to vector<8x8xbf16>
    %cst_241 = arith.constant dense<0.000000e+00> : vector<8x8xf32>
    %324 = tpu.matmul %319, %321, %cst_241 {dimension_numbers = #tpu.dot_dimension_numbers<[1], [1], [0], [0], [0, 0, 1, 0], [], []>} : vector<8x8xbf16>, vector<8x8xbf16>, vector<8x8xf32> -> vector<8x8xf32>
    %cst_242 = arith.constant 0.353553385 : f32
    %325 = vector.broadcast %cst_242 : f32 to vector<8x8xf32>
    %326 = arith.mulf %324, %325 : vector<8x8xf32>
    %cst_243 = arith.constant dense<0xFF800000> : vector<8xf32>
    %327 = vector.multi_reduction <maximumf>, %326, %cst_243 [1] : vector<8x8xf32> to vector<8xf32>
    %328 = vector.shape_cast %327 : vector<8xf32> to vector<8x1xf32>
    %329 = vector.broadcast %328 : vector<8x1xf32> to vector<8x8xf32>
    %330 = arith.subf %326, %329 : vector<8x8xf32>
    %331 = math.exp %330 : vector<8x8xf32>
    %cst_244 = arith.constant dense<0.000000e+00> : vector<8xf32>
    %332 = vector.multi_reduction <add>, %331, %cst_244 [1] : vector<8x8xf32> to vector<8xf32>
    %333 = vector.shape_cast %332 : vector<8xf32> to vector<8x1xf32>
    %334 = tpu.reciprocal %333 {approx = true} : vector<8x1xf32> -> vector<8x1xf32>
    %335 = vector.broadcast %334 : vector<8x1xf32> to vector<8x8xf32>
    %336 = arith.mulf %331, %335 : vector<8x8xf32>
    %337 = arith.truncf %336 : vector<8x8xf32> to vector<8x8xbf16>
    %cst_245 = arith.constant dense<0.000000e+00> : vector<8x8xf32>
    %338 = tpu.matmul %337, %323, %cst_245 {dimension_numbers = #tpu.dot_dimension_numbers<[1], [0], [0], [1], [0, 0, 1, 1], [], []>} : vector<8x8xbf16>, vector<8x8xbf16>, vector<8x8xf32> -> vector<8x8xf32>
    %339 = arith.truncf %338 : vector<8x8xf32> to vector<8x8xbf16>
    %c0_246 = arith.constant 0 : index
    %c0_247 = arith.constant 0 : index
    %c0_248 = arith.constant 0 : index
    %c0_249 = arith.constant 0 : index
    %340 = vector.load %arg9[%c0_246, %c0_247, %c0_248, %c0_249] : memref<2x4x8x32xbf16, #tpu.memory_space<vmem>>, vector<1x1x8x32xbf16>
    %341 = vector.shape_cast %340 : vector<1x1x8x32xbf16> to vector<8x32xbf16>
    %cst_250 = arith.constant dense<0.000000e+00> : vector<8x32xf32>
    %342 = tpu.matmul %339, %341, %cst_250 {dimension_numbers = #tpu.dot_dimension_numbers<[1], [0], [0], [1], [0, 0, 1, 1], [], []>} : vector<8x8xbf16>, vector<8x32xbf16>, vector<8x32xf32> -> vector<8x32xf32>
    %343 = arith.addf %317, %342 : vector<8x32xf32>
    %344 = vector.extract_strided_slice %155 {offsets = [8, 0], sizes = [8, 8], strides = [1, 1]} : vector<16x8xf32> to vector<8x8xf32>
    %345 = arith.truncf %344 : vector<8x8xf32> to vector<8x8xbf16>
    %346 = vector.extract_strided_slice %162 {offsets = [8, 0], sizes = [8, 8], strides = [1, 1]} : vector<16x8xf32> to vector<8x8xf32>
    %347 = arith.truncf %346 : vector<8x8xf32> to vector<8x8xbf16>
    %348 = vector.extract_strided_slice %169 {offsets = [8, 0], sizes = [8, 8], strides = [1, 1]} : vector<16x8xf32> to vector<8x8xf32>
    %349 = arith.truncf %348 : vector<8x8xf32> to vector<8x8xbf16>
    %cst_251 = arith.constant dense<0.000000e+00> : vector<8x8xf32>
    %350 = tpu.matmul %345, %347, %cst_251 {dimension_numbers = #tpu.dot_dimension_numbers<[1], [1], [0], [0], [0, 0, 1, 0], [], []>} : vector<8x8xbf16>, vector<8x8xbf16>, vector<8x8xf32> -> vector<8x8xf32>
    %cst_252 = arith.constant 0.353553385 : f32
    %351 = vector.broadcast %cst_252 : f32 to vector<8x8xf32>
    %352 = arith.mulf %350, %351 : vector<8x8xf32>
    %cst_253 = arith.constant dense<0xFF800000> : vector<8xf32>
    %353 = vector.multi_reduction <maximumf>, %352, %cst_253 [1] : vector<8x8xf32> to vector<8xf32>
    %354 = vector.shape_cast %353 : vector<8xf32> to vector<8x1xf32>
    %355 = vector.broadcast %354 : vector<8x1xf32> to vector<8x8xf32>
    %356 = arith.subf %352, %355 : vector<8x8xf32>
    %357 = math.exp %356 : vector<8x8xf32>
    %cst_254 = arith.constant dense<0.000000e+00> : vector<8xf32>
    %358 = vector.multi_reduction <add>, %357, %cst_254 [1] : vector<8x8xf32> to vector<8xf32>
    %359 = vector.shape_cast %358 : vector<8xf32> to vector<8x1xf32>
    %360 = tpu.reciprocal %359 {approx = true} : vector<8x1xf32> -> vector<8x1xf32>
    %361 = vector.broadcast %360 : vector<8x1xf32> to vector<8x8xf32>
    %362 = arith.mulf %357, %361 : vector<8x8xf32>
    %363 = arith.truncf %362 : vector<8x8xf32> to vector<8x8xbf16>
    %cst_255 = arith.constant dense<0.000000e+00> : vector<8x8xf32>
    %364 = tpu.matmul %363, %349, %cst_255 {dimension_numbers = #tpu.dot_dimension_numbers<[1], [0], [0], [1], [0, 0, 1, 1], [], []>} : vector<8x8xbf16>, vector<8x8xbf16>, vector<8x8xf32> -> vector<8x8xf32>
    %365 = arith.truncf %364 : vector<8x8xf32> to vector<8x8xbf16>
    %c0_256 = arith.constant 0 : index
    %c1_257 = arith.constant 1 : index
    %c0_258 = arith.constant 0 : index
    %c0_259 = arith.constant 0 : index
    %366 = vector.load %arg9[%c0_256, %c1_257, %c0_258, %c0_259] : memref<2x4x8x32xbf16, #tpu.memory_space<vmem>>, vector<1x1x8x32xbf16>
    %367 = vector.shape_cast %366 : vector<1x1x8x32xbf16> to vector<8x32xbf16>
    %cst_260 = arith.constant dense<0.000000e+00> : vector<8x32xf32>
    %368 = tpu.matmul %365, %367, %cst_260 {dimension_numbers = #tpu.dot_dimension_numbers<[1], [0], [0], [1], [0, 0, 1, 1], [], []>} : vector<8x8xbf16>, vector<8x32xbf16>, vector<8x32xf32> -> vector<8x32xf32>
    %369 = arith.addf %343, %368 : vector<8x32xf32>
    %370 = vector.extract_strided_slice %176 {offsets = [8, 0], sizes = [8, 8], strides = [1, 1]} : vector<16x8xf32> to vector<8x8xf32>
    %371 = arith.truncf %370 : vector<8x8xf32> to vector<8x8xbf16>
    %372 = vector.extract_strided_slice %183 {offsets = [8, 0], sizes = [8, 8], strides = [1, 1]} : vector<16x8xf32> to vector<8x8xf32>
    %373 = arith.truncf %372 : vector<8x8xf32> to vector<8x8xbf16>
    %374 = vector.extract_strided_slice %190 {offsets = [8, 0], sizes = [8, 8], strides = [1, 1]} : vector<16x8xf32> to vector<8x8xf32>
    %375 = arith.truncf %374 : vector<8x8xf32> to vector<8x8xbf16>
    %cst_261 = arith.constant dense<0.000000e+00> : vector<8x8xf32>
    %376 = tpu.matmul %371, %373, %cst_261 {dimension_numbers = #tpu.dot_dimension_numbers<[1], [1], [0], [0], [0, 0, 1, 0], [], []>} : vector<8x8xbf16>, vector<8x8xbf16>, vector<8x8xf32> -> vector<8x8xf32>
    %cst_262 = arith.constant 0.353553385 : f32
    %377 = vector.broadcast %cst_262 : f32 to vector<8x8xf32>
    %378 = arith.mulf %376, %377 : vector<8x8xf32>
    %cst_263 = arith.constant dense<0xFF800000> : vector<8xf32>
    %379 = vector.multi_reduction <maximumf>, %378, %cst_263 [1] : vector<8x8xf32> to vector<8xf32>
    %380 = vector.shape_cast %379 : vector<8xf32> to vector<8x1xf32>
    %381 = vector.broadcast %380 : vector<8x1xf32> to vector<8x8xf32>
    %382 = arith.subf %378, %381 : vector<8x8xf32>
    %383 = math.exp %382 : vector<8x8xf32>
    %cst_264 = arith.constant dense<0.000000e+00> : vector<8xf32>
    %384 = vector.multi_reduction <add>, %383, %cst_264 [1] : vector<8x8xf32> to vector<8xf32>
    %385 = vector.shape_cast %384 : vector<8xf32> to vector<8x1xf32>
    %386 = tpu.reciprocal %385 {approx = true} : vector<8x1xf32> -> vector<8x1xf32>
    %387 = vector.broadcast %386 : vector<8x1xf32> to vector<8x8xf32>
    %388 = arith.mulf %383, %387 : vector<8x8xf32>
    %389 = arith.truncf %388 : vector<8x8xf32> to vector<8x8xbf16>
    %cst_265 = arith.constant dense<0.000000e+00> : vector<8x8xf32>
    %390 = tpu.matmul %389, %375, %cst_265 {dimension_numbers = #tpu.dot_dimension_numbers<[1], [0], [0], [1], [0, 0, 1, 1], [], []>} : vector<8x8xbf16>, vector<8x8xbf16>, vector<8x8xf32> -> vector<8x8xf32>
    %391 = arith.truncf %390 : vector<8x8xf32> to vector<8x8xbf16>
    %c0_266 = arith.constant 0 : index
    %c2_267 = arith.constant 2 : index
    %c0_268 = arith.constant 0 : index
    %c0_269 = arith.constant 0 : index
    %392 = vector.load %arg9[%c0_266, %c2_267, %c0_268, %c0_269] : memref<2x4x8x32xbf16, #tpu.memory_space<vmem>>, vector<1x1x8x32xbf16>
    %393 = vector.shape_cast %392 : vector<1x1x8x32xbf16> to vector<8x32xbf16>
    %cst_270 = arith.constant dense<0.000000e+00> : vector<8x32xf32>
    %394 = tpu.matmul %391, %393, %cst_270 {dimension_numbers = #tpu.dot_dimension_numbers<[1], [0], [0], [1], [0, 0, 1, 1], [], []>} : vector<8x8xbf16>, vector<8x32xbf16>, vector<8x32xf32> -> vector<8x32xf32>
    %395 = arith.addf %369, %394 : vector<8x32xf32>
    %396 = vector.extract_strided_slice %197 {offsets = [8, 0], sizes = [8, 8], strides = [1, 1]} : vector<16x8xf32> to vector<8x8xf32>
    %397 = arith.truncf %396 : vector<8x8xf32> to vector<8x8xbf16>
    %398 = vector.extract_strided_slice %204 {offsets = [8, 0], sizes = [8, 8], strides = [1, 1]} : vector<16x8xf32> to vector<8x8xf32>
    %399 = arith.truncf %398 : vector<8x8xf32> to vector<8x8xbf16>
    %400 = vector.extract_strided_slice %211 {offsets = [8, 0], sizes = [8, 8], strides = [1, 1]} : vector<16x8xf32> to vector<8x8xf32>
    %401 = arith.truncf %400 : vector<8x8xf32> to vector<8x8xbf16>
    %cst_271 = arith.constant dense<0.000000e+00> : vector<8x8xf32>
    %402 = tpu.matmul %397, %399, %cst_271 {dimension_numbers = #tpu.dot_dimension_numbers<[1], [1], [0], [0], [0, 0, 1, 0], [], []>} : vector<8x8xbf16>, vector<8x8xbf16>, vector<8x8xf32> -> vector<8x8xf32>
    %cst_272 = arith.constant 0.353553385 : f32
    %403 = vector.broadcast %cst_272 : f32 to vector<8x8xf32>
    %404 = arith.mulf %402, %403 : vector<8x8xf32>
    %cst_273 = arith.constant dense<0xFF800000> : vector<8xf32>
    %405 = vector.multi_reduction <maximumf>, %404, %cst_273 [1] : vector<8x8xf32> to vector<8xf32>
    %406 = vector.shape_cast %405 : vector<8xf32> to vector<8x1xf32>
    %407 = vector.broadcast %406 : vector<8x1xf32> to vector<8x8xf32>
    %408 = arith.subf %404, %407 : vector<8x8xf32>
    %409 = math.exp %408 : vector<8x8xf32>
    %cst_274 = arith.constant dense<0.000000e+00> : vector<8xf32>
    %410 = vector.multi_reduction <add>, %409, %cst_274 [1] : vector<8x8xf32> to vector<8xf32>
    %411 = vector.shape_cast %410 : vector<8xf32> to vector<8x1xf32>
    %412 = tpu.reciprocal %411 {approx = true} : vector<8x1xf32> -> vector<8x1xf32>
    %413 = vector.broadcast %412 : vector<8x1xf32> to vector<8x8xf32>
    %414 = arith.mulf %409, %413 : vector<8x8xf32>
    %415 = arith.truncf %414 : vector<8x8xf32> to vector<8x8xbf16>
    %cst_275 = arith.constant dense<0.000000e+00> : vector<8x8xf32>
    %416 = tpu.matmul %415, %401, %cst_275 {dimension_numbers = #tpu.dot_dimension_numbers<[1], [0], [0], [1], [0, 0, 1, 1], [], []>} : vector<8x8xbf16>, vector<8x8xbf16>, vector<8x8xf32> -> vector<8x8xf32>
    %417 = arith.truncf %416 : vector<8x8xf32> to vector<8x8xbf16>
    %c0_276 = arith.constant 0 : index
    %c3_277 = arith.constant 3 : index
    %c0_278 = arith.constant 0 : index
    %c0_279 = arith.constant 0 : index
    %418 = vector.load %arg9[%c0_276, %c3_277, %c0_278, %c0_279] : memref<2x4x8x32xbf16, #tpu.memory_space<vmem>>, vector<1x1x8x32xbf16>
    %419 = vector.shape_cast %418 : vector<1x1x8x32xbf16> to vector<8x32xbf16>
    %cst_280 = arith.constant dense<0.000000e+00> : vector<8x32xf32>
    %420 = tpu.matmul %417, %419, %cst_280 {dimension_numbers = #tpu.dot_dimension_numbers<[1], [0], [0], [1], [0, 0, 1, 1], [], []>} : vector<8x8xbf16>, vector<8x32xbf16>, vector<8x32xf32> -> vector<8x32xf32>
    %421 = arith.addf %395, %420 : vector<8x32xf32>
    %422 = tpu.concatenate %316, %421 in 0 : vector<8x32xf32>, vector<8x32xf32> -> vector<16x32xf32>
    %c0_281 = arith.constant 0 : index
    %c0_282 = arith.constant 0 : index
    %c0_283 = arith.constant 0 : index
    %423 = vector.load %arg10[%c0_281, %c0_282, %c0_283] : memref<2x1x32xf32, #tpu.memory_space<vmem>>, vector<1x1x32xf32>
    %424 = vector.shape_cast %423 : vector<1x1x32xf32> to vector<1x32xf32>
    %425 = vector.broadcast %424 : vector<1x32xf32> to vector<16x32xf32>
    %426 = arith.addf %422, %425 : vector<16x32xf32>
    %427 = arith.addf %426, %126 : vector<16x32xf32>
    %cst_284 = arith.constant dense<0.000000e+00> : vector<16xf32>
    %428 = vector.multi_reduction <add>, %427, %cst_284 [1] : vector<16x32xf32> to vector<16xf32>
    %429 = vector.shape_cast %428 : vector<16xf32> to vector<16x1xf32>
    %cst_285 = arith.constant 3.200000e+01 : f32
    %430 = vector.broadcast %cst_285 : f32 to vector<16x1xf32>
    %431 = arith.divf %429, %430 : vector<16x1xf32>
    %432 = vector.broadcast %431 : vector<16x1xf32> to vector<16x32xf32>
    %433 = arith.subf %427, %432 : vector<16x32xf32>
    %434 = arith.mulf %433, %433 : vector<16x32xf32>
    %cst_286 = arith.constant dense<0.000000e+00> : vector<16xf32>
    %435 = vector.multi_reduction <add>, %434, %cst_286 [1] : vector<16x32xf32> to vector<16xf32>
    %436 = vector.shape_cast %435 : vector<16xf32> to vector<16x1xf32>
    %cst_287 = arith.constant 3.200000e+01 : f32
    %437 = vector.broadcast %cst_287 : f32 to vector<16x1xf32>
    %438 = arith.divf %436, %437 : vector<16x1xf32>
    %439 = vector.broadcast %431 : vector<16x1xf32> to vector<16x32xf32>
    %440 = arith.subf %427, %439 : vector<16x32xf32>
    %cst_288 = arith.constant 9.99999974E-6 : f32
    %441 = vector.broadcast %cst_288 : f32 to vector<16x1xf32>
    %442 = arith.addf %438, %441 : vector<16x1xf32>
    %443 = math.rsqrt %442 : vector<16x1xf32>
    %444 = vector.broadcast %443 : vector<16x1xf32> to vector<16x32xf32>
    %445 = arith.mulf %440, %444 : vector<16x32xf32>
    %c0_289 = arith.constant 0 : index
    %c0_290 = arith.constant 0 : index
    %c0_291 = arith.constant 0 : index
    %446 = vector.load %arg11[%c0_289, %c0_290, %c0_291] : memref<2x1x32xf32, #tpu.memory_space<vmem>>, vector<1x1x32xf32>
    %447 = vector.shape_cast %446 : vector<1x1x32xf32> to vector<1x32xf32>
    %448 = vector.broadcast %447 : vector<1x32xf32> to vector<16x32xf32>
    %449 = arith.mulf %445, %448 : vector<16x32xf32>
    %c0_292 = arith.constant 0 : index
    %c0_293 = arith.constant 0 : index
    %c0_294 = arith.constant 0 : index
    %450 = vector.load %arg12[%c0_292, %c0_293, %c0_294] : memref<2x1x32xf32, #tpu.memory_space<vmem>>, vector<1x1x32xf32>
    %451 = vector.shape_cast %450 : vector<1x1x32xf32> to vector<1x32xf32>
    %452 = vector.broadcast %451 : vector<1x32xf32> to vector<16x32xf32>
    %453 = arith.addf %449, %452 : vector<16x32xf32>
    %454 = arith.truncf %453 : vector<16x32xf32> to vector<16x32xbf16>
    %c0_295 = arith.constant 0 : index
    %c0_296 = arith.constant 0 : index
    %c0_297 = arith.constant 0 : index
    %455 = vector.load %arg13[%c0_295, %c0_296, %c0_297] : memref<2x32x64xbf16, #tpu.memory_space<vmem>>, vector<1x32x64xbf16>
    %456 = vector.shape_cast %455 : vector<1x32x64xbf16> to vector<32x64xbf16>
    %cst_298 = arith.constant dense<0.000000e+00> : vector<16x64xf32>
    %457 = tpu.matmul %454, %456, %cst_298 {dimension_numbers = #tpu.dot_dimension_numbers<[1], [0], [0], [1], [0, 0, 1, 1], [], []>} : vector<16x32xbf16>, vector<32x64xbf16>, vector<16x64xf32> -> vector<16x64xf32>
    %c0_299 = arith.constant 0 : index
    %c0_300 = arith.constant 0 : index
    %c0_301 = arith.constant 0 : index
    %458 = vector.load %arg14[%c0_299, %c0_300, %c0_301] : memref<2x1x64xf32, #tpu.memory_space<vmem>>, vector<1x1x64xf32>
    %459 = vector.shape_cast %458 : vector<1x1x64xf32> to vector<1x64xf32>
    %460 = vector.broadcast %459 : vector<1x64xf32> to vector<16x64xf32>
    %461 = arith.addf %457, %460 : vector<16x64xf32>
    %cst_302 = arith.constant 5.000000e-01 : f32
    %462 = vector.broadcast %cst_302 : f32 to vector<16x64xf32>
    %463 = arith.mulf %462, %461 : vector<16x64xf32>
    %cst_303 = arith.constant 4.471500e-02 : f32
    %464 = vector.broadcast %cst_303 : f32 to vector<16x64xf32>
    %465 = arith.mulf %464, %461 : vector<16x64xf32>
    %466 = arith.mulf %465, %461 : vector<16x64xf32>
    %467 = arith.mulf %466, %461 : vector<16x64xf32>
    %468 = arith.addf %461, %467 : vector<16x64xf32>
    %cst_304 = arith.constant 0.797884583 : f32
    %469 = vector.broadcast %cst_304 : f32 to vector<16x64xf32>
    %470 = arith.mulf %469, %468 : vector<16x64xf32>
    %471 = math.tanh %470 : vector<16x64xf32>
    %cst_305 = arith.constant 1.000000e+00 : f32
    %472 = vector.broadcast %cst_305 : f32 to vector<16x64xf32>
    %473 = arith.addf %472, %471 : vector<16x64xf32>
    %474 = arith.mulf %463, %473 : vector<16x64xf32>
    %475 = arith.truncf %474 : vector<16x64xf32> to vector<16x64xbf16>
    %c0_306 = arith.constant 0 : index
    %c0_307 = arith.constant 0 : index
    %c0_308 = arith.constant 0 : index
    %476 = vector.load %arg15[%c0_306, %c0_307, %c0_308] : memref<2x64x32xbf16, #tpu.memory_space<vmem>>, vector<1x64x32xbf16>
    %477 = vector.shape_cast %476 : vector<1x64x32xbf16> to vector<64x32xbf16>
    %cst_309 = arith.constant dense<0.000000e+00> : vector<16x32xf32>
    %478 = tpu.matmul %475, %477, %cst_309 {dimension_numbers = #tpu.dot_dimension_numbers<[1], [0], [0], [1], [0, 0, 1, 1], [], []>} : vector<16x64xbf16>, vector<64x32xbf16>, vector<16x32xf32> -> vector<16x32xf32>
    %c0_310 = arith.constant 0 : index
    %c0_311 = arith.constant 0 : index
    %c0_312 = arith.constant 0 : index
    %479 = vector.load %arg16[%c0_310, %c0_311, %c0_312] : memref<2x1x32xf32, #tpu.memory_space<vmem>>, vector<1x1x32xf32>
    %480 = vector.shape_cast %479 : vector<1x1x32xf32> to vector<1x32xf32>
    %481 = vector.broadcast %480 : vector<1x32xf32> to vector<16x32xf32>
    %482 = arith.addf %478, %481 : vector<16x32xf32>
    %483 = arith.addf %482, %453 : vector<16x32xf32>
    %cst_313 = arith.constant dense<0.000000e+00> : vector<16xf32>
    %484 = vector.multi_reduction <add>, %483, %cst_313 [1] : vector<16x32xf32> to vector<16xf32>
    %485 = vector.shape_cast %484 : vector<16xf32> to vector<16x1xf32>
    %cst_314 = arith.constant 3.200000e+01 : f32
    %486 = vector.broadcast %cst_314 : f32 to vector<16x1xf32>
    %487 = arith.divf %485, %486 : vector<16x1xf32>
    %488 = vector.broadcast %487 : vector<16x1xf32> to vector<16x32xf32>
    %489 = arith.subf %483, %488 : vector<16x32xf32>
    %490 = arith.mulf %489, %489 : vector<16x32xf32>
    %cst_315 = arith.constant dense<0.000000e+00> : vector<16xf32>
    %491 = vector.multi_reduction <add>, %490, %cst_315 [1] : vector<16x32xf32> to vector<16xf32>
    %492 = vector.shape_cast %491 : vector<16xf32> to vector<16x1xf32>
    %cst_316 = arith.constant 3.200000e+01 : f32
    %493 = vector.broadcast %cst_316 : f32 to vector<16x1xf32>
    %494 = arith.divf %492, %493 : vector<16x1xf32>
    %495 = vector.broadcast %487 : vector<16x1xf32> to vector<16x32xf32>
    %496 = arith.subf %483, %495 : vector<16x32xf32>
    %cst_317 = arith.constant 9.99999974E-6 : f32
    %497 = vector.broadcast %cst_317 : f32 to vector<16x1xf32>
    %498 = arith.addf %494, %497 : vector<16x1xf32>
    %499 = math.rsqrt %498 : vector<16x1xf32>
    %500 = vector.broadcast %499 : vector<16x1xf32> to vector<16x32xf32>
    %501 = arith.mulf %496, %500 : vector<16x32xf32>
    %c0_318 = arith.constant 0 : index
    %c0_319 = arith.constant 0 : index
    %c0_320 = arith.constant 0 : index
    %502 = vector.load %arg17[%c0_318, %c0_319, %c0_320] : memref<2x1x32xf32, #tpu.memory_space<vmem>>, vector<1x1x32xf32>
    %503 = vector.shape_cast %502 : vector<1x1x32xf32> to vector<1x32xf32>
    %504 = vector.broadcast %503 : vector<1x32xf32> to vector<16x32xf32>
    %505 = arith.mulf %501, %504 : vector<16x32xf32>
    %c0_321 = arith.constant 0 : index
    %c0_322 = arith.constant 0 : index
    %c0_323 = arith.constant 0 : index
    %506 = vector.load %arg18[%c0_321, %c0_322, %c0_323] : memref<2x1x32xf32, #tpu.memory_space<vmem>>, vector<1x1x32xf32>
    %507 = vector.shape_cast %506 : vector<1x1x32xf32> to vector<1x32xf32>
    %508 = vector.broadcast %507 : vector<1x32xf32> to vector<16x32xf32>
    %509 = arith.addf %505, %508 : vector<16x32xf32>
    %510 = arith.truncf %509 : vector<16x32xf32> to vector<16x32xbf16>
    %c1_324 = arith.constant 1 : index
    %c0_325 = arith.constant 0 : index
    %c0_326 = arith.constant 0 : index
    %c0_327 = arith.constant 0 : index
    %c0_328 = arith.constant 0 : index
    %511 = vector.load %arg7[%c1_324, %c0_325, %c0_326, %c0_327, %c0_328] : memref<2x3x4x32x8xbf16, #tpu.memory_space<vmem>>, vector<1x1x1x32x8xbf16>
    %512 = vector.shape_cast %511 : vector<1x1x1x32x8xbf16> to vector<32x8xbf16>
    %cst_329 = arith.constant dense<0.000000e+00> : vector<16x8xf32>
    %513 = tpu.matmul %510, %512, %cst_329 {dimension_numbers = #tpu.dot_dimension_numbers<[1], [0], [0], [1], [0, 0, 1, 1], [], []>} : vector<16x32xbf16>, vector<32x8xbf16>, vector<16x8xf32> -> vector<16x8xf32>
    %c1_330 = arith.constant 1 : index
    %c0_331 = arith.constant 0 : index
    %c0_332 = arith.constant 0 : index
    %c0_333 = arith.constant 0 : index
    %c0_334 = arith.constant 0 : index
    %514 = vector.load %arg8[%c1_330, %c0_331, %c0_332, %c0_333, %c0_334] : memref<2x3x4x1x8xf32, #tpu.memory_space<vmem>>, vector<1x1x1x1x8xf32>
    %515 = vector.shape_cast %514 : vector<1x1x1x1x8xf32> to vector<1x8xf32>
    %516 = vector.broadcast %515 : vector<1x8xf32> to vector<16x8xf32>
    %517 = arith.addf %513, %516 : vector<16x8xf32>
    %c1_335 = arith.constant 1 : index
    %c1_336 = arith.constant 1 : index
    %c0_337 = arith.constant 0 : index
    %c0_338 = arith.constant 0 : index
    %c0_339 = arith.constant 0 : index
    %518 = vector.load %arg7[%c1_335, %c1_336, %c0_337, %c0_338, %c0_339] : memref<2x3x4x32x8xbf16, #tpu.memory_space<vmem>>, vector<1x1x1x32x8xbf16>
    %519 = vector.shape_cast %518 : vector<1x1x1x32x8xbf16> to vector<32x8xbf16>
    %cst_340 = arith.constant dense<0.000000e+00> : vector<16x8xf32>
    %520 = tpu.matmul %510, %519, %cst_340 {dimension_numbers = #tpu.dot_dimension_numbers<[1], [0], [0], [1], [0, 0, 1, 1], [], []>} : vector<16x32xbf16>, vector<32x8xbf16>, vector<16x8xf32> -> vector<16x8xf32>
    %c1_341 = arith.constant 1 : index
    %c1_342 = arith.constant 1 : index
    %c0_343 = arith.constant 0 : index
    %c0_344 = arith.constant 0 : index
    %c0_345 = arith.constant 0 : index
    %521 = vector.load %arg8[%c1_341, %c1_342, %c0_343, %c0_344, %c0_345] : memref<2x3x4x1x8xf32, #tpu.memory_space<vmem>>, vector<1x1x1x1x8xf32>
    %522 = vector.shape_cast %521 : vector<1x1x1x1x8xf32> to vector<1x8xf32>
    %523 = vector.broadcast %522 : vector<1x8xf32> to vector<16x8xf32>
    %524 = arith.addf %520, %523 : vector<16x8xf32>
    %c1_346 = arith.constant 1 : index
    %c2_347 = arith.constant 2 : index
    %c0_348 = arith.constant 0 : index
    %c0_349 = arith.constant 0 : index
    %c0_350 = arith.constant 0 : index
    %525 = vector.load %arg7[%c1_346, %c2_347, %c0_348, %c0_349, %c0_350] : memref<2x3x4x32x8xbf16, #tpu.memory_space<vmem>>, vector<1x1x1x32x8xbf16>
    %526 = vector.shape_cast %525 : vector<1x1x1x32x8xbf16> to vector<32x8xbf16>
    %cst_351 = arith.constant dense<0.000000e+00> : vector<16x8xf32>
    %527 = tpu.matmul %510, %526, %cst_351 {dimension_numbers = #tpu.dot_dimension_numbers<[1], [0], [0], [1], [0, 0, 1, 1], [], []>} : vector<16x32xbf16>, vector<32x8xbf16>, vector<16x8xf32> -> vector<16x8xf32>
    %c1_352 = arith.constant 1 : index
    %c2_353 = arith.constant 2 : index
    %c0_354 = arith.constant 0 : index
    %c0_355 = arith.constant 0 : index
    %c0_356 = arith.constant 0 : index
    %528 = vector.load %arg8[%c1_352, %c2_353, %c0_354, %c0_355, %c0_356] : memref<2x3x4x1x8xf32, #tpu.memory_space<vmem>>, vector<1x1x1x1x8xf32>
    %529 = vector.shape_cast %528 : vector<1x1x1x1x8xf32> to vector<1x8xf32>
    %530 = vector.broadcast %529 : vector<1x8xf32> to vector<16x8xf32>
    %531 = arith.addf %527, %530 : vector<16x8xf32>
    %c1_357 = arith.constant 1 : index
    %c0_358 = arith.constant 0 : index
    %c1_359 = arith.constant 1 : index
    %c0_360 = arith.constant 0 : index
    %c0_361 = arith.constant 0 : index
    %532 = vector.load %arg7[%c1_357, %c0_358, %c1_359, %c0_360, %c0_361] : memref<2x3x4x32x8xbf16, #tpu.memory_space<vmem>>, vector<1x1x1x32x8xbf16>
    %533 = vector.shape_cast %532 : vector<1x1x1x32x8xbf16> to vector<32x8xbf16>
    %cst_362 = arith.constant dense<0.000000e+00> : vector<16x8xf32>
    %534 = tpu.matmul %510, %533, %cst_362 {dimension_numbers = #tpu.dot_dimension_numbers<[1], [0], [0], [1], [0, 0, 1, 1], [], []>} : vector<16x32xbf16>, vector<32x8xbf16>, vector<16x8xf32> -> vector<16x8xf32>
    %c1_363 = arith.constant 1 : index
    %c0_364 = arith.constant 0 : index
    %c1_365 = arith.constant 1 : index
    %c0_366 = arith.constant 0 : index
    %c0_367 = arith.constant 0 : index
    %535 = vector.load %arg8[%c1_363, %c0_364, %c1_365, %c0_366, %c0_367] : memref<2x3x4x1x8xf32, #tpu.memory_space<vmem>>, vector<1x1x1x1x8xf32>
    %536 = vector.shape_cast %535 : vector<1x1x1x1x8xf32> to vector<1x8xf32>
    %537 = vector.broadcast %536 : vector<1x8xf32> to vector<16x8xf32>
    %538 = arith.addf %534, %537 : vector<16x8xf32>
    %c1_368 = arith.constant 1 : index
    %c1_369 = arith.constant 1 : index
    %c1_370 = arith.constant 1 : index
    %c0_371 = arith.constant 0 : index
    %c0_372 = arith.constant 0 : index
    %539 = vector.load %arg7[%c1_368, %c1_369, %c1_370, %c0_371, %c0_372] : memref<2x3x4x32x8xbf16, #tpu.memory_space<vmem>>, vector<1x1x1x32x8xbf16>
    %540 = vector.shape_cast %539 : vector<1x1x1x32x8xbf16> to vector<32x8xbf16>
    %cst_373 = arith.constant dense<0.000000e+00> : vector<16x8xf32>
    %541 = tpu.matmul %510, %540, %cst_373 {dimension_numbers = #tpu.dot_dimension_numbers<[1], [0], [0], [1], [0, 0, 1, 1], [], []>} : vector<16x32xbf16>, vector<32x8xbf16>, vector<16x8xf32> -> vector<16x8xf32>
    %c1_374 = arith.constant 1 : index
    %c1_375 = arith.constant 1 : index
    %c1_376 = arith.constant 1 : index
    %c0_377 = arith.constant 0 : index
    %c0_378 = arith.constant 0 : index
    %542 = vector.load %arg8[%c1_374, %c1_375, %c1_376, %c0_377, %c0_378] : memref<2x3x4x1x8xf32, #tpu.memory_space<vmem>>, vector<1x1x1x1x8xf32>
    %543 = vector.shape_cast %542 : vector<1x1x1x1x8xf32> to vector<1x8xf32>
    %544 = vector.broadcast %543 : vector<1x8xf32> to vector<16x8xf32>
    %545 = arith.addf %541, %544 : vector<16x8xf32>
    %c1_379 = arith.constant 1 : index
    %c2_380 = arith.constant 2 : index
    %c1_381 = arith.constant 1 : index
    %c0_382 = arith.constant 0 : index
    %c0_383 = arith.constant 0 : index
    %546 = vector.load %arg7[%c1_379, %c2_380, %c1_381, %c0_382, %c0_383] : memref<2x3x4x32x8xbf16, #tpu.memory_space<vmem>>, vector<1x1x1x32x8xbf16>
    %547 = vector.shape_cast %546 : vector<1x1x1x32x8xbf16> to vector<32x8xbf16>
    %cst_384 = arith.constant dense<0.000000e+00> : vector<16x8xf32>
    %548 = tpu.matmul %510, %547, %cst_384 {dimension_numbers = #tpu.dot_dimension_numbers<[1], [0], [0], [1], [0, 0, 1, 1], [], []>} : vector<16x32xbf16>, vector<32x8xbf16>, vector<16x8xf32> -> vector<16x8xf32>
    %c1_385 = arith.constant 1 : index
    %c2_386 = arith.constant 2 : index
    %c1_387 = arith.constant 1 : index
    %c0_388 = arith.constant 0 : index
    %c0_389 = arith.constant 0 : index
    %549 = vector.load %arg8[%c1_385, %c2_386, %c1_387, %c0_388, %c0_389] : memref<2x3x4x1x8xf32, #tpu.memory_space<vmem>>, vector<1x1x1x1x8xf32>
    %550 = vector.shape_cast %549 : vector<1x1x1x1x8xf32> to vector<1x8xf32>
    %551 = vector.broadcast %550 : vector<1x8xf32> to vector<16x8xf32>
    %552 = arith.addf %548, %551 : vector<16x8xf32>
    %c1_390 = arith.constant 1 : index
    %c0_391 = arith.constant 0 : index
    %c2_392 = arith.constant 2 : index
    %c0_393 = arith.constant 0 : index
    %c0_394 = arith.constant 0 : index
    %553 = vector.load %arg7[%c1_390, %c0_391, %c2_392, %c0_393, %c0_394] : memref<2x3x4x32x8xbf16, #tpu.memory_space<vmem>>, vector<1x1x1x32x8xbf16>
    %554 = vector.shape_cast %553 : vector<1x1x1x32x8xbf16> to vector<32x8xbf16>
    %cst_395 = arith.constant dense<0.000000e+00> : vector<16x8xf32>
    %555 = tpu.matmul %510, %554, %cst_395 {dimension_numbers = #tpu.dot_dimension_numbers<[1], [0], [0], [1], [0, 0, 1, 1], [], []>} : vector<16x32xbf16>, vector<32x8xbf16>, vector<16x8xf32> -> vector<16x8xf32>
    %c1_396 = arith.constant 1 : index
    %c0_397 = arith.constant 0 : index
    %c2_398 = arith.constant 2 : index
    %c0_399 = arith.constant 0 : index
    %c0_400 = arith.constant 0 : index
    %556 = vector.load %arg8[%c1_396, %c0_397, %c2_398, %c0_399, %c0_400] : memref<2x3x4x1x8xf32, #tpu.memory_space<vmem>>, vector<1x1x1x1x8xf32>
    %557 = vector.shape_cast %556 : vector<1x1x1x1x8xf32> to vector<1x8xf32>
    %558 = vector.broadcast %557 : vector<1x8xf32> to vector<16x8xf32>
    %559 = arith.addf %555, %558 : vector<16x8xf32>
    %c1_401 = arith.constant 1 : index
    %c1_402 = arith.constant 1 : index
    %c2_403 = arith.constant 2 : index
    %c0_404 = arith.constant 0 : index
    %c0_405 = arith.constant 0 : index
    %560 = vector.load %arg7[%c1_401, %c1_402, %c2_403, %c0_404, %c0_405] : memref<2x3x4x32x8xbf16, #tpu.memory_space<vmem>>, vector<1x1x1x32x8xbf16>
    %561 = vector.shape_cast %560 : vector<1x1x1x32x8xbf16> to vector<32x8xbf16>
    %cst_406 = arith.constant dense<0.000000e+00> : vector<16x8xf32>
    %562 = tpu.matmul %510, %561, %cst_406 {dimension_numbers = #tpu.dot_dimension_numbers<[1], [0], [0], [1], [0, 0, 1, 1], [], []>} : vector<16x32xbf16>, vector<32x8xbf16>, vector<16x8xf32> -> vector<16x8xf32>
    %c1_407 = arith.constant 1 : index
    %c1_408 = arith.constant 1 : index
    %c2_409 = arith.constant 2 : index
    %c0_410 = arith.constant 0 : index
    %c0_411 = arith.constant 0 : index
    %563 = vector.load %arg8[%c1_407, %c1_408, %c2_409, %c0_410, %c0_411] : memref<2x3x4x1x8xf32, #tpu.memory_space<vmem>>, vector<1x1x1x1x8xf32>
    %564 = vector.shape_cast %563 : vector<1x1x1x1x8xf32> to vector<1x8xf32>
    %565 = vector.broadcast %564 : vector<1x8xf32> to vector<16x8xf32>
    %566 = arith.addf %562, %565 : vector<16x8xf32>
    %c1_412 = arith.constant 1 : index
    %c2_413 = arith.constant 2 : index
    %c2_414 = arith.constant 2 : index
    %c0_415 = arith.constant 0 : index
    %c0_416 = arith.constant 0 : index
    %567 = vector.load %arg7[%c1_412, %c2_413, %c2_414, %c0_415, %c0_416] : memref<2x3x4x32x8xbf16, #tpu.memory_space<vmem>>, vector<1x1x1x32x8xbf16>
    %568 = vector.shape_cast %567 : vector<1x1x1x32x8xbf16> to vector<32x8xbf16>
    %cst_417 = arith.constant dense<0.000000e+00> : vector<16x8xf32>
    %569 = tpu.matmul %510, %568, %cst_417 {dimension_numbers = #tpu.dot_dimension_numbers<[1], [0], [0], [1], [0, 0, 1, 1], [], []>} : vector<16x32xbf16>, vector<32x8xbf16>, vector<16x8xf32> -> vector<16x8xf32>
    %c1_418 = arith.constant 1 : index
    %c2_419 = arith.constant 2 : index
    %c2_420 = arith.constant 2 : index
    %c0_421 = arith.constant 0 : index
    %c0_422 = arith.constant 0 : index
    %570 = vector.load %arg8[%c1_418, %c2_419, %c2_420, %c0_421, %c0_422] : memref<2x3x4x1x8xf32, #tpu.memory_space<vmem>>, vector<1x1x1x1x8xf32>
    %571 = vector.shape_cast %570 : vector<1x1x1x1x8xf32> to vector<1x8xf32>
    %572 = vector.broadcast %571 : vector<1x8xf32> to vector<16x8xf32>
    %573 = arith.addf %569, %572 : vector<16x8xf32>
    %c1_423 = arith.constant 1 : index
    %c0_424 = arith.constant 0 : index
    %c3_425 = arith.constant 3 : index
    %c0_426 = arith.constant 0 : index
    %c0_427 = arith.constant 0 : index
    %574 = vector.load %arg7[%c1_423, %c0_424, %c3_425, %c0_426, %c0_427] : memref<2x3x4x32x8xbf16, #tpu.memory_space<vmem>>, vector<1x1x1x32x8xbf16>
    %575 = vector.shape_cast %574 : vector<1x1x1x32x8xbf16> to vector<32x8xbf16>
    %cst_428 = arith.constant dense<0.000000e+00> : vector<16x8xf32>
    %576 = tpu.matmul %510, %575, %cst_428 {dimension_numbers = #tpu.dot_dimension_numbers<[1], [0], [0], [1], [0, 0, 1, 1], [], []>} : vector<16x32xbf16>, vector<32x8xbf16>, vector<16x8xf32> -> vector<16x8xf32>
    %c1_429 = arith.constant 1 : index
    %c0_430 = arith.constant 0 : index
    %c3_431 = arith.constant 3 : index
    %c0_432 = arith.constant 0 : index
    %c0_433 = arith.constant 0 : index
    %577 = vector.load %arg8[%c1_429, %c0_430, %c3_431, %c0_432, %c0_433] : memref<2x3x4x1x8xf32, #tpu.memory_space<vmem>>, vector<1x1x1x1x8xf32>
    %578 = vector.shape_cast %577 : vector<1x1x1x1x8xf32> to vector<1x8xf32>
    %579 = vector.broadcast %578 : vector<1x8xf32> to vector<16x8xf32>
    %580 = arith.addf %576, %579 : vector<16x8xf32>
    %c1_434 = arith.constant 1 : index
    %c1_435 = arith.constant 1 : index
    %c3_436 = arith.constant 3 : index
    %c0_437 = arith.constant 0 : index
    %c0_438 = arith.constant 0 : index
    %581 = vector.load %arg7[%c1_434, %c1_435, %c3_436, %c0_437, %c0_438] : memref<2x3x4x32x8xbf16, #tpu.memory_space<vmem>>, vector<1x1x1x32x8xbf16>
    %582 = vector.shape_cast %581 : vector<1x1x1x32x8xbf16> to vector<32x8xbf16>
    %cst_439 = arith.constant dense<0.000000e+00> : vector<16x8xf32>
    %583 = tpu.matmul %510, %582, %cst_439 {dimension_numbers = #tpu.dot_dimension_numbers<[1], [0], [0], [1], [0, 0, 1, 1], [], []>} : vector<16x32xbf16>, vector<32x8xbf16>, vector<16x8xf32> -> vector<16x8xf32>
    %c1_440 = arith.constant 1 : index
    %c1_441 = arith.constant 1 : index
    %c3_442 = arith.constant 3 : index
    %c0_443 = arith.constant 0 : index
    %c0_444 = arith.constant 0 : index
    %584 = vector.load %arg8[%c1_440, %c1_441, %c3_442, %c0_443, %c0_444] : memref<2x3x4x1x8xf32, #tpu.memory_space<vmem>>, vector<1x1x1x1x8xf32>
    %585 = vector.shape_cast %584 : vector<1x1x1x1x8xf32> to vector<1x8xf32>
    %586 = vector.broadcast %585 : vector<1x8xf32> to vector<16x8xf32>
    %587 = arith.addf %583, %586 : vector<16x8xf32>
    %c1_445 = arith.constant 1 : index
    %c2_446 = arith.constant 2 : index
    %c3_447 = arith.constant 3 : index
    %c0_448 = arith.constant 0 : index
    %c0_449 = arith.constant 0 : index
    %588 = vector.load %arg7[%c1_445, %c2_446, %c3_447, %c0_448, %c0_449] : memref<2x3x4x32x8xbf16, #tpu.memory_space<vmem>>, vector<1x1x1x32x8xbf16>
    %589 = vector.shape_cast %588 : vector<1x1x1x32x8xbf16> to vector<32x8xbf16>
    %cst_450 = arith.constant dense<0.000000e+00> : vector<16x8xf32>
    %590 = tpu.matmul %510, %589, %cst_450 {dimension_numbers = #tpu.dot_dimension_numbers<[1], [0], [0], [1], [0, 0, 1, 1], [], []>} : vector<16x32xbf16>, vector<32x8xbf16>, vector<16x8xf32> -> vector<16x8xf32>
    %c1_451 = arith.constant 1 : index
    %c2_452 = arith.constant 2 : index
    %c3_453 = arith.constant 3 : index
    %c0_454 = arith.constant 0 : index
    %c0_455 = arith.constant 0 : index
    %591 = vector.load %arg8[%c1_451, %c2_452, %c3_453, %c0_454, %c0_455] : memref<2x3x4x1x8xf32, #tpu.memory_space<vmem>>, vector<1x1x1x1x8xf32>
    %592 = vector.shape_cast %591 : vector<1x1x1x1x8xf32> to vector<1x8xf32>
    %593 = vector.broadcast %592 : vector<1x8xf32> to vector<16x8xf32>
    %594 = arith.addf %590, %593 : vector<16x8xf32>
    %cst_456 = arith.constant 0.000000e+00 : f32
    %595 = vector.broadcast %cst_456 : f32 to vector<8x32xf32>
    %596 = vector.extract_strided_slice %517 {offsets = [0, 0], sizes = [8, 8], strides = [1, 1]} : vector<16x8xf32> to vector<8x8xf32>
    %597 = arith.truncf %596 : vector<8x8xf32> to vector<8x8xbf16>
    %598 = vector.extract_strided_slice %524 {offsets = [0, 0], sizes = [8, 8], strides = [1, 1]} : vector<16x8xf32> to vector<8x8xf32>
    %599 = arith.truncf %598 : vector<8x8xf32> to vector<8x8xbf16>
    %600 = vector.extract_strided_slice %531 {offsets = [0, 0], sizes = [8, 8], strides = [1, 1]} : vector<16x8xf32> to vector<8x8xf32>
    %601 = arith.truncf %600 : vector<8x8xf32> to vector<8x8xbf16>
    %cst_457 = arith.constant dense<0.000000e+00> : vector<8x8xf32>
    %602 = tpu.matmul %597, %599, %cst_457 {dimension_numbers = #tpu.dot_dimension_numbers<[1], [1], [0], [0], [0, 0, 1, 0], [], []>} : vector<8x8xbf16>, vector<8x8xbf16>, vector<8x8xf32> -> vector<8x8xf32>
    %cst_458 = arith.constant 0.353553385 : f32
    %603 = vector.broadcast %cst_458 : f32 to vector<8x8xf32>
    %604 = arith.mulf %602, %603 : vector<8x8xf32>
    %cst_459 = arith.constant dense<0xFF800000> : vector<8xf32>
    %605 = vector.multi_reduction <maximumf>, %604, %cst_459 [1] : vector<8x8xf32> to vector<8xf32>
    %606 = vector.shape_cast %605 : vector<8xf32> to vector<8x1xf32>
    %607 = vector.broadcast %606 : vector<8x1xf32> to vector<8x8xf32>
    %608 = arith.subf %604, %607 : vector<8x8xf32>
    %609 = math.exp %608 : vector<8x8xf32>
    %cst_460 = arith.constant dense<0.000000e+00> : vector<8xf32>
    %610 = vector.multi_reduction <add>, %609, %cst_460 [1] : vector<8x8xf32> to vector<8xf32>
    %611 = vector.shape_cast %610 : vector<8xf32> to vector<8x1xf32>
    %612 = tpu.reciprocal %611 {approx = true} : vector<8x1xf32> -> vector<8x1xf32>
    %613 = vector.broadcast %612 : vector<8x1xf32> to vector<8x8xf32>
    %614 = arith.mulf %609, %613 : vector<8x8xf32>
    %615 = arith.truncf %614 : vector<8x8xf32> to vector<8x8xbf16>
    %cst_461 = arith.constant dense<0.000000e+00> : vector<8x8xf32>
    %616 = tpu.matmul %615, %601, %cst_461 {dimension_numbers = #tpu.dot_dimension_numbers<[1], [0], [0], [1], [0, 0, 1, 1], [], []>} : vector<8x8xbf16>, vector<8x8xbf16>, vector<8x8xf32> -> vector<8x8xf32>
    %617 = arith.truncf %616 : vector<8x8xf32> to vector<8x8xbf16>
    %c1_462 = arith.constant 1 : index
    %c0_463 = arith.constant 0 : index
    %c0_464 = arith.constant 0 : index
    %c0_465 = arith.constant 0 : index
    %618 = vector.load %arg9[%c1_462, %c0_463, %c0_464, %c0_465] : memref<2x4x8x32xbf16, #tpu.memory_space<vmem>>, vector<1x1x8x32xbf16>
    %619 = vector.shape_cast %618 : vector<1x1x8x32xbf16> to vector<8x32xbf16>
    %cst_466 = arith.constant dense<0.000000e+00> : vector<8x32xf32>
    %620 = tpu.matmul %617, %619, %cst_466 {dimension_numbers = #tpu.dot_dimension_numbers<[1], [0], [0], [1], [0, 0, 1, 1], [], []>} : vector<8x8xbf16>, vector<8x32xbf16>, vector<8x32xf32> -> vector<8x32xf32>
    %621 = arith.addf %595, %620 : vector<8x32xf32>
    %622 = vector.extract_strided_slice %538 {offsets = [0, 0], sizes = [8, 8], strides = [1, 1]} : vector<16x8xf32> to vector<8x8xf32>
    %623 = arith.truncf %622 : vector<8x8xf32> to vector<8x8xbf16>
    %624 = vector.extract_strided_slice %545 {offsets = [0, 0], sizes = [8, 8], strides = [1, 1]} : vector<16x8xf32> to vector<8x8xf32>
    %625 = arith.truncf %624 : vector<8x8xf32> to vector<8x8xbf16>
    %626 = vector.extract_strided_slice %552 {offsets = [0, 0], sizes = [8, 8], strides = [1, 1]} : vector<16x8xf32> to vector<8x8xf32>
    %627 = arith.truncf %626 : vector<8x8xf32> to vector<8x8xbf16>
    %cst_467 = arith.constant dense<0.000000e+00> : vector<8x8xf32>
    %628 = tpu.matmul %623, %625, %cst_467 {dimension_numbers = #tpu.dot_dimension_numbers<[1], [1], [0], [0], [0, 0, 1, 0], [], []>} : vector<8x8xbf16>, vector<8x8xbf16>, vector<8x8xf32> -> vector<8x8xf32>
    %cst_468 = arith.constant 0.353553385 : f32
    %629 = vector.broadcast %cst_468 : f32 to vector<8x8xf32>
    %630 = arith.mulf %628, %629 : vector<8x8xf32>
    %cst_469 = arith.constant dense<0xFF800000> : vector<8xf32>
    %631 = vector.multi_reduction <maximumf>, %630, %cst_469 [1] : vector<8x8xf32> to vector<8xf32>
    %632 = vector.shape_cast %631 : vector<8xf32> to vector<8x1xf32>
    %633 = vector.broadcast %632 : vector<8x1xf32> to vector<8x8xf32>
    %634 = arith.subf %630, %633 : vector<8x8xf32>
    %635 = math.exp %634 : vector<8x8xf32>
    %cst_470 = arith.constant dense<0.000000e+00> : vector<8xf32>
    %636 = vector.multi_reduction <add>, %635, %cst_470 [1] : vector<8x8xf32> to vector<8xf32>
    %637 = vector.shape_cast %636 : vector<8xf32> to vector<8x1xf32>
    %638 = tpu.reciprocal %637 {approx = true} : vector<8x1xf32> -> vector<8x1xf32>
    %639 = vector.broadcast %638 : vector<8x1xf32> to vector<8x8xf32>
    %640 = arith.mulf %635, %639 : vector<8x8xf32>
    %641 = arith.truncf %640 : vector<8x8xf32> to vector<8x8xbf16>
    %cst_471 = arith.constant dense<0.000000e+00> : vector<8x8xf32>
    %642 = tpu.matmul %641, %627, %cst_471 {dimension_numbers = #tpu.dot_dimension_numbers<[1], [0], [0], [1], [0, 0, 1, 1], [], []>} : vector<8x8xbf16>, vector<8x8xbf16>, vector<8x8xf32> -> vector<8x8xf32>
    %643 = arith.truncf %642 : vector<8x8xf32> to vector<8x8xbf16>
    %c1_472 = arith.constant 1 : index
    %c1_473 = arith.constant 1 : index
    %c0_474 = arith.constant 0 : index
    %c0_475 = arith.constant 0 : index
    %644 = vector.load %arg9[%c1_472, %c1_473, %c0_474, %c0_475] : memref<2x4x8x32xbf16, #tpu.memory_space<vmem>>, vector<1x1x8x32xbf16>
    %645 = vector.shape_cast %644 : vector<1x1x8x32xbf16> to vector<8x32xbf16>
    %cst_476 = arith.constant dense<0.000000e+00> : vector<8x32xf32>
    %646 = tpu.matmul %643, %645, %cst_476 {dimension_numbers = #tpu.dot_dimension_numbers<[1], [0], [0], [1], [0, 0, 1, 1], [], []>} : vector<8x8xbf16>, vector<8x32xbf16>, vector<8x32xf32> -> vector<8x32xf32>
    %647 = arith.addf %621, %646 : vector<8x32xf32>
    %648 = vector.extract_strided_slice %559 {offsets = [0, 0], sizes = [8, 8], strides = [1, 1]} : vector<16x8xf32> to vector<8x8xf32>
    %649 = arith.truncf %648 : vector<8x8xf32> to vector<8x8xbf16>
    %650 = vector.extract_strided_slice %566 {offsets = [0, 0], sizes = [8, 8], strides = [1, 1]} : vector<16x8xf32> to vector<8x8xf32>
    %651 = arith.truncf %650 : vector<8x8xf32> to vector<8x8xbf16>
    %652 = vector.extract_strided_slice %573 {offsets = [0, 0], sizes = [8, 8], strides = [1, 1]} : vector<16x8xf32> to vector<8x8xf32>
    %653 = arith.truncf %652 : vector<8x8xf32> to vector<8x8xbf16>
    %cst_477 = arith.constant dense<0.000000e+00> : vector<8x8xf32>
    %654 = tpu.matmul %649, %651, %cst_477 {dimension_numbers = #tpu.dot_dimension_numbers<[1], [1], [0], [0], [0, 0, 1, 0], [], []>} : vector<8x8xbf16>, vector<8x8xbf16>, vector<8x8xf32> -> vector<8x8xf32>
    %cst_478 = arith.constant 0.353553385 : f32
    %655 = vector.broadcast %cst_478 : f32 to vector<8x8xf32>
    %656 = arith.mulf %654, %655 : vector<8x8xf32>
    %cst_479 = arith.constant dense<0xFF800000> : vector<8xf32>
    %657 = vector.multi_reduction <maximumf>, %656, %cst_479 [1] : vector<8x8xf32> to vector<8xf32>
    %658 = vector.shape_cast %657 : vector<8xf32> to vector<8x1xf32>
    %659 = vector.broadcast %658 : vector<8x1xf32> to vector<8x8xf32>
    %660 = arith.subf %656, %659 : vector<8x8xf32>
    %661 = math.exp %660 : vector<8x8xf32>
    %cst_480 = arith.constant dense<0.000000e+00> : vector<8xf32>
    %662 = vector.multi_reduction <add>, %661, %cst_480 [1] : vector<8x8xf32> to vector<8xf32>
    %663 = vector.shape_cast %662 : vector<8xf32> to vector<8x1xf32>
    %664 = tpu.reciprocal %663 {approx = true} : vector<8x1xf32> -> vector<8x1xf32>
    %665 = vector.broadcast %664 : vector<8x1xf32> to vector<8x8xf32>
    %666 = arith.mulf %661, %665 : vector<8x8xf32>
    %667 = arith.truncf %666 : vector<8x8xf32> to vector<8x8xbf16>
    %cst_481 = arith.constant dense<0.000000e+00> : vector<8x8xf32>
    %668 = tpu.matmul %667, %653, %cst_481 {dimension_numbers = #tpu.dot_dimension_numbers<[1], [0], [0], [1], [0, 0, 1, 1], [], []>} : vector<8x8xbf16>, vector<8x8xbf16>, vector<8x8xf32> -> vector<8x8xf32>
    %669 = arith.truncf %668 : vector<8x8xf32> to vector<8x8xbf16>
    %c1_482 = arith.constant 1 : index
    %c2_483 = arith.constant 2 : index
    %c0_484 = arith.constant 0 : index
    %c0_485 = arith.constant 0 : index
    %670 = vector.load %arg9[%c1_482, %c2_483, %c0_484, %c0_485] : memref<2x4x8x32xbf16, #tpu.memory_space<vmem>>, vector<1x1x8x32xbf16>
    %671 = vector.shape_cast %670 : vector<1x1x8x32xbf16> to vector<8x32xbf16>
    %cst_486 = arith.constant dense<0.000000e+00> : vector<8x32xf32>
    %672 = tpu.matmul %669, %671, %cst_486 {dimension_numbers = #tpu.dot_dimension_numbers<[1], [0], [0], [1], [0, 0, 1, 1], [], []>} : vector<8x8xbf16>, vector<8x32xbf16>, vector<8x32xf32> -> vector<8x32xf32>
    %673 = arith.addf %647, %672 : vector<8x32xf32>
    %674 = vector.extract_strided_slice %580 {offsets = [0, 0], sizes = [8, 8], strides = [1, 1]} : vector<16x8xf32> to vector<8x8xf32>
    %675 = arith.truncf %674 : vector<8x8xf32> to vector<8x8xbf16>
    %676 = vector.extract_strided_slice %587 {offsets = [0, 0], sizes = [8, 8], strides = [1, 1]} : vector<16x8xf32> to vector<8x8xf32>
    %677 = arith.truncf %676 : vector<8x8xf32> to vector<8x8xbf16>
    %678 = vector.extract_strided_slice %594 {offsets = [0, 0], sizes = [8, 8], strides = [1, 1]} : vector<16x8xf32> to vector<8x8xf32>
    %679 = arith.truncf %678 : vector<8x8xf32> to vector<8x8xbf16>
    %cst_487 = arith.constant dense<0.000000e+00> : vector<8x8xf32>
    %680 = tpu.matmul %675, %677, %cst_487 {dimension_numbers = #tpu.dot_dimension_numbers<[1], [1], [0], [0], [0, 0, 1, 0], [], []>} : vector<8x8xbf16>, vector<8x8xbf16>, vector<8x8xf32> -> vector<8x8xf32>
    %cst_488 = arith.constant 0.353553385 : f32
    %681 = vector.broadcast %cst_488 : f32 to vector<8x8xf32>
    %682 = arith.mulf %680, %681 : vector<8x8xf32>
    %cst_489 = arith.constant dense<0xFF800000> : vector<8xf32>
    %683 = vector.multi_reduction <maximumf>, %682, %cst_489 [1] : vector<8x8xf32> to vector<8xf32>
    %684 = vector.shape_cast %683 : vector<8xf32> to vector<8x1xf32>
    %685 = vector.broadcast %684 : vector<8x1xf32> to vector<8x8xf32>
    %686 = arith.subf %682, %685 : vector<8x8xf32>
    %687 = math.exp %686 : vector<8x8xf32>
    %cst_490 = arith.constant dense<0.000000e+00> : vector<8xf32>
    %688 = vector.multi_reduction <add>, %687, %cst_490 [1] : vector<8x8xf32> to vector<8xf32>
    %689 = vector.shape_cast %688 : vector<8xf32> to vector<8x1xf32>
    %690 = tpu.reciprocal %689 {approx = true} : vector<8x1xf32> -> vector<8x1xf32>
    %691 = vector.broadcast %690 : vector<8x1xf32> to vector<8x8xf32>
    %692 = arith.mulf %687, %691 : vector<8x8xf32>
    %693 = arith.truncf %692 : vector<8x8xf32> to vector<8x8xbf16>
    %cst_491 = arith.constant dense<0.000000e+00> : vector<8x8xf32>
    %694 = tpu.matmul %693, %679, %cst_491 {dimension_numbers = #tpu.dot_dimension_numbers<[1], [0], [0], [1], [0, 0, 1, 1], [], []>} : vector<8x8xbf16>, vector<8x8xbf16>, vector<8x8xf32> -> vector<8x8xf32>
    %695 = arith.truncf %694 : vector<8x8xf32> to vector<8x8xbf16>
    %c1_492 = arith.constant 1 : index
    %c3_493 = arith.constant 3 : index
    %c0_494 = arith.constant 0 : index
    %c0_495 = arith.constant 0 : index
    %696 = vector.load %arg9[%c1_492, %c3_493, %c0_494, %c0_495] : memref<2x4x8x32xbf16, #tpu.memory_space<vmem>>, vector<1x1x8x32xbf16>
    %697 = vector.shape_cast %696 : vector<1x1x8x32xbf16> to vector<8x32xbf16>
    %cst_496 = arith.constant dense<0.000000e+00> : vector<8x32xf32>
    %698 = tpu.matmul %695, %697, %cst_496 {dimension_numbers = #tpu.dot_dimension_numbers<[1], [0], [0], [1], [0, 0, 1, 1], [], []>} : vector<8x8xbf16>, vector<8x32xbf16>, vector<8x32xf32> -> vector<8x32xf32>
    %699 = arith.addf %673, %698 : vector<8x32xf32>
    %cst_497 = arith.constant 0.000000e+00 : f32
    %700 = vector.broadcast %cst_497 : f32 to vector<8x32xf32>
    %701 = vector.extract_strided_slice %517 {offsets = [8, 0], sizes = [8, 8], strides = [1, 1]} : vector<16x8xf32> to vector<8x8xf32>
    %702 = arith.truncf %701 : vector<8x8xf32> to vector<8x8xbf16>
    %703 = vector.extract_strided_slice %524 {offsets = [8, 0], sizes = [8, 8], strides = [1, 1]} : vector<16x8xf32> to vector<8x8xf32>
    %704 = arith.truncf %703 : vector<8x8xf32> to vector<8x8xbf16>
    %705 = vector.extract_strided_slice %531 {offsets = [8, 0], sizes = [8, 8], strides = [1, 1]} : vector<16x8xf32> to vector<8x8xf32>
    %706 = arith.truncf %705 : vector<8x8xf32> to vector<8x8xbf16>
    %cst_498 = arith.constant dense<0.000000e+00> : vector<8x8xf32>
    %707 = tpu.matmul %702, %704, %cst_498 {dimension_numbers = #tpu.dot_dimension_numbers<[1], [1], [0], [0], [0, 0, 1, 0], [], []>} : vector<8x8xbf16>, vector<8x8xbf16>, vector<8x8xf32> -> vector<8x8xf32>
    %cst_499 = arith.constant 0.353553385 : f32
    %708 = vector.broadcast %cst_499 : f32 to vector<8x8xf32>
    %709 = arith.mulf %707, %708 : vector<8x8xf32>
    %cst_500 = arith.constant dense<0xFF800000> : vector<8xf32>
    %710 = vector.multi_reduction <maximumf>, %709, %cst_500 [1] : vector<8x8xf32> to vector<8xf32>
    %711 = vector.shape_cast %710 : vector<8xf32> to vector<8x1xf32>
    %712 = vector.broadcast %711 : vector<8x1xf32> to vector<8x8xf32>
    %713 = arith.subf %709, %712 : vector<8x8xf32>
    %714 = math.exp %713 : vector<8x8xf32>
    %cst_501 = arith.constant dense<0.000000e+00> : vector<8xf32>
    %715 = vector.multi_reduction <add>, %714, %cst_501 [1] : vector<8x8xf32> to vector<8xf32>
    %716 = vector.shape_cast %715 : vector<8xf32> to vector<8x1xf32>
    %717 = tpu.reciprocal %716 {approx = true} : vector<8x1xf32> -> vector<8x1xf32>
    %718 = vector.broadcast %717 : vector<8x1xf32> to vector<8x8xf32>
    %719 = arith.mulf %714, %718 : vector<8x8xf32>
    %720 = arith.truncf %719 : vector<8x8xf32> to vector<8x8xbf16>
    %cst_502 = arith.constant dense<0.000000e+00> : vector<8x8xf32>
    %721 = tpu.matmul %720, %706, %cst_502 {dimension_numbers = #tpu.dot_dimension_numbers<[1], [0], [0], [1], [0, 0, 1, 1], [], []>} : vector<8x8xbf16>, vector<8x8xbf16>, vector<8x8xf32> -> vector<8x8xf32>
    %722 = arith.truncf %721 : vector<8x8xf32> to vector<8x8xbf16>
    %c1_503 = arith.constant 1 : index
    %c0_504 = arith.constant 0 : index
    %c0_505 = arith.constant 0 : index
    %c0_506 = arith.constant 0 : index
    %723 = vector.load %arg9[%c1_503, %c0_504, %c0_505, %c0_506] : memref<2x4x8x32xbf16, #tpu.memory_space<vmem>>, vector<1x1x8x32xbf16>
    %724 = vector.shape_cast %723 : vector<1x1x8x32xbf16> to vector<8x32xbf16>
    %cst_507 = arith.constant dense<0.000000e+00> : vector<8x32xf32>
    %725 = tpu.matmul %722, %724, %cst_507 {dimension_numbers = #tpu.dot_dimension_numbers<[1], [0], [0], [1], [0, 0, 1, 1], [], []>} : vector<8x8xbf16>, vector<8x32xbf16>, vector<8x32xf32> -> vector<8x32xf32>
    %726 = arith.addf %700, %725 : vector<8x32xf32>
    %727 = vector.extract_strided_slice %538 {offsets = [8, 0], sizes = [8, 8], strides = [1, 1]} : vector<16x8xf32> to vector<8x8xf32>
    %728 = arith.truncf %727 : vector<8x8xf32> to vector<8x8xbf16>
    %729 = vector.extract_strided_slice %545 {offsets = [8, 0], sizes = [8, 8], strides = [1, 1]} : vector<16x8xf32> to vector<8x8xf32>
    %730 = arith.truncf %729 : vector<8x8xf32> to vector<8x8xbf16>
    %731 = vector.extract_strided_slice %552 {offsets = [8, 0], sizes = [8, 8], strides = [1, 1]} : vector<16x8xf32> to vector<8x8xf32>
    %732 = arith.truncf %731 : vector<8x8xf32> to vector<8x8xbf16>
    %cst_508 = arith.constant dense<0.000000e+00> : vector<8x8xf32>
    %733 = tpu.matmul %728, %730, %cst_508 {dimension_numbers = #tpu.dot_dimension_numbers<[1], [1], [0], [0], [0, 0, 1, 0], [], []>} : vector<8x8xbf16>, vector<8x8xbf16>, vector<8x8xf32> -> vector<8x8xf32>
    %cst_509 = arith.constant 0.353553385 : f32
    %734 = vector.broadcast %cst_509 : f32 to vector<8x8xf32>
    %735 = arith.mulf %733, %734 : vector<8x8xf32>
    %cst_510 = arith.constant dense<0xFF800000> : vector<8xf32>
    %736 = vector.multi_reduction <maximumf>, %735, %cst_510 [1] : vector<8x8xf32> to vector<8xf32>
    %737 = vector.shape_cast %736 : vector<8xf32> to vector<8x1xf32>
    %738 = vector.broadcast %737 : vector<8x1xf32> to vector<8x8xf32>
    %739 = arith.subf %735, %738 : vector<8x8xf32>
    %740 = math.exp %739 : vector<8x8xf32>
    %cst_511 = arith.constant dense<0.000000e+00> : vector<8xf32>
    %741 = vector.multi_reduction <add>, %740, %cst_511 [1] : vector<8x8xf32> to vector<8xf32>
    %742 = vector.shape_cast %741 : vector<8xf32> to vector<8x1xf32>
    %743 = tpu.reciprocal %742 {approx = true} : vector<8x1xf32> -> vector<8x1xf32>
    %744 = vector.broadcast %743 : vector<8x1xf32> to vector<8x8xf32>
    %745 = arith.mulf %740, %744 : vector<8x8xf32>
    %746 = arith.truncf %745 : vector<8x8xf32> to vector<8x8xbf16>
    %cst_512 = arith.constant dense<0.000000e+00> : vector<8x8xf32>
    %747 = tpu.matmul %746, %732, %cst_512 {dimension_numbers = #tpu.dot_dimension_numbers<[1], [0], [0], [1], [0, 0, 1, 1], [], []>} : vector<8x8xbf16>, vector<8x8xbf16>, vector<8x8xf32> -> vector<8x8xf32>
    %748 = arith.truncf %747 : vector<8x8xf32> to vector<8x8xbf16>
    %c1_513 = arith.constant 1 : index
    %c1_514 = arith.constant 1 : index
    %c0_515 = arith.constant 0 : index
    %c0_516 = arith.constant 0 : index
    %749 = vector.load %arg9[%c1_513, %c1_514, %c0_515, %c0_516] : memref<2x4x8x32xbf16, #tpu.memory_space<vmem>>, vector<1x1x8x32xbf16>
    %750 = vector.shape_cast %749 : vector<1x1x8x32xbf16> to vector<8x32xbf16>
    %cst_517 = arith.constant dense<0.000000e+00> : vector<8x32xf32>
    %751 = tpu.matmul %748, %750, %cst_517 {dimension_numbers = #tpu.dot_dimension_numbers<[1], [0], [0], [1], [0, 0, 1, 1], [], []>} : vector<8x8xbf16>, vector<8x32xbf16>, vector<8x32xf32> -> vector<8x32xf32>
    %752 = arith.addf %726, %751 : vector<8x32xf32>
    %753 = vector.extract_strided_slice %559 {offsets = [8, 0], sizes = [8, 8], strides = [1, 1]} : vector<16x8xf32> to vector<8x8xf32>
    %754 = arith.truncf %753 : vector<8x8xf32> to vector<8x8xbf16>
    %755 = vector.extract_strided_slice %566 {offsets = [8, 0], sizes = [8, 8], strides = [1, 1]} : vector<16x8xf32> to vector<8x8xf32>
    %756 = arith.truncf %755 : vector<8x8xf32> to vector<8x8xbf16>
    %757 = vector.extract_strided_slice %573 {offsets = [8, 0], sizes = [8, 8], strides = [1, 1]} : vector<16x8xf32> to vector<8x8xf32>
    %758 = arith.truncf %757 : vector<8x8xf32> to vector<8x8xbf16>
    %cst_518 = arith.constant dense<0.000000e+00> : vector<8x8xf32>
    %759 = tpu.matmul %754, %756, %cst_518 {dimension_numbers = #tpu.dot_dimension_numbers<[1], [1], [0], [0], [0, 0, 1, 0], [], []>} : vector<8x8xbf16>, vector<8x8xbf16>, vector<8x8xf32> -> vector<8x8xf32>
    %cst_519 = arith.constant 0.353553385 : f32
    %760 = vector.broadcast %cst_519 : f32 to vector<8x8xf32>
    %761 = arith.mulf %759, %760 : vector<8x8xf32>
    %cst_520 = arith.constant dense<0xFF800000> : vector<8xf32>
    %762 = vector.multi_reduction <maximumf>, %761, %cst_520 [1] : vector<8x8xf32> to vector<8xf32>
    %763 = vector.shape_cast %762 : vector<8xf32> to vector<8x1xf32>
    %764 = vector.broadcast %763 : vector<8x1xf32> to vector<8x8xf32>
    %765 = arith.subf %761, %764 : vector<8x8xf32>
    %766 = math.exp %765 : vector<8x8xf32>
    %cst_521 = arith.constant dense<0.000000e+00> : vector<8xf32>
    %767 = vector.multi_reduction <add>, %766, %cst_521 [1] : vector<8x8xf32> to vector<8xf32>
    %768 = vector.shape_cast %767 : vector<8xf32> to vector<8x1xf32>
    %769 = tpu.reciprocal %768 {approx = true} : vector<8x1xf32> -> vector<8x1xf32>
    %770 = vector.broadcast %769 : vector<8x1xf32> to vector<8x8xf32>
    %771 = arith.mulf %766, %770 : vector<8x8xf32>
    %772 = arith.truncf %771 : vector<8x8xf32> to vector<8x8xbf16>
    %cst_522 = arith.constant dense<0.000000e+00> : vector<8x8xf32>
    %773 = tpu.matmul %772, %758, %cst_522 {dimension_numbers = #tpu.dot_dimension_numbers<[1], [0], [0], [1], [0, 0, 1, 1], [], []>} : vector<8x8xbf16>, vector<8x8xbf16>, vector<8x8xf32> -> vector<8x8xf32>
    %774 = arith.truncf %773 : vector<8x8xf32> to vector<8x8xbf16>
    %c1_523 = arith.constant 1 : index
    %c2_524 = arith.constant 2 : index
    %c0_525 = arith.constant 0 : index
    %c0_526 = arith.constant 0 : index
    %775 = vector.load %arg9[%c1_523, %c2_524, %c0_525, %c0_526] : memref<2x4x8x32xbf16, #tpu.memory_space<vmem>>, vector<1x1x8x32xbf16>
    %776 = vector.shape_cast %775 : vector<1x1x8x32xbf16> to vector<8x32xbf16>
    %cst_527 = arith.constant dense<0.000000e+00> : vector<8x32xf32>
    %777 = tpu.matmul %774, %776, %cst_527 {dimension_numbers = #tpu.dot_dimension_numbers<[1], [0], [0], [1], [0, 0, 1, 1], [], []>} : vector<8x8xbf16>, vector<8x32xbf16>, vector<8x32xf32> -> vector<8x32xf32>
    %778 = arith.addf %752, %777 : vector<8x32xf32>
    %779 = vector.extract_strided_slice %580 {offsets = [8, 0], sizes = [8, 8], strides = [1, 1]} : vector<16x8xf32> to vector<8x8xf32>
    %780 = arith.truncf %779 : vector<8x8xf32> to vector<8x8xbf16>
    %781 = vector.extract_strided_slice %587 {offsets = [8, 0], sizes = [8, 8], strides = [1, 1]} : vector<16x8xf32> to vector<8x8xf32>
    %782 = arith.truncf %781 : vector<8x8xf32> to vector<8x8xbf16>
    %783 = vector.extract_strided_slice %594 {offsets = [8, 0], sizes = [8, 8], strides = [1, 1]} : vector<16x8xf32> to vector<8x8xf32>
    %784 = arith.truncf %783 : vector<8x8xf32> to vector<8x8xbf16>
    %cst_528 = arith.constant dense<0.000000e+00> : vector<8x8xf32>
    %785 = tpu.matmul %780, %782, %cst_528 {dimension_numbers = #tpu.dot_dimension_numbers<[1], [1], [0], [0], [0, 0, 1, 0], [], []>} : vector<8x8xbf16>, vector<8x8xbf16>, vector<8x8xf32> -> vector<8x8xf32>
    %cst_529 = arith.constant 0.353553385 : f32
    %786 = vector.broadcast %cst_529 : f32 to vector<8x8xf32>
    %787 = arith.mulf %785, %786 : vector<8x8xf32>
    %cst_530 = arith.constant dense<0xFF800000> : vector<8xf32>
    %788 = vector.multi_reduction <maximumf>, %787, %cst_530 [1] : vector<8x8xf32> to vector<8xf32>
    %789 = vector.shape_cast %788 : vector<8xf32> to vector<8x1xf32>
    %790 = vector.broadcast %789 : vector<8x1xf32> to vector<8x8xf32>
    %791 = arith.subf %787, %790 : vector<8x8xf32>
    %792 = math.exp %791 : vector<8x8xf32>
    %cst_531 = arith.constant dense<0.000000e+00> : vector<8xf32>
    %793 = vector.multi_reduction <add>, %792, %cst_531 [1] : vector<8x8xf32> to vector<8xf32>
    %794 = vector.shape_cast %793 : vector<8xf32> to vector<8x1xf32>
    %795 = tpu.reciprocal %794 {approx = true} : vector<8x1xf32> -> vector<8x1xf32>
    %796 = vector.broadcast %795 : vector<8x1xf32> to vector<8x8xf32>
    %797 = arith.mulf %792, %796 : vector<8x8xf32>
    %798 = arith.truncf %797 : vector<8x8xf32> to vector<8x8xbf16>
    %cst_532 = arith.constant dense<0.000000e+00> : vector<8x8xf32>
    %799 = tpu.matmul %798, %784, %cst_532 {dimension_numbers = #tpu.dot_dimension_numbers<[1], [0], [0], [1], [0, 0, 1, 1], [], []>} : vector<8x8xbf16>, vector<8x8xbf16>, vector<8x8xf32> -> vector<8x8xf32>
    %800 = arith.truncf %799 : vector<8x8xf32> to vector<8x8xbf16>
    %c1_533 = arith.constant 1 : index
    %c3_534 = arith.constant 3 : index
    %c0_535 = arith.constant 0 : index
    %c0_536 = arith.constant 0 : index
    %801 = vector.load %arg9[%c1_533, %c3_534, %c0_535, %c0_536] : memref<2x4x8x32xbf16, #tpu.memory_space<vmem>>, vector<1x1x8x32xbf16>
    %802 = vector.shape_cast %801 : vector<1x1x8x32xbf16> to vector<8x32xbf16>
    %cst_537 = arith.constant dense<0.000000e+00> : vector<8x32xf32>
    %803 = tpu.matmul %800, %802, %cst_537 {dimension_numbers = #tpu.dot_dimension_numbers<[1], [0], [0], [1], [0, 0, 1, 1], [], []>} : vector<8x8xbf16>, vector<8x32xbf16>, vector<8x32xf32> -> vector<8x32xf32>
    %804 = arith.addf %778, %803 : vector<8x32xf32>
    %805 = tpu.concatenate %699, %804 in 0 : vector<8x32xf32>, vector<8x32xf32> -> vector<16x32xf32>
    %c1_538 = arith.constant 1 : index
    %c0_539 = arith.constant 0 : index
    %c0_540 = arith.constant 0 : index
    %806 = vector.load %arg10[%c1_538, %c0_539, %c0_540] : memref<2x1x32xf32, #tpu.memory_space<vmem>>, vector<1x1x32xf32>
    %807 = vector.shape_cast %806 : vector<1x1x32xf32> to vector<1x32xf32>
    %808 = vector.broadcast %807 : vector<1x32xf32> to vector<16x32xf32>
    %809 = arith.addf %805, %808 : vector<16x32xf32>
    %810 = arith.addf %809, %509 : vector<16x32xf32>
    %cst_541 = arith.constant dense<0.000000e+00> : vector<16xf32>
    %811 = vector.multi_reduction <add>, %810, %cst_541 [1] : vector<16x32xf32> to vector<16xf32>
    %812 = vector.shape_cast %811 : vector<16xf32> to vector<16x1xf32>
    %cst_542 = arith.constant 3.200000e+01 : f32
    %813 = vector.broadcast %cst_542 : f32 to vector<16x1xf32>
    %814 = arith.divf %812, %813 : vector<16x1xf32>
    %815 = vector.broadcast %814 : vector<16x1xf32> to vector<16x32xf32>
    %816 = arith.subf %810, %815 : vector<16x32xf32>
    %817 = arith.mulf %816, %816 : vector<16x32xf32>
    %cst_543 = arith.constant dense<0.000000e+00> : vector<16xf32>
    %818 = vector.multi_reduction <add>, %817, %cst_543 [1] : vector<16x32xf32> to vector<16xf32>
    %819 = vector.shape_cast %818 : vector<16xf32> to vector<16x1xf32>
    %cst_544 = arith.constant 3.200000e+01 : f32
    %820 = vector.broadcast %cst_544 : f32 to vector<16x1xf32>
    %821 = arith.divf %819, %820 : vector<16x1xf32>
    %822 = vector.broadcast %814 : vector<16x1xf32> to vector<16x32xf32>
    %823 = arith.subf %810, %822 : vector<16x32xf32>
    %cst_545 = arith.constant 9.99999974E-6 : f32
    %824 = vector.broadcast %cst_545 : f32 to vector<16x1xf32>
    %825 = arith.addf %821, %824 : vector<16x1xf32>
    %826 = math.rsqrt %825 : vector<16x1xf32>
    %827 = vector.broadcast %826 : vector<16x1xf32> to vector<16x32xf32>
    %828 = arith.mulf %823, %827 : vector<16x32xf32>
    %c1_546 = arith.constant 1 : index
    %c0_547 = arith.constant 0 : index
    %c0_548 = arith.constant 0 : index
    %829 = vector.load %arg11[%c1_546, %c0_547, %c0_548] : memref<2x1x32xf32, #tpu.memory_space<vmem>>, vector<1x1x32xf32>
    %830 = vector.shape_cast %829 : vector<1x1x32xf32> to vector<1x32xf32>
    %831 = vector.broadcast %830 : vector<1x32xf32> to vector<16x32xf32>
    %832 = arith.mulf %828, %831 : vector<16x32xf32>
    %c1_549 = arith.constant 1 : index
    %c0_550 = arith.constant 0 : index
    %c0_551 = arith.constant 0 : index
    %833 = vector.load %arg12[%c1_549, %c0_550, %c0_551] : memref<2x1x32xf32, #tpu.memory_space<vmem>>, vector<1x1x32xf32>
    %834 = vector.shape_cast %833 : vector<1x1x32xf32> to vector<1x32xf32>
    %835 = vector.broadcast %834 : vector<1x32xf32> to vector<16x32xf32>
    %836 = arith.addf %832, %835 : vector<16x32xf32>
    %837 = arith.truncf %836 : vector<16x32xf32> to vector<16x32xbf16>
    %c1_552 = arith.constant 1 : index
    %c0_553 = arith.constant 0 : index
    %c0_554 = arith.constant 0 : index
    %838 = vector.load %arg13[%c1_552, %c0_553, %c0_554] : memref<2x32x64xbf16, #tpu.memory_space<vmem>>, vector<1x32x64xbf16>
    %839 = vector.shape_cast %838 : vector<1x32x64xbf16> to vector<32x64xbf16>
    %cst_555 = arith.constant dense<0.000000e+00> : vector<16x64xf32>
    %840 = tpu.matmul %837, %839, %cst_555 {dimension_numbers = #tpu.dot_dimension_numbers<[1], [0], [0], [1], [0, 0, 1, 1], [], []>} : vector<16x32xbf16>, vector<32x64xbf16>, vector<16x64xf32> -> vector<16x64xf32>
    %c1_556 = arith.constant 1 : index
    %c0_557 = arith.constant 0 : index
    %c0_558 = arith.constant 0 : index
    %841 = vector.load %arg14[%c1_556, %c0_557, %c0_558] : memref<2x1x64xf32, #tpu.memory_space<vmem>>, vector<1x1x64xf32>
    %842 = vector.shape_cast %841 : vector<1x1x64xf32> to vector<1x64xf32>
    %843 = vector.broadcast %842 : vector<1x64xf32> to vector<16x64xf32>
    %844 = arith.addf %840, %843 : vector<16x64xf32>
    %cst_559 = arith.constant 5.000000e-01 : f32
    %845 = vector.broadcast %cst_559 : f32 to vector<16x64xf32>
    %846 = arith.mulf %845, %844 : vector<16x64xf32>
    %cst_560 = arith.constant 4.471500e-02 : f32
    %847 = vector.broadcast %cst_560 : f32 to vector<16x64xf32>
    %848 = arith.mulf %847, %844 : vector<16x64xf32>
    %849 = arith.mulf %848, %844 : vector<16x64xf32>
    %850 = arith.mulf %849, %844 : vector<16x64xf32>
    %851 = arith.addf %844, %850 : vector<16x64xf32>
    %cst_561 = arith.constant 0.797884583 : f32
    %852 = vector.broadcast %cst_561 : f32 to vector<16x64xf32>
    %853 = arith.mulf %852, %851 : vector<16x64xf32>
    %854 = math.tanh %853 : vector<16x64xf32>
    %cst_562 = arith.constant 1.000000e+00 : f32
    %855 = vector.broadcast %cst_562 : f32 to vector<16x64xf32>
    %856 = arith.addf %855, %854 : vector<16x64xf32>
    %857 = arith.mulf %846, %856 : vector<16x64xf32>
    %858 = arith.truncf %857 : vector<16x64xf32> to vector<16x64xbf16>
    %c1_563 = arith.constant 1 : index
    %c0_564 = arith.constant 0 : index
    %c0_565 = arith.constant 0 : index
    %859 = vector.load %arg15[%c1_563, %c0_564, %c0_565] : memref<2x64x32xbf16, #tpu.memory_space<vmem>>, vector<1x64x32xbf16>
    %860 = vector.shape_cast %859 : vector<1x64x32xbf16> to vector<64x32xbf16>
    %cst_566 = arith.constant dense<0.000000e+00> : vector<16x32xf32>
    %861 = tpu.matmul %858, %860, %cst_566 {dimension_numbers = #tpu.dot_dimension_numbers<[1], [0], [0], [1], [0, 0, 1, 1], [], []>} : vector<16x64xbf16>, vector<64x32xbf16>, vector<16x32xf32> -> vector<16x32xf32>
    %c1_567 = arith.constant 1 : index
    %c0_568 = arith.constant 0 : index
    %c0_569 = arith.constant 0 : index
    %862 = vector.load %arg16[%c1_567, %c0_568, %c0_569] : memref<2x1x32xf32, #tpu.memory_space<vmem>>, vector<1x1x32xf32>
    %863 = vector.shape_cast %862 : vector<1x1x32xf32> to vector<1x32xf32>
    %864 = vector.broadcast %863 : vector<1x32xf32> to vector<16x32xf32>
    %865 = arith.addf %861, %864 : vector<16x32xf32>
    %866 = arith.addf %865, %836 : vector<16x32xf32>
    %cst_570 = arith.constant dense<0.000000e+00> : vector<16xf32>
    %867 = vector.multi_reduction <add>, %866, %cst_570 [1] : vector<16x32xf32> to vector<16xf32>
    %868 = vector.shape_cast %867 : vector<16xf32> to vector<16x1xf32>
    %cst_571 = arith.constant 3.200000e+01 : f32
    %869 = vector.broadcast %cst_571 : f32 to vector<16x1xf32>
    %870 = arith.divf %868, %869 : vector<16x1xf32>
    %871 = vector.broadcast %870 : vector<16x1xf32> to vector<16x32xf32>
    %872 = arith.subf %866, %871 : vector<16x32xf32>
    %873 = arith.mulf %872, %872 : vector<16x32xf32>
    %cst_572 = arith.constant dense<0.000000e+00> : vector<16xf32>
    %874 = vector.multi_reduction <add>, %873, %cst_572 [1] : vector<16x32xf32> to vector<16xf32>
    %875 = vector.shape_cast %874 : vector<16xf32> to vector<16x1xf32>
    %cst_573 = arith.constant 3.200000e+01 : f32
    %876 = vector.broadcast %cst_573 : f32 to vector<16x1xf32>
    %877 = arith.divf %875, %876 : vector<16x1xf32>
    %878 = vector.broadcast %870 : vector<16x1xf32> to vector<16x32xf32>
    %879 = arith.subf %866, %878 : vector<16x32xf32>
    %cst_574 = arith.constant 9.99999974E-6 : f32
    %880 = vector.broadcast %cst_574 : f32 to vector<16x1xf32>
    %881 = arith.addf %877, %880 : vector<16x1xf32>
    %882 = math.rsqrt %881 : vector<16x1xf32>
    %883 = vector.broadcast %882 : vector<16x1xf32> to vector<16x32xf32>
    %884 = arith.mulf %879, %883 : vector<16x32xf32>
    %c1_575 = arith.constant 1 : index
    %c0_576 = arith.constant 0 : index
    %c0_577 = arith.constant 0 : index
    %885 = vector.load %arg17[%c1_575, %c0_576, %c0_577] : memref<2x1x32xf32, #tpu.memory_space<vmem>>, vector<1x1x32xf32>
    %886 = vector.shape_cast %885 : vector<1x1x32xf32> to vector<1x32xf32>
    %887 = vector.broadcast %886 : vector<1x32xf32> to vector<16x32xf32>
    %888 = arith.mulf %884, %887 : vector<16x32xf32>
    %c1_578 = arith.constant 1 : index
    %c0_579 = arith.constant 0 : index
    %c0_580 = arith.constant 0 : index
    %889 = vector.load %arg18[%c1_578, %c0_579, %c0_580] : memref<2x1x32xf32, #tpu.memory_space<vmem>>, vector<1x1x32xf32>
    %890 = vector.shape_cast %889 : vector<1x1x32xf32> to vector<1x32xf32>
    %891 = vector.broadcast %890 : vector<1x32xf32> to vector<16x32xf32>
    %892 = arith.addf %888, %891 : vector<16x32xf32>
    %893 = arith.truncf %892 : vector<16x32xf32> to vector<16x32xbf16>
    %c0_581 = arith.constant 0 : index
    %c0_582 = arith.constant 0 : index
    %894 = vector.load %arg19[%c0_581, %c0_582] : memref<32x128xbf16, #tpu.memory_space<vmem>>, vector<32x128xbf16>
    %cst_583 = arith.constant dense<0.000000e+00> : vector<16x128xf32>
    %895 = tpu.matmul %893, %894, %cst_583 {dimension_numbers = #tpu.dot_dimension_numbers<[1], [0], [0], [1], [0, 0, 1, 1], [], []>} : vector<16x32xbf16>, vector<32x128xbf16>, vector<16x128xf32> -> vector<16x128xf32>
    %c0_584 = arith.constant 0 : index
    %c0_585 = arith.constant 0 : index
    %896 = vector.load %arg20[%c0_584, %c0_585] : memref<16x128xf32, #tpu.memory_space<vmem>>, vector<16x128xf32>
    tpu.vector_store %arg20[%c0_584, %c0_585], %895 {strides = array<i32>} : memref<16x128xf32, #tpu.memory_space<vmem>>, vector<16x128xf32>,
    return
  }
  func.func @transform_0(%arg0: i32) -> (i32, i32, i32) {
    %c0_i32 = arith.constant 0 : i32
    %c0_i32_0 = arith.constant 0 : i32
    %c0_i32_1 = arith.constant 0 : i32
    return %arg0, %c0_i32, %c0_i32_0 : i32, i32, i32
  }
  func.func @transform_1(%arg0: i32) -> (i32, i32, i32) {
    %c0_i32 = arith.constant 0 : i32
    %c0_i32_0 = arith.constant 0 : i32
    %c0_i32_1 = arith.constant 0 : i32
    %c0_i32_2 = arith.constant 0 : i32
    return %c0_i32, %c0_i32_0, %c0_i32_1 : i32, i32, i32
  }
  func.func @transform_2(%arg0: i32) -> (i32, i32) {
    %c0_i32 = arith.constant 0 : i32
    %c0_i32_0 = arith.constant 0 : i32
    %c0_i32_1 = arith.constant 0 : i32
    return %c0_i32, %c0_i32_0 : i32, i32
  }
  func.func @transform_3(%arg0: i32) -> (i32, i32) {
    %c0_i32 = arith.constant 0 : i32
    %c0_i32_0 = arith.constant 0 : i32
    %c0_i32_1 = arith.constant 0 : i32
    return %c0_i32, %c0_i32_0 : i32, i32
  }
  func.func @transform_4(%arg0: i32) -> (i32, i32) {
    %c0_i32 = arith.constant 0 : i32
    %c0_i32_0 = arith.constant 0 : i32
    %c0_i32_1 = arith.constant 0 : i32
    return %c0_i32, %c0_i32_0 : i32, i32
  }
  func.func @transform_5(%arg0: i32) -> (i32, i32) {
    %c0_i32 = arith.constant 0 : i32
    %c0_i32_0 = arith.constant 0 : i32
    %c0_i32_1 = arith.constant 0 : i32
    return %c0_i32, %c0_i32_0 : i32, i32
  }
  func.func @transform_6(%arg0: i32) -> (i32, i32, i32, i32, i32) {
    %c0_i32 = arith.constant 0 : i32
    %c0_i32_0 = arith.constant 0 : i32
    %c0_i32_1 = arith.constant 0 : i32
    %c0_i32_2 = arith.constant 0 : i32
    %c0_i32_3 = arith.constant 0 : i32
    %c0_i32_4 = arith.constant 0 : i32
    return %c0_i32, %c0_i32_0, %c0_i32_1, %c0_i32_2, %c0_i32_3 : i32, i32, i32, i32, i32
  }
  func.func @transform_7(%arg0: i32) -> (i32, i32, i32, i32, i32) {
    %c0_i32 = arith.constant 0 : i32
    %c0_i32_0 = arith.constant 0 : i32
    %c0_i32_1 = arith.constant 0 : i32
    %c0_i32_2 = arith.constant 0 : i32
    %c0_i32_3 = arith.constant 0 : i32
    %c0_i32_4 = arith.constant 0 : i32
    return %c0_i32, %c0_i32_0, %c0_i32_1, %c0_i32_2, %c0_i32_3 : i32, i32, i32, i32, i32
  }
  func.func @transform_8(%arg0: i32) -> (i32, i32, i32, i32) {
    %c0_i32 = arith.constant 0 : i32
    %c0_i32_0 = arith.constant 0 : i32
    %c0_i32_1 = arith.constant 0 : i32
    %c0_i32_2 = arith.constant 0 : i32
    %c0_i32_3 = arith.constant 0 : i32
    return %c0_i32, %c0_i32_0, %c0_i32_1, %c0_i32_2 : i32, i32, i32, i32
  }
  func.func @transform_9(%arg0: i32) -> (i32, i32, i32) {
    %c0_i32 = arith.constant 0 : i32
    %c0_i32_0 = arith.constant 0 : i32
    %c0_i32_1 = arith.constant 0 : i32
    %c0_i32_2 = arith.constant 0 : i32
    return %c0_i32, %c0_i32_0, %c0_i32_1 : i32, i32, i32
  }
  func.func @transform_10(%arg0: i32) -> (i32, i32, i32) {
    %c0_i32 = arith.constant 0 : i32
    %c0_i32_0 = arith.constant 0 : i32
    %c0_i32_1 = arith.constant 0 : i32
    %c0_i32_2 = arith.constant 0 : i32
    return %c0_i32, %c0_i32_0, %c0_i32_1 : i32, i32, i32
  }
  func.func @transform_11(%arg0: i32) -> (i32, i32, i32) {
    %c0_i32 = arith.constant 0 : i32
    %c0_i32_0 = arith.constant 0 : i32
    %c0_i32_1 = arith.constant 0 : i32
    %c0_i32_2 = arith.constant 0 : i32
    return %c0_i32, %c0_i32_0, %c0_i32_1 : i32, i32, i32
  }
  func.func @transform_12(%arg0: i32) -> (i32, i32, i32) {
    %c0_i32 = arith.constant 0 : i32
    %c0_i32_0 = arith.constant 0 : i32
    %c0_i32_1 = arith.constant 0 : i32
    %c0_i32_2 = arith.constant 0 : i32
    return %c0_i32, %c0_i32_0, %c0_i32_1 : i32, i32, i32
  }
  func.func @transform_13(%arg0: i32) -> (i32, i32, i32) {
    %c0_i32 = arith.constant 0 : i32
    %c0_i32_0 = arith.constant 0 : i32
    %c0_i32_1 = arith.constant 0 : i32
    %c0_i32_2 = arith.constant 0 : i32
    return %c0_i32, %c0_i32_0, %c0_i32_1 : i32, i32, i32
  }
  func.func @transform_14(%arg0: i32) -> (i32, i32, i32) {
    %c0_i32 = arith.constant 0 : i32
    %c0_i32_0 = arith.constant 0 : i32
    %c0_i32_1 = arith.constant 0 : i32
    %c0_i32_2 = arith.constant 0 : i32
    return %c0_i32, %c0_i32_0, %c0_i32_1 : i32, i32, i32
  }
  func.func @transform_15(%arg0: i32) -> (i32, i32, i32) {
    %c0_i32 = arith.constant 0 : i32
    %c0_i32_0 = arith.constant 0 : i32
    %c0_i32_1 = arith.constant 0 : i32
    %c0_i32_2 = arith.constant 0 : i32
    return %c0_i32, %c0_i32_0, %c0_i32_1 : i32, i32, i32
  }
  func.func @transform_16(%arg0: i32) -> (i32, i32, i32) {
    %c0_i32 = arith.constant 0 : i32
    %c0_i32_0 = arith.constant 0 : i32
    %c0_i32_1 = arith.constant 0 : i32
    %c0_i32_2 = arith.constant 0 : i32
    return %c0_i32, %c0_i32_0, %c0_i32_1 : i32, i32, i32
  }
  func.func @transform_17(%arg0: i32) -> (i32, i32, i32) {
    %c0_i32 = arith.constant 0 : i32
    %c0_i32_0 = arith.constant 0 : i32
    %c0_i32_1 = arith.constant 0 : i32
    %c0_i32_2 = arith.constant 0 : i32
    return %c0_i32, %c0_i32_0, %c0_i32_1 : i32, i32, i32
  }
  func.func @transform_18(%arg0: i32) -> (i32, i32) {
    %c0_i32 = arith.constant 0 : i32
    %c0_i32_0 = arith.constant 0 : i32
    %c0_i32_1 = arith.constant 0 : i32
    return %c0_i32, %c0_i32_0 : i32, i32
  }
  func.func @transform_19(%arg0: i32) -> (i32, i32) {
    %c0_i32 = arith.constant 0 : i32
    %c0_i32_0 = arith.constant 0 : i32
    return %arg0, %c0_i32 : i32, i32
  }
}

</mosaic_0001>

<bundles_post_ra>
// kernel: tpu_custom_call.1
= control target key start
LH: loop header
LB: loop body
LE: loop exit
PB: predicated region body
PF: predicated region fallthrough
CT: control target
= control target key end

     0   :  { %s8144_s0 = inlined_call_operand.vmem [shape: f32[2,12,32], index: 0, kind: input, shape index: {}]   ;;  %s8145_s1 = inlined_call_operand.vmem [shape: bf16[5,32,32], index: 1, kind: input, shape index: {}]   ;;  %s8146_s2 = inlined_call_operand.vmem [shape: f32[1,32], index: 2, kind: input, shape index: {}]   ;;  %s8147_s3 = inlined_call_operand.vmem [shape: f32[16,32], index: 3, kind: input, shape index: {}]   ;;  %s8148_s4 = inlined_call_operand.vmem [shape: bf16[32,32], index: 4, kind: input, shape index: {}]   ;;  %s8149_s5 = inlined_call_operand.vmem [shape: f32[1,32], index: 5, kind: input, shape index: {}]   ;;  %s8150_s6 = inlined_call_operand.vmem [shape: bf16[2,3,4,32,8], index: 6, kind: input, shape index: {}]   ;;  %s8151_s7 = inlined_call_operand.vmem [shape: f32[2,3,4,1,8], index: 7, kind: input, shape index: {}]   ;;  %s8152_s8 = inlined_call_operand.vmem [shape: bf16[2,4,8,32], index: 8, kind: input, shape index: {}]   ;;  %s8153_s9 = inlined_call_operand.vmem [shape: f32[2,1,32], index: 9, kind: input, shape index: {}]   ;;  %s8154_s10 = inlined_call_operand.vmem [shape: f32[2,1,32], index: 10, kind: input, shape index: {}]   ;;  %s8155_s11 = inlined_call_operand.vmem [shape: f32[2,1,32], index: 11, kind: input, shape index: {}]   ;;  %s8156_s12 = inlined_call_operand.vmem [shape: bf16[2,32,64], index: 12, kind: input, shape index: {}]   ;;  %s8157_s13 = inlined_call_operand.vmem [shape: f32[2,1,64], index: 13, kind: input, shape index: {}]   ;;  %s8158_s14 = inlined_call_operand.vmem [shape: bf16[2,64,32], index: 14, kind: input, shape index: {}]   ;;  %s8159_s15 = inlined_call_operand.vmem [shape: f32[2,1,32], index: 15, kind: input, shape index: {}]   ;;  %s8160_s16 = inlined_call_operand.vmem [shape: f32[2,1,32], index: 16, kind: input, shape index: {}]   ;;  %s8161_s17 = inlined_call_operand.vmem [shape: f32[2,1,32], index: 17, kind: input, shape index: {}]   ;;  %s8162_s18 = inlined_call_operand.vmem [shape: bf16[32,128], index: 18, kind: input, shape index: {}]   ;;  %s8163_s19 = inlined_call_operand.hbm [shape: f32[16,128], index: 19, kind: output, shape index: {}]  }
   0x1   :  { %8167 = sst [smem:[#allocation5_spill]] %s8144_s0 }
   0x2   :  { %8168 = sst [smem:[#allocation6_spill]] %s8145_s1 }
   0x3   :  { %8169 = sst [smem:[#allocation7_spill]] %s8146_s2 }
   0x4   :  { %8170 = sst [smem:[#allocation8_spill]] %s8147_s3 }
   0x5   :  { %s8171_s20 = sld [smem:[#allocation6_spill]]  ;;  %v6845_v1 = vmov 0.0   ;;  %vm6846_vm0 = vmmov 0   ;;  %s8172_s26 = sld [smem:[#allocation5_spill]]  ;;  %vm96_vm1 = vcmask 261120  }
   0x6   :  { %6034 = vmatprep.subr.bf16.mxu0 %v6845_v1  ;;  %6042 = vmatprep.subr.bf16.mxu1 %v6845_v1 }
   0x7   :  { %6038 = vmatprep.mubr.msk.bf16.mxu0 %vm6846_vm0, %v6845_v1  ;;  %6046 = vmatprep.mubr.msk.bf16.mxu1 %vm6846_vm0, %v6845_v1 }
   0xb   :  { %v6655_v0 = vld [vmem:[%s8171_s20 + $0x10] sm:$0xff]   ;;  %v6958_v2 = vld [vmem:[%s8171_s20] sm:$0xff]   ;;  %v6657_v3 = vld [vmem:[%s8171_s20 + $0x18] sm:$0xff]  }
   0xc   :  { %6035 = vmatpush3.bf16.msra.mxu0 %v6655_v0  ;;  %6043 = vmatpush3.bf16.msra.mxu1 %v6958_v2  ;;  %v6970_v4 = vld [vmem:[%s8171_s20 + $0x8] sm:$0xff]   ;;  %v64_v5 = vld [vmem:[%s8172_s26] sm:$0xff]  ;;  %v6986_v11 = vld [vmem:[%s8171_s20 + $0x30] sm:$0xff]  }
   0xd   :  { %6036 = vmatprep.subr.bf16.mxu0 %v6845_v1  ;;  %6044 = vmatprep.subr.bf16.mxu1 %v6845_v1  ;;  %v65_v6 = vld [vmem:[%s8172_s26 + $0x8] sm:$0xf]  ;;  %v66_v8 = vpack.c.bf16 %v64_v5, %v64_v5  ;;  %v6659_v12 = vld [vmem:[%s8171_s20 + $0x20] sm:$0xff]   ;;  %v6995_v16 = vld [vmem:[%s8171_s20 + $0x38] sm:$0xff]  }
   0xe   :  { %v71_v7 = vpack.c.bf16 %v65_v6, %v64_v5  ;;  %v5485_v19 = vld [vmem:[%s8172_s26 + $0x10] sm:$0xff]  ;;  %v5486_v20 = vld [vmem:[%s8172_s26 + $0x18] sm:$0xf]  ;;  %v6661_v21 = vld [vmem:[%s8171_s20 + $0x28] sm:$0xff]  }
   0xf   :  { %v421_v22 = vpack.c.bf16 %v5486_v20, %v5485_v19  ;;  %v6663_v28 = vld [vmem:[%s8171_s20 + $0x40] sm:$0xff]   ;;  %v6664_v33 = vld [vmem:[%s8171_s20 + $0x48] sm:$0xff]   ;;  %v420_v35 = vpack.c.bf16 %v5485_v19, %v5485_v19 }
  0x10   :  { %6037 = vmatpush3.bf16.msra.mxu0 %v6657_v3  ;;  %6045 = vmatpush3.bf16.msra.mxu1 %v6970_v4  ;;  %v78_v9 = vshrl.u32 %v71_v7, 16  ;;  %v80_v10 = vshll.u32 %v71_v7, 16  ;;  %v201_v18 = vrot.slane %v71_v7, 1  ;;  %v327_v24 = vrot.slane %v71_v7, 2 }
  0x11   :  { %6050 = vmatprep.subr.bf16.mxu0 %v6845_v1  ;;  %6058 = vmatprep.subr.bf16.mxu1 %v6845_v1  ;;  %v423_v25 = vshrl.u32 %v421_v22, 16  ;;  %v425_v26 = vshll.u32 %v421_v22, 16  ;;  %v516_v27 = vrot.slane %v421_v22, 1  ;;  %v608_v32 = vrot.slane %v421_v22, 2 }
  0x12   :  { %v82_v13 = vrot.slane %v80_v10, 1  ;;  %v263_v14 = vrot.slane %v78_v9, 1  ;;  %v264_v15 = vrot.slane %v80_v10, 2 }
  0x13   :  { %6047 = vmatmul.mubr.msk.bf16.vlgmr.msra.gmra.mrb[0].mxu1 %vm96_vm1, %v66_v8  ;;  %v427_v29 = vrot.slane %v425_v26, 1  ;;  %v561_v30 = vrot.slane %v423_v25, 1  ;;  %v562_v31 = vrot.slane %v425_v26, 2 }
  0x14   :  { %v83_v17 = vor.u32 %v82_v13, %v78_v9  ;;  %6059 = vmatpush3.bf16.msra.mxu1 %v6986_v11  ;;  %6062 = vmatprep.mubr.msk.bf16.mxu1 %vm6846_vm0, %v6845_v1  ;;  %v265_v23 = vor.u32 %v264_v15, %v263_v14 }
  0x15   :  { %6060 = vmatprep.subr.bf16.mxu1 %v6845_v1  ;;  %v428_v34 = vor.u32 %v427_v29, %v423_v25  ;;  %v563_v36 = vor.u32 %v562_v31, %v561_v30 }
  0x16   :  { %6039 = vmatmul.mubr.msk.bf16.vlgmr.msra.gmra.mrb[0].mxu0 %vm96_vm1, %v83_v17 }
  0x17   :  { %6051 = vmatpush3.bf16.msra.mxu0 %v6659_v12  ;;  %6054 = vmatprep.mubr.msk.bf16.mxu0 %vm6846_vm0, %v6845_v1 }
  0x18   :  { %6052 = vmatprep.subr.bf16.mxu0 %v6845_v1  ;;  %6061 = vmatpush3.bf16.msra.mxu1 %v6995_v16 }
  0x19   :  { %6074 = vmatprep.subr.bf16.mxu1 %v6845_v1 }
  0x1b   :  { %6053 = vmatpush3.bf16.msra.mxu0 %v6661_v21  ;;  %6063 = vmatmul.mubr.msk.bf16.vlgmr.msra.gmra.mrb[4].mxu1 %vm96_vm1, %v265_v23 }
  0x1c   :  { %6066 = vmatprep.subr.bf16.mxu0 %v6845_v1  ;;  %6075 = vmatpush3.bf16.msra.mxu1 %v6655_v0 }
  0x1d   :  { %6076 = vmatprep.subr.bf16.mxu1 %v6845_v1  ;;  %6078 = vmatprep.mubr.msk.bf16.mxu1 %vm6846_vm0, %v6845_v1 }
  0x1e   :  { %6055 = vmatmul.mubr.msk.bf16.vlgmr.msra.gmra.mrb[4].mxu0 %vm96_vm1, %v201_v18 }
  0x1f   :  { %6067 = vmatpush3.bf16.msra.mxu0 %v6663_v28  ;;  %6070 = vmatprep.mubr.msk.bf16.mxu0 %vm6846_vm0, %v6845_v1 }
  0x20   :  { %6068 = vmatprep.subr.bf16.mxu0 %v6845_v1  ;;  %6077 = vmatpush3.bf16.msra.mxu1 %v6657_v3 }
  0x21   :  { %6090 = vmatprep.subr.bf16.mxu1 %v6845_v1 }
  0x23   :  { %6069 = vmatpush3.bf16.msra.mxu0 %v6664_v33  ;;  %6079 = vmatmul.mubr.msk.bf16.vlgmr.msra.gmra.mrb[8].mxu1 %vm96_vm1, %v428_v34 }
  0x24   :  { %6082 = vmatprep.subr.bf16.mxu0 %v6845_v1  ;;  %6091 = vmatpush3.bf16.msra.mxu1 %v6659_v12 }
  0x25   :  { %6092 = vmatprep.subr.bf16.mxu1 %v6845_v1  ;;  %6094 = vmatprep.mubr.msk.bf16.mxu1 %vm6846_vm0, %v6845_v1 }
  0x26   :  { %6071 = vmatmul.mubr.msk.bf16.vlgmr.msra.gmra.mrb[8].mxu0 %vm96_vm1, %v327_v24 }
  0x27   :  { %6083 = vmatpush3.bf16.msra.mxu0 %v6958_v2  ;;  %6086 = vmatprep.mubr.msk.bf16.mxu0 %vm6846_vm0, %v6845_v1 }
  0x28   :  { %6084 = vmatprep.subr.bf16.mxu0 %v6845_v1  ;;  %6093 = vmatpush3.bf16.msra.mxu1 %v6661_v21 }
  0x29   :  { %6106 = vmatprep.subr.bf16.mxu1 %v6845_v1 }
  0x2b   :  { %6085 = vmatpush3.bf16.msra.mxu0 %v6970_v4  ;;  %6095 = vmatmul.mubr.msk.bf16.vlgmr.msra.gmra.mrb[12].mxu1 %vm96_vm1, %v516_v27 }
  0x2c   :  { %6098 = vmatprep.subr.bf16.mxu0 %v6845_v1  ;;  %6107 = vmatpush3.bf16.msra.mxu1 %v6663_v28 }
  0x2d   :  { %6108 = vmatprep.subr.bf16.mxu1 %v6845_v1  ;;  %6110 = vmatprep.mubr.msk.bf16.mxu1 %vm6846_vm0, %v6845_v1 }
  0x2e   :  { %6087 = vmatmul.mubr.msk.bf16.vlgmr.msra.gmra.mrb[12].mxu0 %vm96_vm1, %v420_v35 }
  0x2f   :  { %6099 = vmatpush3.bf16.msra.mxu0 %v6986_v11  ;;  %6102 = vmatprep.mubr.msk.bf16.mxu0 %vm6846_vm0, %v6845_v1 }
  0x30   :  { %6100 = vmatprep.subr.bf16.mxu0 %v6845_v1  ;;  %6109 = vmatpush3.bf16.msra.mxu1 %v6664_v33 }
  0x31   :  { %6122 = vmatprep.subr.bf16.mxu1 %v6845_v1 }
  0x33   :  { %6101 = vmatpush3.bf16.msra.mxu0 %v6995_v16  ;;  %6111 = vmatmul.mubr.msk.bf16.vlgmr.msra.gmra.mrb[16].mxu1 %vm96_vm1, %v608_v32 }
  0x34   :  { %6114 = vmatprep.subr.bf16.mxu0 %v6845_v1  ;;  %6126 = vmatprep.mubr.msk.bf16.mxu1 %vm6846_vm0, %v6845_v1 }
  0x36   :  { %6103 = vmatmul.mubr.msk.bf16.vlgmr.msra.gmra.mrb[16].mxu0 %vm96_vm1, %v563_v36 }
  0x37   :  { %6118 = vmatprep.mubr.msk.bf16.mxu0 %vm6846_vm0, %v6845_v1 }
  0x38   :  { %24 = vsyncpa [#allocation3], 0  ;;  %v6665_v37 = vld [vmem:[%s8148_s4] sm:$0xff]   ;;  %v6666_v38 = vld [vmem:[%s8148_s4 + $0x8] sm:$0xff]   ;;  %s8173_s2 = sld [smem:[#allocation7_spill]]  ;;  %s8174_s1 = sld [smem:[#allocation8_spill]] }
  0x39   :  { %6115 = vmatpush3.bf16.msra.mxu0 %v6665_v37  ;;  %vm1547_vm4 = vcmask 64512   ;;  %vm1610_vm5 = vcmask 1043456   ;;  %vm2967_vm6 = vcmask 523264  }
  0x3a   :  { %6116 = vmatprep.subr.bf16.mxu0 %v6845_v1 }
  0x3d   :  { %6117 = vmatpush3.bf16.msra.mxu0 %v6666_v38 }
  0x3e   :  { %6130 = vmatprep.subr.bf16.mxu0 %v6845_v1  ;;  %v5484_v62 = vld [vmem:[%s8173_s2] ss:$0 sm:$0xff] }
  0xe6   :  { %v189_v39 = vpop.f32.mrb[0].mxu1 }
  0xe7   :  { %v6048_v40 = vpop.f32.mrb[1].mxu1 }
  0xe8   :  { %v192_v41 = vpop.f32.mrb[2].mxu1 }
  0xe9   :  { %v134_v42 = vpop.f32.mrb[0].mxu0  ;;  %v6049_v43 = vpop.f32.mrb[3].mxu1 }
  0xea   :  { %v190_v44 = vadd.f32 %v189_v39, %v134_v42  ;;  %v6040_v45 = vpop.f32.mrb[1].mxu0 }
  0xeb   :  { %v137_v46 = vpop.f32.mrb[2].mxu0 }
  0xec   :  { %v6041_v47 = vpop.f32.mrb[3].mxu0 }
  0xee   :  { %v315_v48 = vpop.f32.mrb[4].mxu1 }
  0xef   :  { %v6064_v49 = vpop.f32.mrb[5].mxu1 }
  0xf0   :  { %v318_v50 = vpop.f32.mrb[6].mxu1 }
  0xf1   :  { %v251_v51 = vpop.f32.mrb[4].mxu0  ;;  %v6065_v52 = vpop.f32.mrb[7].mxu1 }
  0xf2   :  { %v257_v53 = vadd.f32 %v251_v51, %v190_v44  ;;  %v6056_v54 = vpop.f32.mrb[5].mxu0 }
  0xf3   :  { %v254_v55 = vpop.f32.mrb[6].mxu0 }
  0xf4   :  { %v321_v56 = vadd.f32 %v315_v48, %v257_v53  ;;  %v6057_v57 = vpop.f32.mrb[7].mxu0 }
  0xf6   :  { %v466_v58 = vpop.f32.mrb[8].mxu1 }
  0xf7   :  { %v6080_v59 = vpop.f32.mrb[9].mxu1 }
  0xf8   :  { %v469_v60 = vpop.f32.mrb[10].mxu1 }
  0xf9   :  { %v377_v61 = vpop.f32.mrb[8].mxu0  ;;  %v6081_v63 = vpop.f32.mrb[11].mxu1 }
  0xfa   :  { %v383_v0 = vadd.f32 %v377_v61, %v321_v56  ;;  %v6072_v2 = vpop.f32.mrb[9].mxu0 }
  0xfb   :  { %v380_v3 = vpop.f32.mrb[10].mxu0 }
  0xfc   :  { %v391_v4 = vadd.f32 %v5484_v62, %v383_v0  ;;  %v6073_v5 = vpop.f32.mrb[11].mxu0 }
  0xfe   :  { %vm392_vm2 = vcmp.ge.f32.partialorder %v391_v4, 0.0  ;;  %v393_v6 = vmul.f32 0.2, %v391_v4  ;;  %v554_v7 = vpop.f32.mrb[12].mxu1 }
  0xff   :  { %v6096_v8 = vpop.f32.mrb[13].mxu1 }
 0x100   :  { %v394_v9 = vsel %vm392_vm2, %v391_v4, %v393_v6  ;;  %v557_v10 = vpop.f32.mrb[14].mxu1 }
 0x101   :  { %v395_v11 = vsel %vm96_vm1, %v394_v9, 0.0  ;;  %v509_v12 = vpop.f32.mrb[12].mxu0  ;;  %v6097_v13 = vpop.f32.mrb[15].mxu1 }
 0x102   :  { %v396_v14 = vrot.slane %v395_v11, 4  ;;  %v510_v15 = vadd.f32 %v509_v12, %v466_v58  ;;  %v6088_v16 = vpop.f32.mrb[13].mxu0  ;;  %v6668_v12 = vld [vmem:[%s8150_s6 + $0x40] sm:$0xff]   ;;  %v6669_v13 = vld [vmem:[%s8150_s6 + $0x8] sm:$0xff]  }
 0x103   :  { %v512_v17 = vpop.f32.mrb[14].mxu0 }
 0x104   :  { %v397_v18 = vadd.f32 %v396_v14, %v395_v11  ;;  %v560_v19 = vadd.f32 %v554_v7, %v510_v15  ;;  %v6089_v20 = vpop.f32.mrb[15].mxu0  ;;  %v6667_v11 = vld [vmem:[%s8150_s6] sm:$0xff]   ;;  %v6670_v14 = vld [vmem:[%s8150_s6 + $0x48] sm:$0xff]  }
 0x105   :  { %6123 = vmatpush3.bf16.msra.mxu1 %v6667_v11  ;;  %v5492_v15 = vld [vmem:[%s8149_s5] ss:$0 sm:$0xff] }
 0x106   :  { %v398_v21 = vrot.slane %v397_v18, 2  ;;  %v646_v22 = vpop.f32.mrb[16].mxu1  ;;  %6124 = vmatprep.subr.bf16.mxu1 %v6845_v1 }
 0x107   :  { %v6112_v23 = vpop.f32.mrb[17].mxu1 }
 0x108   :  { %v399_v24 = vadd.f32 %v398_v21, %v397_v18  ;;  %v649_v25 = vpop.f32.mrb[18].mxu1  ;;  %v747_v21 = vld [vmem:[%s8174_s1 + $0x8] sm:$0xff] }
 0x109   :  { %v601_v26 = vpop.f32.mrb[16].mxu0  ;;  %v6113_v27 = vpop.f32.mrb[19].mxu1  ;;  %6125 = vmatpush3.bf16.msra.mxu1 %v6669_v13 }
 0x10a   :  { %v400_v28 = vrot.slane %v399_v24, 1  ;;  %v607_v29 = vadd.f32 %v601_v26, %v560_v19  ;;  %v6104_v30 = vpop.f32.mrb[17].mxu0  ;;  %6138 = vmatprep.subr.bf16.mxu1 %v6845_v1  ;;  %v746_v19 = vld [vmem:[%s8174_s1] sm:$0xff]  ;;  %v6672_v27 = vld [vmem:[%s8150_s6 + $0x10] sm:$0xff]  }
 0x10b   :  { %v604_v31 = vpop.f32.mrb[18].mxu0  ;;  %v6671_v26 = vld [vmem:[%s8150_s6 + $0x80] sm:$0xff]   ;;  %v6674_v30 = vld [vmem:[%s8150_s6 + $0x18] sm:$0xff]  }
 0x10c   :  { %v401_v32 = vadd.f32 %v400_v28, %v399_v24  ;;  %v652_v33 = vadd.f32 %v646_v22, %v607_v29  ;;  %v6105_v34 = vpop.f32.mrb[19].mxu0  ;;  %v6673_v29 = vld [vmem:[%s8150_s6 + $0x88] sm:$0xff]   ;;  %v6675_v31 = vld [vmem:[%s8150_s6 + $0x50] sm:$0xff]  }
 0x10d   :  { %v6678_v34 = vld [vmem:[%s8150_s6 + $0x98] sm:$0xff]  }
 0x10e   :  { %v403_v35 = vmul.f32 0.125, %v401_v32  ;;  %v653_v36 = vadd.f32 %v5484_v62, %v652_v33  ;;  %v6676_v32 = vld [vmem:[%s8150_s6 + $0x90] sm:$0xff]   ;;  %v6677_v33 = vld [vmem:[%s8150_s6 + $0x58] sm:$0xff]  }
 0x110   :  { %v404_v37 = vsub.f32 %v394_v9, %v403_v35  ;;  %vm654_vm3 = vcmp.ge.f32.partialorder %v653_v36, 0.0  ;;  %v655_v38 = vmul.f32 0.2, %v653_v36  ;;  %v6679_v35 = vld [vmem:[%s8150_s6 + $0x20] sm:$0xff]  }
 0x112   :  { %v405_v39 = vmul.f32 %v404_v37, %v404_v37  ;;  %v656_v40 = vsel %vm654_vm3, %v653_v36, %v655_v38  ;;  %v6680_v36 = vld [vmem:[%s8150_s6 + $0x60] sm:$0xff]   ;;  %v6682_v38 = vld [vmem:[%s8150_s6 + $0x68] sm:$0xff]  }
 0x113   :  { %v657_v41 = vsel %vm96_vm1, %v656_v40, 0.0 }
 0x114   :  { %v406_v42 = vsel %vm96_vm1, %v405_v39, 0.0  ;;  %v658_v43 = vrot.slane %v657_v41, 4  ;;  %v6683_v39 = vld [vmem:[%s8150_s6 + $0xa0] sm:$0xff]  }
 0x115   :  { %v407_v44 = vrot.slane %v406_v42, 4 }
 0x116   :  { %v659_v45 = vadd.f32 %v658_v43, %v657_v41  ;;  %v6685_v41 = vld [vmem:[%s8150_s6 + $0xa8] sm:$0xff]   ;;  %v6687_v43 = vld [vmem:[%s8150_s6 + $0x70] sm:$0xff]  }
 0x117   :  { %v408_v47 = vadd.f32 %v407_v44, %v406_v42  ;;  %v6686_v42 = vld [vmem:[%s8150_s6 + $0x38] sm:$0xff]   ;;  %v6688_v44 = vld [vmem:[%s8150_s6 + $0xb0] sm:$0xff]  }
 0x118   :  { %v660_v46 = vrot.slane %v659_v45, 2 }
 0x119   :  { %v409_v50 = vrot.slane %v408_v47, 2 }
 0x11a   :  { %v661_v48 = vadd.f32 %v660_v46, %v659_v45  ;;  %v6689_v45 = vld [vmem:[%s8150_s6 + $0x78] sm:$0xff]  }
 0x11b   :  { %v410_v53 = vadd.f32 %v409_v50, %v408_v47  ;;  %v6690_v46 = vld [vmem:[%s8150_s6 + $0xb8] sm:$0xff]   ;;  %v5505_v47 = vld [vmem:[%s8151_s7 + $0x4] ss:$0 sm:$0xff] }
 0x11c   :  { %v662_v49 = vrot.slane %v661_v48, 1 }
 0x11d   :  { %v411_v56 = vrot.slane %v410_v53, 1 }
 0x11e   :  { %v663_v51 = vadd.f32 %v662_v49, %v661_v48 }
 0x11f   :  { %v412_v59 = vadd.f32 %v411_v56, %v410_v53  ;;  %v5496_v53 = vld [vmem:[%s8151_s7] ss:$0 sm:$0xff] }
 0x120   :  { %v664_v52 = vmul.f32 0.125, %v663_v51 }
 0x121   :  { %v413_v62 = vmul.f32 0.125, %v412_v59 }
 0x122   :  { %v665_v54 = vsub.f32 %v656_v40, %v664_v52  ;;  %v6684_v40 = vld [vmem:[%s8150_s6 + $0x30] sm:$0xff]  }
 0x123   :  { %v414_v2 = vadd.f32 1e-05, %v413_v62  ;;  %v5514_v62 = vld [vmem:[%s8151_s7 + $0x8] ss:$0 sm:$0xff] }
 0x124   :  { %v666_v55 = vmul.f32 %v665_v54, %v665_v54 }
 0x125   :  { %6729 = vrsqrt.f32 %v414_v2 }
 0x126   :  { %v667_v57 = vsel %vm96_vm1, %v666_v55, 0.0 }
 0x127   :  { %v668_v58 = vrot.slane %v667_v57, 4 }
 0x129   :  { %v669_v60 = vadd.f32 %v668_v58, %v667_v57 }
 0x12b   :  { %v670_v61 = vrot.slane %v669_v60, 2 }
 0x12d   :  { %v671_v63 = vadd.f32 %v670_v61, %v669_v60 }
 0x12f   :  { %v672_v0 = vrot.slane %v671_v63, 1  ;;  %v6730_v6 = vpop.eup %6729 }
 0x130   :  { %v416_v8 = vmul.f32 %v6730_v6, %v404_v37  ;;  %v6681_v37 = vld [vmem:[%s8150_s6 + $0x28] sm:$0xff]   ;;  %v5523_v6 = vld [vmem:[%s8151_s7 + $0x1] ss:$0 sm:$0xff] }
 0x131   :  { %v673_v3 = vadd.f32 %v672_v0, %v671_v63 }
 0x133   :  { %v674_v4 = vmul.f32 0.125, %v673_v3 }
 0x135   :  { %v675_v5 = vadd.f32 1e-05, %v674_v4 }
 0x137   :  { %6731 = vrsqrt.f32 %v675_v5 }
 0x141   :  { %v6732_v7 = vpop.eup %6731 }
 0x142   :  { %v677_v9 = vmul.f32 %v6732_v7, %v665_v54 }
 0x144   :  { %v678_v10 = vpack.c.bf16 %v677_v9, %v416_v8 }
 0x146   :  { %6119 = vmatmul.mubr.msk.bf16.vlgmr.msra.gmra.mrb[20].mxu0 %vm96_vm1, %v678_v10 }
 0x147   :  { %6134 = vmatprep.mubr.msk.bf16.mxu0 %vm6846_vm0, %v6845_v1  ;;  %6131 = vmatpush3.bf16.msra.mxu0 %v6668_v12 }
 0x148   :  { %6132 = vmatprep.subr.bf16.mxu0 %v6845_v1 }
 0x14b   :  { %6133 = vmatpush3.bf16.msra.mxu0 %v6670_v14 }
 0x14c   :  { %6146 = vmatprep.subr.bf16.mxu0 %v6845_v1 }
 0x219   :  { %v739_v16 = vpop.f32.mrb[20].mxu0 }
 0x21a   :  { %v740_v17 = vadd.f32 %v5492_v15, %v739_v16  ;;  %v6120_v18 = vpop.f32.mrb[21].mxu0  ;;  %v5532_v16 = vld [vmem:[%s8151_s7 + $0x5] ss:$0 sm:$0xff] }
 0x21b   :  { %v742_v20 = vpop.f32.mrb[22].mxu0 }
 0x21c   :  { %v743_v22 = vadd.f32 %v5492_v15, %v742_v20  ;;  %v6121_v23 = vpop.f32.mrb[23].mxu0  ;;  %v7107_v24 = vadd.f32 %v746_v19, %v740_v17 }
 0x21e   :  { %v7109_v25 = vadd.f32 %v747_v21, %v743_v22  ;;  %v7278_v22 = vld [vmem:[%s8151_s7 + $0x9] ss:$0 sm:$0xff] }
 0x220   :  { %v7119_v28 = vpack.c.bf16 %v7109_v25, %v7107_v24 }
 0x222   :  { %6127 = vmatmul.mubr.msk.bf16.vlgmr.msra.gmra.mrb[20].mxu1 %vm96_vm1, %v7119_v28  ;;  %6135 = vmatmul.mubr.msk.bf16.vlgmr.msra.gmra.mrb[24].mxu0 %vm96_vm1, %v7119_v28 }
 0x223   :  { %6139 = vmatpush3.bf16.msra.mxu1 %v6671_v26  ;;  %6147 = vmatpush3.bf16.msra.mxu0 %v6672_v27 }
 0x224   :  { %6140 = vmatprep.subr.bf16.mxu1 %v6845_v1  ;;  %6148 = vmatprep.subr.bf16.mxu0 %v6845_v1 }
 0x225   :  { %6142 = vmatprep.mubr.msk.bf16.mxu1 %vm6846_vm0, %v6845_v1  ;;  %6150 = vmatprep.mubr.msk.bf16.mxu0 %vm6846_vm0, %v6845_v1 }
 0x227   :  { %6141 = vmatpush3.bf16.msra.mxu1 %v6673_v29  ;;  %6149 = vmatpush3.bf16.msra.mxu0 %v6674_v30 }
 0x228   :  { %6154 = vmatprep.subr.bf16.mxu1 %v6845_v1  ;;  %6162 = vmatprep.subr.bf16.mxu0 %v6845_v1 }
 0x22a   :  { %6143 = vmatmul.mubr.msk.bf16.vlgmr.msra.gmra.mrb[24].mxu1 %vm96_vm1, %v7119_v28  ;;  %6151 = vmatmul.mubr.msk.bf16.vlgmr.msra.gmra.mrb[28].mxu0 %vm96_vm1, %v7119_v28 }
 0x22b   :  { %6155 = vmatpush3.bf16.msra.mxu1 %v6675_v31  ;;  %6163 = vmatpush3.bf16.msra.mxu0 %v6676_v32 }
 0x22c   :  { %6156 = vmatprep.subr.bf16.mxu1 %v6845_v1  ;;  %6164 = vmatprep.subr.bf16.mxu0 %v6845_v1 }
 0x22d   :  { %6158 = vmatprep.mubr.msk.bf16.mxu1 %vm6846_vm0, %v6845_v1  ;;  %6166 = vmatprep.mubr.msk.bf16.mxu0 %vm6846_vm0, %v6845_v1 }
 0x22f   :  { %6157 = vmatpush3.bf16.msra.mxu1 %v6677_v33  ;;  %6165 = vmatpush3.bf16.msra.mxu0 %v6678_v34 }
 0x230   :  { %6170 = vmatprep.subr.bf16.mxu1 %v6845_v1  ;;  %6178 = vmatprep.subr.bf16.mxu0 %v6845_v1 }
 0x232   :  { %6159 = vmatmul.mubr.msk.bf16.vlgmr.msra.gmra.mrb[28].mxu1 %vm96_vm1, %v7119_v28  ;;  %6167 = vmatmul.mubr.msk.bf16.vlgmr.msra.gmra.mrb[32].mxu0 %vm96_vm1, %v7119_v28 }
 0x233   :  { %6171 = vmatpush3.bf16.msra.mxu1 %v6679_v35  ;;  %6179 = vmatpush3.bf16.msra.mxu0 %v6680_v36 }
 0x234   :  { %6172 = vmatprep.subr.bf16.mxu1 %v6845_v1  ;;  %6180 = vmatprep.subr.bf16.mxu0 %v6845_v1 }
 0x235   :  { %6174 = vmatprep.mubr.msk.bf16.mxu1 %vm6846_vm0, %v6845_v1  ;;  %6182 = vmatprep.mubr.msk.bf16.mxu0 %vm6846_vm0, %v6845_v1 }
 0x237   :  { %6173 = vmatpush3.bf16.msra.mxu1 %v6681_v37  ;;  %6181 = vmatpush3.bf16.msra.mxu0 %v6682_v38  ;;  %v7294_v38 = vld [vmem:[%s8151_s7 + $0x2] ss:$0 sm:$0xff] }
 0x238   :  { %6186 = vmatprep.subr.bf16.mxu1 %v6845_v1  ;;  %6194 = vmatprep.subr.bf16.mxu0 %v6845_v1 }
 0x23a   :  { %6175 = vmatmul.mubr.msk.bf16.vlgmr.msra.gmra.mrb[32].mxu1 %vm96_vm1, %v7119_v28  ;;  %6183 = vmatmul.mubr.msk.bf16.vlgmr.msra.gmra.mrb[36].mxu0 %vm96_vm1, %v7119_v28 }
 0x23b   :  { %6187 = vmatpush3.bf16.msra.mxu1 %v6683_v39  ;;  %6195 = vmatpush3.bf16.msra.mxu0 %v6684_v40  ;;  %v7299_v39 = vld [vmem:[%s8151_s7 + $0x6] ss:$0 sm:$0xff] }
 0x23c   :  { %6188 = vmatprep.subr.bf16.mxu1 %v6845_v1  ;;  %6196 = vmatprep.subr.bf16.mxu0 %v6845_v1 }
 0x23d   :  { %6190 = vmatprep.mubr.msk.bf16.mxu1 %vm6846_vm0, %v6845_v1  ;;  %6198 = vmatprep.mubr.msk.bf16.mxu0 %vm6846_vm0, %v6845_v1 }
 0x23f   :  { %6189 = vmatpush3.bf16.msra.mxu1 %v6685_v41  ;;  %6197 = vmatpush3.bf16.msra.mxu0 %v6686_v42 }
 0x240   :  { %6202 = vmatprep.subr.bf16.mxu1 %v6845_v1  ;;  %6210 = vmatprep.subr.bf16.mxu0 %v6845_v1 }
 0x242   :  { %6191 = vmatmul.mubr.msk.bf16.vlgmr.msra.gmra.mrb[36].mxu1 %vm96_vm1, %v7119_v28  ;;  %6199 = vmatmul.mubr.msk.bf16.vlgmr.msra.gmra.mrb[40].mxu0 %vm96_vm1, %v7119_v28 }
 0x243   :  { %6203 = vmatpush3.bf16.msra.mxu1 %v6687_v43  ;;  %6211 = vmatpush3.bf16.msra.mxu0 %v6688_v44 }
 0x244   :  { %6204 = vmatprep.subr.bf16.mxu1 %v6845_v1  ;;  %6212 = vmatprep.subr.bf16.mxu0 %v6845_v1 }
 0x245   :  { %6206 = vmatprep.mubr.msk.bf16.mxu1 %vm6846_vm0, %v6845_v1  ;;  %6214 = vmatprep.mubr.msk.bf16.mxu0 %vm6846_vm0, %v6845_v1 }
 0x247   :  { %6205 = vmatpush3.bf16.msra.mxu1 %v6689_v45  ;;  %6213 = vmatpush3.bf16.msra.mxu0 %v6690_v46 }
 0x248   :  { %6218 = vmatprep.subr.bf16.mxu1 %v6845_v1  ;;  %6224 = vmatprep.subr.bf16.mxu0 %v6845_v1 }
 0x24a   :  { %6207 = vmatmul.mubr.msk.bf16.vlgmr.msra.gmra.mrb[40].mxu1 %vm96_vm1, %v7119_v28  ;;  %6215 = vmatmul.mubr.msk.bf16.vlgmr.msra.gmra.mrb[44].mxu0 %vm96_vm1, %v7119_v28 }
 0x24b   :  { %6220 = vmatprep.mubr.msk.bf16.mxu1 %vm6846_vm0, %v6845_v1  ;;  %6226 = vmatprep.mubr.msk.bf16.mxu0 %vm6846_vm0, %v6845_v1 }
 0x2f5   :  { %v811_v48 = vpop.f32.mrb[20].mxu1  ;;  %v877_v49 = vpop.f32.mrb[24].mxu0 }
 0x2f6   :  { %v878_v50 = vadd.f32 %v5505_v47, %v877_v49  ;;  %v6128_v51 = vpop.f32.mrb[21].mxu1  ;;  %v6136_v52 = vpop.f32.mrb[25].mxu0  ;;  %v812_v63 = vadd.f32 %v5496_v53, %v811_v48 }
 0x2f7   :  { %v814_v54 = vpop.f32.mrb[22].mxu1  ;;  %v880_v55 = vpop.f32.mrb[26].mxu0  ;;  %v7317_v51 = vld [vmem:[%s8151_s7 + $0xa] ss:$0 sm:$0xff]  ;;  %v7322_v52 = vld [vmem:[%s8151_s7 + $0x3] ss:$0 sm:$0xff] }
 0x2f8   :  { %v1545_v56 = vpack.c.bf16 %v878_v50, %v878_v50  ;;  %v7249_v57 = vadd.f32 %v5496_v53, %v814_v54  ;;  %v7251_v58 = vadd.f32 %v5505_v47, %v880_v55  ;;  %v6129_v59 = vpop.f32.mrb[23].mxu1  ;;  %v6137_v60 = vpop.f32.mrb[27].mxu0  ;;  %v1544_v9 = vpack.c.bf16 %v812_v63, %v812_v63 }
 0x2fa   :  { %v1552_v61 = vsel %vm1547_vm4, %v1545_v56, 0 }
 0x2fb   :  { %6219 = vmatpush3.bf16.xpose.msra.mxu1 %v1552_v61 }
 0x2fc   :  { %6230 = vmatprep.subr.bf16.mxu1 %v6845_v1 }
 0x2fd   :  { %v943_v0 = vpop.f32.mrb[24].mxu1  ;;  %v1009_v2 = vpop.f32.mrb[28].mxu0 }
 0x2fe   :  { %v944_v3 = vadd.f32 %v5514_v62, %v943_v0  ;;  %v6144_v4 = vpop.f32.mrb[25].mxu1  ;;  %v6152_v5 = vpop.f32.mrb[29].mxu0  ;;  %v1010_v33 = vadd.f32 %v5523_v6, %v1009_v2  ;;  %v7337_v2 = vld [vmem:[%s8151_s7 + $0x7] ss:$0 sm:$0xff] }
 0x2ff   :  { %v946_v7 = vpop.f32.mrb[26].mxu1  ;;  %v1012_v8 = vpop.f32.mrb[30].mxu0 }
 0x300   :  { %v1546_v10 = vpack.c.bf16 %v944_v3, %v944_v3  ;;  %v7261_v11 = vadd.f32 %v5514_v62, %v946_v7  ;;  %v7263_v12 = vadd.f32 %v5523_v6, %v1012_v8  ;;  %v6145_v13 = vpop.f32.mrb[27].mxu1  ;;  %v6153_v14 = vpop.f32.mrb[31].mxu0  ;;  %v1656_v42 = vpack.c.bf16 %v1010_v33, %v1010_v33  ;;  %v7342_v3 = vld [vmem:[%s8151_s7 + $0xb] ss:$0 sm:$0xff] }
 0x302   :  { %v1612_v15 = vsel %vm1610_vm5, %v1546_v10, 0  ;;  %6221 = vmatmul.mubr.msk.bf16.vlgmr.msra.gmra.mrb[44].mxu1 %vm1547_vm4, %v1544_v9 }
 0x303   :  { %6225 = vmatpush3.bf16.msra.mxu0 %v1612_v15  ;;  %6232 = vmatprep.mubr.msk.bf16.mxu1 %vm6846_vm0, %v6845_v1 }
 0x304   :  { %6236 = vmatprep.subr.bf16.mxu0 %v6845_v1 }
 0x305   :  { %v1075_v17 = vpop.f32.mrb[28].mxu1  ;;  %v7273_v18 = vpop.f32.mrb[32].mxu0 }
 0x306   :  { %v1076_v19 = vadd.f32 %v5532_v16, %v1075_v17  ;;  %v6160_v20 = vpop.f32.mrb[29].mxu1  ;;  %v6168_v21 = vpop.f32.mrb[33].mxu0 }
 0x307   :  { %v1078_v23 = vpop.f32.mrb[30].mxu1  ;;  %v1144_v26 = vpop.f32.mrb[34].mxu0 }
 0x308   :  { %v1657_v27 = vpack.c.bf16 %v1076_v19, %v1076_v19  ;;  %v7280_v28 = vadd.f32 %v5532_v16, %v1078_v23  ;;  %v7283_v29 = vadd.f32 %v7278_v22, %v1144_v26  ;;  %v6161_v30 = vpop.f32.mrb[31].mxu1  ;;  %v6169_v31 = vpop.f32.mrb[35].mxu0 }
 0x30a   :  { %v1663_v32 = vsel %vm1547_vm4, %v1657_v27, 0 }
 0x30b   :  { %6231 = vmatpush3.bf16.xpose.msra.mxu1 %v1663_v32 }
 0x30c   :  { %6242 = vmatprep.subr.bf16.mxu1 %v6845_v1 }
 0x30d   :  { %v7287_v34 = vpop.f32.mrb[32].mxu1  ;;  %v7289_v35 = vpop.f32.mrb[36].mxu0 }
 0x30e   :  { %v6176_v36 = vpop.f32.mrb[33].mxu1  ;;  %v6184_v37 = vpop.f32.mrb[37].mxu0 }
 0x30f   :  { %v1210_v40 = vpop.f32.mrb[34].mxu1  ;;  %v1276_v41 = vpop.f32.mrb[38].mxu0 }
 0x310   :  { %v7302_v43 = vadd.f32 %v7294_v38, %v1210_v40  ;;  %v7305_v44 = vadd.f32 %v7299_v39, %v1276_v41  ;;  %v6177_v45 = vpop.f32.mrb[35].mxu1  ;;  %v6185_v46 = vpop.f32.mrb[39].mxu0 }
 0x312   :  { %6233 = vmatmul.mubr.msk.bf16.vlgmr.msra.gmra.mrb[48].mxu1 %vm1547_vm4, %v1656_v42 }
 0x313   :  { %6244 = vmatprep.mubr.msk.bf16.mxu1 %vm6846_vm0, %v6845_v1 }
 0x315   :  { %v7310_v47 = vpop.f32.mrb[36].mxu1  ;;  %v7312_v48 = vpop.f32.mrb[40].mxu0 }
 0x316   :  { %v6192_v49 = vpop.f32.mrb[37].mxu1  ;;  %v6200_v50 = vpop.f32.mrb[41].mxu0 }
 0x317   :  { %v1342_v53 = vpop.f32.mrb[38].mxu1  ;;  %v1408_v54 = vpop.f32.mrb[42].mxu0  ;;  %v1142_v49 = vadd.f32 %v7278_v22, %v7273_v18  ;;  %v1655_v18 = vld [vmem:[%s8152_s8] sm:$0xf] }
 0x318   :  { %v7325_v55 = vadd.f32 %v7317_v51, %v1342_v53  ;;  %v7328_v56 = vadd.f32 %v7322_v52, %v1408_v54  ;;  %v6193_v59 = vpop.f32.mrb[39].mxu1  ;;  %v6201_v60 = vpop.f32.mrb[43].mxu0 }
 0x319   :  { %v1658_v53 = vpack.c.bf16 %v1142_v49, %v1142_v49 }
 0x31b   :  { %v1722_v60 = vsel %vm1610_vm5, %v1658_v53, 0 }
 0x31d   :  { %v7330_v61 = vpop.f32.mrb[40].mxu1  ;;  %v7332_v62 = vpop.f32.mrb[44].mxu0 }
 0x31e   :  { %v6208_v63 = vpop.f32.mrb[41].mxu1  ;;  %v6216_v0 = vpop.f32.mrb[45].mxu0 }
 0x31f   :  { %v1474_v4 = vpop.f32.mrb[42].mxu1  ;;  %v1540_v5 = vpop.f32.mrb[46].mxu0 }
 0x320   :  { %v7345_v6 = vadd.f32 %v7337_v2, %v1474_v4  ;;  %v7348_v7 = vadd.f32 %v7342_v3, %v1540_v5  ;;  %v6209_v8 = vpop.f32.mrb[43].mxu1  ;;  %v6217_v9 = vpop.f32.mrb[47].mxu0  ;;  %v7365_v5 = vsel %vm1610_vm5, %v1655_v18, 0 }
 0x321   :  { %v5603_v8 = vld [vmem:[%s8152_s8 + $0x4] sm:$0xf] }
 0x322   :  { %v7376_v9 = vsel %vm1610_vm5, %v5603_v8, 0 }
 0x323   :  { %6243 = vmatpush3.bf16.msra.mxu1 %v7376_v9 }
 0x324   :  { %6254 = vmatprep.subr.bf16.mxu1 %v6845_v1 }
 0x3d5   :  { %v1588_v10 = vpop.f32.mrb[44].mxu1 }
 0x3d6   :  { %v1594_v13 = vmul.f32 0.35355338, %v1588_v10  ;;  %v6222_v14 = vpop.f32.mrb[45].mxu1  ;;  %v1340_v10 = vadd.f32 %v7317_v51, %v7310_v47 }
 0x3d7   :  { %v1591_v15 = vpop.f32.mrb[46].mxu1 }
 0x3d8   :  { %v6223_v16 = vpop.f32.mrb[47].mxu1  ;;  %v1595_v17 = vsel %vm1547_vm4, %v1594_v13, -inf }
 0x3d9   :  { %1596 = vmax.xlane.f32.xlu0 %v1595_v17 }
 0x3e5   :  { %v1699_v19 = vpop.f32.mrb[48].mxu1 }
 0x3e6   :  { %v1705_v20 = vmul.f32 0.35355338, %v1699_v19  ;;  %v6234_v21 = vpop.f32.mrb[49].mxu1 }
 0x3e7   :  { %v1702_v23 = vpop.f32.mrb[50].mxu1  ;;  %v1274_v21 = vadd.f32 %v7299_v39, %v7289_v35 }
 0x3e8   :  { %v6235_v26 = vpop.f32.mrb[51].mxu1  ;;  %v1706_v27 = vsel %vm1547_vm4, %v1705_v20, -inf }
 0x3e9   :  { %1707 = vmax.xlane.f32.xlu0 %v1706_v27  ;;  %v1860_v47 = vpack.c.bf16 %v1274_v21, %v1274_v21 }
 0x466   :  { %v1597_v30 = vpop.xlane.xlu0 %1596 }
 0x467   :  { %v1598_v31 = vsub.f32 %v1594_v13, %v1597_v30  ;;  %v1861_v13 = vpack.c.bf16 %v1340_v10, %v1340_v10  ;;  %v1866_v30 = vsel %vm1547_vm4, %v1860_v47, 0  ;;  %v1472_v10 = vadd.f32 %v7337_v2, %v7330_v61 }
 0x468   :  { %v1538_v61 = vadd.f32 %v7342_v3, %v7332_v62 }
 0x469   :  { %v1599_v32 = vmul.f32 1.442695, %v1598_v31  ;;  %v1925_v19 = vsel %vm1610_vm5, %v1861_v13, 0 }
 0x46a   :  { %v2019_v2 = vpack.c.bf16 %v1538_v61, %v1538_v61 }
 0x46b   :  { %6733 = vpow2.f32 %v1599_v32  ;;  %v1208_v32 = vadd.f32 %v7294_v38, %v7287_v34 }
 0x46d   :  { %v1859_v35 = vpack.c.bf16 %v1208_v32, %v1208_v32 }
 0x475   :  { %v6734_v33 = vpop.eup %6733 }
 0x476   :  { %v1708_v36 = vpop.xlane.xlu0 %1707  ;;  %v1601_v37 = vsel %vm1547_vm4, %v6734_v33, 0.0 }
 0x477   :  { %v1709_v40 = vsub.f32 %v1705_v20, %v1708_v36  ;;  %1602 = vadd.xlane.f32.xlu1 %v1601_v37 }
 0x479   :  { %v1710_v41 = vmul.f32 1.442695, %v1709_v40 }
 0x47b   :  { %6735 = vpow2.f32 %v1710_v41 }
 0x485   :  { %v6736_v42 = vpop.eup %6735 }
 0x486   :  { %v1712_v45 = vsel %vm1547_vm4, %v6736_v42, 0.0 }
 0x487   :  { %1713 = vadd.xlane.f32.xlu1 %v1712_v45 }
 0x504   :  { %v1603_v46 = vpop.xlane.xlu1 %1602 }
 0x505   :  { %6737 = vrcp.f32 %v1603_v46 }
 0x50f   :  { %v6738_v50 = vpop.eup %6737 }
 0x510   :  { %v1605_v54 = vmul.f32 %v6738_v50, %v6734_v33 }
 0x512   :  { %v1606_v59 = vpack.c.bf16 %v1605_v54, %v1605_v54 }
 0x514   :  { %6227 = vmatmul.mubr.msk.bf16.vlgmr.msra.gmra.mrb[48].mxu0 %vm1547_vm4, %v1606_v59  ;;  %v1714_v63 = vpop.xlane.xlu1 %1713 }
 0x515   :  { %6237 = vmatpush3.bf16.msra.mxu0 %v1722_v60  ;;  %6739 = vrcp.f32 %v1714_v63  ;;  %6238 = vmatprep.mubr.msk.bf16.mxu0 %vm6846_vm0, %v6845_v1 }
 0x516   :  { %6248 = vmatprep.subr.bf16.mxu0 %v6845_v1 }
 0x51f   :  { %v6740_v0 = vpop.eup %6739 }
 0x520   :  { %v1716_v22 = vmul.f32 %v6740_v0, %v6736_v42 }
 0x522   :  { %v1717_v4 = vpack.c.bf16 %v1716_v22, %v1716_v22  ;;  %v5608_v22 = vld [vmem:[%s8152_s8 + $0x8] sm:$0xf] }
 0x524   :  { %6239 = vmatmul.mubr.msk.bf16.vlgmr.msra.gmra.mrb[52].mxu0 %vm1547_vm4, %v1717_v4  ;;  %v7407_v4 = vsel %vm1610_vm5, %v5608_v22, 0 }
 0x525   :  { %6249 = vmatpush3.bf16.msra.mxu0 %v7365_v5  ;;  %6250 = vmatprep.mubr.msk.bf16.mxu0 %vm6846_vm0, %v6845_v1 }
 0x526   :  { %6260 = vmatprep.subr.bf16.mxu0 %v6845_v1 }
 0x5e7   :  { %v1648_v14 = vpop.f32.mrb[48].mxu0 }
 0x5e8   :  { %v1654_v15 = vpack.c.bf16 %v1648_v14, %v1648_v14  ;;  %v6228_v16 = vpop.f32.mrb[49].mxu0  ;;  %v2018_v14 = vpack.c.bf16 %v1472_v10, %v1472_v10 }
 0x5e9   :  { %v1651_v17 = vpop.f32.mrb[50].mxu0 }
 0x5ea   :  { %v6229_v20 = vpop.f32.mrb[51].mxu0  ;;  %6251 = vmatmul.mubr.msk.bf16.vlgmr.msra.gmra.mrb[56].mxu0 %vm1547_vm4, %v1654_v15  ;;  %v2024_v17 = vsel %vm1547_vm4, %v2018_v14, 0 }
 0x5eb   :  { %6261 = vmatpush3.bf16.msra.mxu0 %v1925_v19  ;;  %6262 = vmatprep.mubr.msk.bf16.mxu0 %vm6846_vm0, %v6845_v1  ;;  %v1406_v19 = vadd.f32 %v7322_v52, %v7312_v48 }
 0x5ec   :  { %6272 = vmatprep.subr.bf16.mxu0 %v6845_v1 }
 0x5ed   :  { %v2017_v20 = vpack.c.bf16 %v1406_v19, %v1406_v19 }
 0x5f7   :  { %v1758_v51 = vpop.f32.mrb[52].mxu0 }
 0x5f8   :  { %v1764_v23 = vpack.c.bf16 %v1758_v51, %v1758_v51  ;;  %v6240_v26 = vpop.f32.mrb[53].mxu0 }
 0x5f9   :  { %v1761_v27 = vpop.f32.mrb[54].mxu0  ;;  %v2083_v26 = vsel %vm1610_vm5, %v2019_v2, 0 }
 0x5fa   :  { %v6241_v31 = vpop.f32.mrb[55].mxu0  ;;  %6245 = vmatmul.mubr.msk.bf16.vlgmr.msra.gmra.mrb[52].mxu1 %vm1547_vm4, %v1764_v23 }
 0x5fb   :  { %6255 = vmatpush3.bf16.xpose.msra.mxu1 %v1866_v30  ;;  %6256 = vmatprep.mubr.msk.bf16.mxu1 %vm6846_vm0, %v6845_v1 }
 0x5fc   :  { %6266 = vmatprep.subr.bf16.mxu1 %v6845_v1 }
 0x602   :  { %6257 = vmatmul.mubr.msk.bf16.vlgmr.msra.gmra.mrb[56].mxu1 %vm1547_vm4, %v1859_v35 }
 0x603   :  { %6268 = vmatprep.mubr.msk.bf16.mxu1 %vm6846_vm0, %v6845_v1  ;;  %6267 = vmatpush3.bf16.msra.mxu1 %v7407_v4 }
 0x604   :  { %6278 = vmatprep.subr.bf16.mxu1 %v6845_v1 }
 0x6bd   :  { %v1853_v39 = vpop.f32.mrb[56].mxu0 }
 0x6be   :  { %v6252_v33 = vpop.f32.mrb[57].mxu0 }
 0x6bf   :  { %v1856_v36 = vpop.f32.mrb[58].mxu0 }
 0x6c0   :  { %v6253_v37 = vpop.f32.mrb[59].mxu0 }
 0x6cd   :  { %v1807_v40 = vpop.f32.mrb[52].mxu1 }
 0x6ce   :  { %v7399_v41 = vadd.f32 %v1853_v39, %v1807_v40  ;;  %v6246_v42 = vpop.f32.mrb[53].mxu1 }
 0x6cf   :  { %v1810_v45 = vpop.f32.mrb[54].mxu1 }
 0x6d0   :  { %v6247_v46 = vpop.f32.mrb[55].mxu1  ;;  %v5612_v45 = vld [vmem:[%s8152_s8 + $0xc] sm:$0xf] }
 0x6d5   :  { %v1902_v49 = vpop.f32.mrb[56].mxu1 }
 0x6d6   :  { %v1908_v34 = vmul.f32 0.35355338, %v1902_v49  ;;  %v6258_v38 = vpop.f32.mrb[57].mxu1  ;;  %v7439_v49 = vsel %vm1610_vm5, %v5612_v45, 0  ;;  %v2286_v45 = vpack.c.bf16 %v7283_v29, %v7283_v29  ;;  %v2481_v29 = vpack.c.bf16 %v7325_v55, %v7325_v55 }
 0x6d7   :  { %v1905_v50 = vpop.f32.mrb[58].mxu1 }
 0x6d8   :  { %v6259_v53 = vpop.f32.mrb[59].mxu1  ;;  %v1909_v54 = vsel %vm1547_vm4, %v1908_v34, -inf }
 0x6d9   :  { %1910 = vmax.xlane.f32.xlu0 %v1909_v54 }
 0x766   :  { %v1911_v59 = vpop.xlane.xlu0 %1910 }
 0x767   :  { %v1912_v60 = vsub.f32 %v1908_v34, %v1911_v59 }
 0x769   :  { %v1913_v63 = vmul.f32 1.442695, %v1912_v60  ;;  %v2285_v60 = vpack.c.bf16 %v7280_v28, %v7280_v28 }
 0x76b   :  { %6741 = vpow2.f32 %v1913_v63  ;;  %v2175_v63 = vpack.c.bf16 %v7249_v57, %v7249_v57  ;;  %v2177_v57 = vpack.c.bf16 %v7261_v11, %v7261_v11 }
 0x76d   :  { %v2241_v10 = vsel %vm1610_vm5, %v2177_v57, 0 }
 0x775   :  { %v6742_v0 = vpop.eup %6741 }
 0x776   :  { %v1915_v18 = vsel %vm1547_vm4, %v6742_v0, 0.0 }
 0x777   :  { %1916 = vadd.xlane.f32.xlu1 %v1915_v18 }
 0x804   :  { %v1917_v8 = vpop.xlane.xlu1 %1916 }
 0x805   :  { %6743 = vrcp.f32 %v1917_v8 }
 0x80f   :  { %v6744_v13 = vpop.eup %6743 }
 0x810   :  { %v1919_v15 = vmul.f32 %v6744_v13, %v6742_v0  ;;  %v2284_v0 = vpack.c.bf16 %v7263_v12, %v7263_v12 }
 0x812   :  { %v1920_v16 = vpack.c.bf16 %v1919_v15, %v1919_v15 }
 0x814   :  { %6263 = vmatmul.mubr.msk.bf16.vlgmr.msra.gmra.mrb[60].mxu0 %vm1547_vm4, %v1920_v16 }
 0x815   :  { %6273 = vmatpush3.bf16.xpose.msra.mxu0 %v2024_v17  ;;  %6274 = vmatprep.mubr.msk.bf16.mxu0 %vm6846_vm0, %v6845_v1 }
 0x816   :  { %6284 = vmatprep.subr.bf16.mxu0 %v6845_v1 }
 0x81c   :  { %6275 = vmatmul.mubr.msk.bf16.vlgmr.msra.gmra.mrb[64].mxu0 %vm1547_vm4, %v2017_v20 }
 0x81d   :  { %6286 = vmatprep.mubr.msk.bf16.mxu0 %vm6846_vm0, %v6845_v1  ;;  %6285 = vmatpush3.bf16.msra.mxu0 %v7439_v49 }
 0x81e   :  { %6296 = vmatprep.subr.bf16.mxu0 %v6845_v1 }
 0x8e7   :  { %v1961_v21 = vpop.f32.mrb[60].mxu0 }
 0x8e8   :  { %v1967_v47 = vpack.c.bf16 %v1961_v21, %v1961_v21  ;;  %v6264_v51 = vpop.f32.mrb[61].mxu0 }
 0x8e9   :  { %v1964_v23 = vpop.f32.mrb[62].mxu0 }
 0x8ea   :  { %v6265_v27 = vpop.f32.mrb[63].mxu0  ;;  %6269 = vmatmul.mubr.msk.bf16.vlgmr.msra.gmra.mrb[60].mxu1 %vm1547_vm4, %v1967_v47 }
 0x8eb   :  { %6279 = vmatpush3.bf16.msra.mxu1 %v2083_v26  ;;  %6280 = vmatprep.mubr.msk.bf16.mxu1 %vm6846_vm0, %v6845_v1 }
 0x8ec   :  { %6290 = vmatprep.subr.bf16.mxu1 %v6845_v1 }
 0x8ef   :  { %v2060_v48 = vpop.f32.mrb[64].mxu0 }
 0x8f0   :  { %v2066_v52 = vmul.f32 0.35355338, %v2060_v48  ;;  %v6276_v30 = vpop.f32.mrb[65].mxu0 }
 0x8f1   :  { %v2063_v62 = vpop.f32.mrb[66].mxu0 }
 0x8f2   :  { %v6277_v3 = vpop.f32.mrb[67].mxu0  ;;  %v2067_v31 = vsel %vm1547_vm4, %v2066_v52, -inf }
 0x8f3   :  { %2068 = vmax.xlane.f32.xlu0 %v2067_v31 }
 0x980   :  { %v2069_v32 = vpop.xlane.xlu0 %2068 }
 0x981   :  { %v2070_v35 = vsub.f32 %v2066_v52, %v2069_v32 }
 0x983   :  { %v2071_v39 = vmul.f32 1.442695, %v2070_v35 }
 0x985   :  { %6745 = vpow2.f32 %v2071_v39 }
 0x98f   :  { %v6746_v33 = vpop.eup %6745 }
 0x990   :  { %v2073_v36 = vsel %vm1547_vm4, %v6746_v33, 0.0 }
 0x991   :  { %2074 = vadd.xlane.f32.xlu1 %v2073_v36 }
 0x9bd   :  { %v2010_v37 = vpop.f32.mrb[60].mxu1 }
 0x9be   :  { %v7433_v40 = vadd.f32 %v2010_v37, %v7399_v41  ;;  %v6270_v42 = vpop.f32.mrb[61].mxu1  ;;  %v2176_v41 = vpack.c.bf16 %v7251_v58, %v7251_v58  ;;  %v2291_v58 = vsel %vm1547_vm4, %v2285_v60, 0 }
 0x9bf   :  { %v2013_v46 = vpop.f32.mrb[62].mxu1 }
 0x9c0   :  { %v6271_v34 = vpop.f32.mrb[63].mxu1  ;;  %v2182_v59 = vsel %vm1547_vm4, %v2176_v41, 0 }
 0xa1e   :  { %v2075_v38 = vpop.xlane.xlu1 %2074 }
 0xa1f   :  { %6747 = vrcp.f32 %v2075_v38  ;;  %v2350_v38 = vsel %vm1610_vm5, %v2286_v45, 0 }
 0xa29   :  { %v6748_v50 = vpop.eup %6747 }
 0xa2a   :  { %v2077_v53 = vmul.f32 %v6748_v50, %v6746_v33 }
 0xa2c   :  { %v2078_v54 = vpack.c.bf16 %v2077_v53, %v2077_v53 }
 0xa2e   :  { %6281 = vmatmul.mubr.msk.bf16.vlgmr.msra.gmra.mrb[64].mxu1 %vm1547_vm4, %v2078_v54 }
 0xa2f   :  { %6291 = vmatpush3.bf16.xpose.msra.mxu1 %v2182_v59  ;;  %6292 = vmatprep.mubr.msk.bf16.mxu1 %vm6846_vm0, %v6845_v1 }
 0xa30   :  { %6302 = vmatprep.subr.bf16.mxu1 %v6845_v1 }
 0xa36   :  { %6293 = vmatmul.mubr.msk.bf16.vlgmr.msra.gmra.mrb[68].mxu1 %vm1547_vm4, %v2175_v63  ;;  %v2545_v63 = vsel %vm1610_vm5, %v2481_v29, 0 }
 0xa37   :  { %6303 = vmatpush3.bf16.xpose.msra.mxu1 %v2291_v58  ;;  %6304 = vmatprep.mubr.msk.bf16.mxu1 %vm6846_vm0, %v6845_v1 }
 0xa38   :  { %6314 = vmatprep.subr.bf16.mxu1 %v6845_v1 }
 0xa3e   :  { %6305 = vmatmul.mubr.msk.bf16.vlgmr.msra.gmra.mrb[72].mxu1 %vm1547_vm4, %v2284_v0 }
 0xa3f   :  { %6315 = vmatpush3.bf16.msra.mxu1 %v7376_v9  ;;  %6316 = vmatprep.mubr.msk.bf16.mxu1 %vm6846_vm0, %v6845_v1 }
 0xa40   :  { %6326 = vmatprep.subr.bf16.mxu1 %v6845_v1 }
 0xb01   :  { %v2119_v28 = vpop.f32.mrb[64].mxu1 }
 0xb02   :  { %v2125_v18 = vpack.c.bf16 %v2119_v28, %v2119_v28  ;;  %v6282_v22 = vpop.f32.mrb[65].mxu1 }
 0xb03   :  { %v2122_v8 = vpop.f32.mrb[66].mxu1 }
 0xb04   :  { %v6283_v13 = vpop.f32.mrb[67].mxu1  ;;  %6287 = vmatmul.mubr.msk.bf16.vlgmr.msra.gmra.mrb[68].mxu0 %vm1547_vm4, %v2125_v18  ;;  %v2479_v8 = vpack.c.bf16 %v7302_v43, %v7302_v43 }
 0xb05   :  { %6297 = vmatpush3.bf16.msra.mxu0 %v2241_v10  ;;  %6298 = vmatprep.mubr.msk.bf16.mxu0 %vm6846_vm0, %v6845_v1 }
 0xb06   :  { %6308 = vmatprep.subr.bf16.mxu0 %v6845_v1 }
 0xb09   :  { %v2218_v12 = vpop.f32.mrb[68].mxu1 }
 0xb0a   :  { %v2224_v9 = vmul.f32 0.35355338, %v2218_v12  ;;  %v6294_v14 = vpop.f32.mrb[69].mxu1 }
 0xb0b   :  { %v2221_v15 = vpop.f32.mrb[70].mxu1 }
 0xb0c   :  { %v6295_v11 = vpop.f32.mrb[71].mxu1  ;;  %v2225_v16 = vsel %vm1547_vm4, %v2224_v9, -inf }
 0xb0d   :  { %2226 = vmax.xlane.f32.xlu0 %v2225_v16 }
 0xb11   :  { %v2327_v17 = vpop.f32.mrb[72].mxu1 }
 0xb12   :  { %v2333_v19 = vmul.f32 0.35355338, %v2327_v17  ;;  %v6306_v20 = vpop.f32.mrb[73].mxu1 }
 0xb13   :  { %v2330_v61 = vpop.f32.mrb[74].mxu1 }
 0xb14   :  { %v6307_v2 = vpop.f32.mrb[75].mxu1  ;;  %v2334_v21 = vsel %vm1547_vm4, %v2333_v19, -inf }
 0xb15   :  { %2335 = vmax.xlane.f32.xlu1 %v2334_v21 }
 0xb9a   :  { %v2227_v47 = vpop.xlane.xlu0 %2226 }
 0xb9b   :  { %v2228_v51 = vsub.f32 %v2224_v9, %v2227_v47 }
 0xb9d   :  { %v2229_v23 = vmul.f32 1.442695, %v2228_v51 }
 0xb9f   :  { %6749 = vpow2.f32 %v2229_v23 }
 0xba2   :  { %v2336_v26 = vpop.xlane.xlu1 %2335 }
 0xba3   :  { %v2337_v27 = vsub.f32 %v2333_v19, %v2336_v26 }
 0xba5   :  { %v2338_v48 = vmul.f32 1.442695, %v2337_v27 }
 0xba7   :  { %6751 = vpow2.f32 %v2338_v48  ;;  %v2633_v48 = vpack.c.bf16 %v7345_v6, %v7345_v6  ;;  %v2634_v6 = vpack.c.bf16 %v7348_v7, %v7348_v7 }
 0xba9   :  { %v6750_v52 = vpop.eup %6749 }
 0xbaa   :  { %v2231_v30 = vsel %vm1547_vm4, %v6750_v52, 0.0 }
 0xbab   :  { %2232 = vadd.xlane.f32.xlu0 %v2231_v30 }
 0xbb1   :  { %v6752_v62 = vpop.eup %6751 }
 0xbb2   :  { %v2340_v3 = vsel %vm1547_vm4, %v6752_v62, 0.0 }
 0xbb3   :  { %2341 = vadd.xlane.f32.xlu1 %v2340_v3  ;;  %v2632_v3 = vpack.c.bf16 %v7328_v56, %v7328_v56  ;;  %v5626_v56 = vld [vmem:[%s8153_s9] ss:$0 sm:$0xff] }
 0xbd7   :  { %v2168_v31 = vpop.f32.mrb[68].mxu0 }
 0xbd8   :  { %v7478_v32 = vadd.f32 %v2168_v31, %v7433_v40  ;;  %v6288_v35 = vpop.f32.mrb[69].mxu0 }
 0xbd9   :  { %v2171_v39 = vpop.f32.mrb[70].mxu0 }
 0xbda   :  { %v6289_v33 = vpop.f32.mrb[71].mxu0  ;;  %v2792_v7 = vadd.f32 %v5626_v56, %v7478_v32 }
 0xc38   :  { %v2233_v36 = vpop.xlane.xlu0 %2232 }
 0xc39   :  { %6753 = vrcp.f32 %v2233_v36  ;;  %v2698_v36 = vsel %vm1610_vm5, %v2634_v6, 0 }
 0xc40   :  { %v2342_v37 = vpop.xlane.xlu1 %2341 }
 0xc41   :  { %6755 = vrcp.f32 %v2342_v37 }
 0xc43   :  { %v6754_v42 = vpop.eup %6753 }
 0xc44   :  { %v2235_v46 = vmul.f32 %v6754_v42, %v6750_v52 }
 0xc46   :  { %v2236_v34 = vpack.c.bf16 %v2235_v46, %v2235_v46 }
 0xc48   :  { %6299 = vmatmul.mubr.msk.bf16.vlgmr.msra.gmra.mrb[72].mxu0 %vm1547_vm4, %v2236_v34 }
 0xc49   :  { %6309 = vmatpush3.bf16.msra.mxu0 %v2350_v38  ;;  %6310 = vmatprep.mubr.msk.bf16.mxu0 %vm6846_vm0, %v6845_v1 }
 0xc4a   :  { %6320 = vmatprep.subr.bf16.mxu0 %v6845_v1 }
 0xc4b   :  { %v6756_v40 = vpop.eup %6755 }
 0xc4c   :  { %v2344_v50 = vmul.f32 %v6756_v40, %v6752_v62  ;;  %v2639_v62 = vsel %vm1547_vm4, %v2633_v48, 0  ;;  %v2794_v40 = vadd.f32 %v2792_v7, %v7107_v24 }
 0xc4e   :  { %v2345_v41 = vpack.c.bf16 %v2344_v50, %v2344_v50  ;;  %v2796_v50 = vsel %vm96_vm1, %v2794_v40, 0.0 }
 0xc50   :  { %6311 = vmatmul.mubr.msk.bf16.vlgmr.msra.gmra.mrb[76].mxu0 %vm1547_vm4, %v2345_v41 }
 0xc51   :  { %6321 = vmatpush3.bf16.msra.mxu0 %v7365_v5  ;;  %6322 = vmatprep.mubr.msk.bf16.mxu0 %vm6846_vm0, %v6845_v1  ;;  %v2480_v5 = vpack.c.bf16 %v7305_v44, %v7305_v44 }
 0xc52   :  { %6332 = vmatprep.subr.bf16.mxu0 %v6845_v1 }
 0xc53   :  { %v2486_v18 = vsel %vm1547_vm4, %v2480_v5, 0 }
 0xd1b   :  { %v2277_v53 = vpop.f32.mrb[72].mxu0 }
 0xd1c   :  { %v2283_v54 = vpack.c.bf16 %v2277_v53, %v2277_v53  ;;  %v6300_v59 = vpop.f32.mrb[73].mxu0 }
 0xd1d   :  { %v2280_v60 = vpop.f32.mrb[74].mxu0 }
 0xd1e   :  { %v6301_v58 = vpop.f32.mrb[75].mxu0  ;;  %6323 = vmatmul.mubr.msk.bf16.vlgmr.msra.gmra.mrb[80].mxu0 %vm1547_vm4, %v2283_v54 }
 0xd1f   :  { %6333 = vmatpush3.bf16.msra.mxu0 %v2545_v63  ;;  %6334 = vmatprep.mubr.msk.bf16.mxu0 %vm6846_vm0, %v6845_v1 }
 0xd20   :  { %6344 = vmatprep.subr.bf16.mxu0 %v6845_v1 }
 0xd23   :  { %v2386_v0 = vpop.f32.mrb[76].mxu0 }
 0xd24   :  { %v2392_v55 = vpack.c.bf16 %v2386_v0, %v2386_v0  ;;  %v6312_v57 = vpop.f32.mrb[77].mxu0 }
 0xd25   :  { %v2389_v28 = vpop.f32.mrb[78].mxu0 }
 0xd26   :  { %v6313_v22 = vpop.f32.mrb[79].mxu0  ;;  %6317 = vmatmul.mubr.msk.bf16.vlgmr.msra.gmra.mrb[76].mxu1 %vm1547_vm4, %v2392_v55 }
 0xd27   :  { %6327 = vmatpush3.bf16.xpose.msra.mxu1 %v2486_v18  ;;  %6328 = vmatprep.mubr.msk.bf16.mxu1 %vm6846_vm0, %v6845_v1 }
 0xd28   :  { %6338 = vmatprep.subr.bf16.mxu1 %v6845_v1 }
 0xd2e   :  { %6329 = vmatmul.mubr.msk.bf16.vlgmr.msra.gmra.mrb[80].mxu1 %vm1547_vm4, %v2479_v8 }
 0xd2f   :  { %6339 = vmatpush3.bf16.msra.mxu1 %v7407_v4  ;;  %6340 = vmatprep.mubr.msk.bf16.mxu1 %vm6846_vm0, %v6845_v1 }
 0xd30   :  { %6350 = vmatprep.subr.bf16.mxu1 %v6845_v1 }
 0xdf1   :  { %v2473_v44 = vpop.f32.mrb[80].mxu0 }
 0xdf2   :  { %v6324_v10 = vpop.f32.mrb[81].mxu0 }
 0xdf3   :  { %v2476_v13 = vpop.f32.mrb[82].mxu0 }
 0xdf4   :  { %v6325_v12 = vpop.f32.mrb[83].mxu0 }
 0xdf9   :  { %v2430_v9 = vpop.f32.mrb[76].mxu1 }
 0xdfa   :  { %v7513_v14 = vadd.f32 %v2473_v44, %v2430_v9  ;;  %v6318_v15 = vpop.f32.mrb[77].mxu1 }
 0xdfb   :  { %v2433_v11 = vpop.f32.mrb[78].mxu1 }
 0xdfc   :  { %v6319_v16 = vpop.f32.mrb[79].mxu1 }
 0xe01   :  { %v2522_v43 = vpop.f32.mrb[80].mxu1 }
 0xe02   :  { %v2528_v17 = vmul.f32 0.35355338, %v2522_v43  ;;  %v6330_v19 = vpop.f32.mrb[81].mxu1 }
 0xe03   :  { %v2525_v20 = vpop.f32.mrb[82].mxu1 }
 0xe04   :  { %v6331_v4 = vpop.f32.mrb[83].mxu1  ;;  %v2529_v61 = vsel %vm1547_vm4, %v2528_v17, -inf }
 0xe05   :  { %2530 = vmax.xlane.f32.xlu0 %v2529_v61 }
 0xe92   :  { %v2531_v2 = vpop.xlane.xlu0 %2530 }
 0xe93   :  { %v2532_v21 = vsub.f32 %v2528_v17, %v2531_v2 }
 0xe95   :  { %v2533_v47 = vmul.f32 1.442695, %v2532_v21 }
 0xe97   :  { %6757 = vpow2.f32 %v2533_v47 }
 0xea1   :  { %v6758_v51 = vpop.eup %6757 }
 0xea2   :  { %v2535_v23 = vsel %vm1547_vm4, %v6758_v51, 0.0 }
 0xea3   :  { %2536 = vadd.xlane.f32.xlu1 %v2535_v23  ;;  %v6691_v23 = vld [vmem:[%s8156_s12] sm:$0xff]  }
 0xf30   :  { %v2537_v26 = vpop.xlane.xlu1 %2536 }
 0xf31   :  { %6759 = vrcp.f32 %v2537_v26  ;;  %v6692_v26 = vld [vmem:[%s8156_s12 + $0x8] sm:$0xff]  }
 0xf3b   :  { %v6760_v27 = vpop.eup %6759 }
 0xf3c   :  { %v2539_v52 = vmul.f32 %v6760_v27, %v6758_v51 }
 0xf3e   :  { %v2540_v30 = vpack.c.bf16 %v2539_v52, %v2539_v52 }
 0xf40   :  { %6335 = vmatmul.mubr.msk.bf16.vlgmr.msra.gmra.mrb[84].mxu0 %vm1547_vm4, %v2540_v30 }
 0xf41   :  { %6345 = vmatpush3.bf16.xpose.msra.mxu0 %v2639_v62  ;;  %6346 = vmatprep.mubr.msk.bf16.mxu0 %vm6846_vm0, %v6845_v1 }
 0xf42   :  { %6356 = vmatprep.subr.bf16.mxu0 %v6845_v1 }
 0xf48   :  { %6347 = vmatmul.mubr.msk.bf16.vlgmr.msra.gmra.mrb[88].mxu0 %vm1547_vm4, %v2632_v3 }
 0xf49   :  { %6357 = vmatpush3.bf16.msra.mxu0 %v7439_v49  ;;  %6358 = vmatprep.mubr.msk.bf16.mxu0 %vm6846_vm0, %v6845_v1 }
 0xf4a   :  { %6370 = vmatprep.subr.bf16.mxu0 %v6845_v1 }
0x1013   :  { %v2581_v31 = vpop.f32.mrb[84].mxu0 }
0x1014   :  { %v2587_v35 = vpack.c.bf16 %v2581_v31, %v2581_v31  ;;  %v6336_v39 = vpop.f32.mrb[85].mxu0  ;;  %v5627_v31 = vld [vmem:[%s8154_s10] ss:$0 sm:$0xff] }
0x1015   :  { %v2584_v33 = vpop.f32.mrb[86].mxu0 }
0x1016   :  { %v6337_v37 = vpop.f32.mrb[87].mxu0  ;;  %6341 = vmatmul.mubr.msk.bf16.vlgmr.msra.gmra.mrb[84].mxu1 %vm1547_vm4, %v2587_v35 }
0x1017   :  { %6351 = vmatpush3.bf16.msra.mxu1 %v2698_v36  ;;  %6352 = vmatprep.mubr.msk.bf16.mxu1 %vm6846_vm0, %v6845_v1  ;;  %v5628_v36 = vld [vmem:[%s8155_s11] ss:$0 sm:$0xff] }
0x1018   :  { %6362 = vmatprep.subr.bf16.mxu1 %v6845_v1 }
0x101b   :  { %v2675_v49 = vpop.f32.mrb[88].mxu0 }
0x101c   :  { %v2681_v42 = vmul.f32 0.35355338, %v2675_v49  ;;  %v6348_v45 = vpop.f32.mrb[89].mxu0 }
0x101d   :  { %v2678_v46 = vpop.f32.mrb[90].mxu0  ;;  %v6694_v45 = vld [vmem:[%s8158_s14 + $0x8] sm:$0xff]  }
0x101e   :  { %v6349_v34 = vpop.f32.mrb[91].mxu0  ;;  %v2682_v38 = vsel %vm1547_vm4, %v2681_v42, -inf  ;;  %v6695_v46 = vld [vmem:[%s8158_s14 + $0x10] sm:$0xff]  }
0x101f   :  { %2683 = vmax.xlane.f32.xlu0 %v2682_v38  ;;  %v6696_v34 = vld [vmem:[%s8158_s14 + $0x18] sm:$0xff]   ;;  %v5629_v38 = vld [vmem:[%s8157_s13] ss:$0 sm:$0xff] }
0x1023   :  { %2797 = vadd.xlane.f32.xlu0 %v2796_v50 }
0x10ac   :  { %v2684_v41 = vpop.xlane.xlu0 %2683 }
0x10ad   :  { %v2685_v29 = vsub.f32 %v2681_v42, %v2684_v41  ;;  %v6693_v42 = vld [vmem:[%s8158_s14] sm:$0xff]  }
0x10af   :  { %v2686_v53 = vmul.f32 1.442695, %v2685_v29 }
0x10b0   :  { %v2798_v54 = vpop.xlane.xlu0 %2797 }
0x10b1   :  { %6761 = vpow2.f32 %v2686_v53  ;;  %v2803_v59 = vmul.f32 0.03125, %v2798_v54 }
0x10b3   :  { %v2805_v32 = vsub.f32 %v2794_v40, %v2803_v59 }
0x10b5   :  { %v2807_v60 = vmul.f32 %v2805_v32, %v2805_v32 }
0x10b7   :  { %v2809_v63 = vsel %vm96_vm1, %v2807_v60, 0.0 }
0x10b8   :  { %2810 = vadd.xlane.f32.xlu0 %v2809_v63 }
0x10bb   :  { %v6762_v58 = vpop.eup %6761 }
0x10bc   :  { %v2688_v5 = vsel %vm1547_vm4, %v6762_v58, 0.0 }
0x10bd   :  { %2689 = vadd.xlane.f32.xlu1 %v2688_v5 }
0x10e9   :  { %v2625_v24 = vpop.f32.mrb[84].mxu1 }
0x10ea   :  { %v2631_v0 = vadd.f32 %v2625_v24, %v7513_v14  ;;  %v6342_v55 = vpop.f32.mrb[85].mxu1 }
0x10eb   :  { %v2628_v57 = vpop.f32.mrb[86].mxu1 }
0x10ec   :  { %v6343_v28 = vpop.f32.mrb[87].mxu1 }
0x114a   :  { %v2690_v18 = vpop.xlane.xlu1 %2689 }
0x114b   :  { %6763 = vrcp.f32 %v2690_v18 }
0x1155   :  { %v6764_v22 = vpop.eup %6763 }
0x1156   :  { %v2692_v8 = vmul.f32 %v6764_v22, %v6762_v58 }
0x1158   :  { %v2693_v44 = vpack.c.bf16 %v2692_v8, %v2692_v8 }
0x115a   :  { %6353 = vmatmul.mubr.msk.bf16.vlgmr.msra.gmra.mrb[88].mxu1 %vm1547_vm4, %v2693_v44 }
0x115b   :  { %6366 = vmatprep.mubr.msk.bf16.mxu1 %vm6846_vm0, %v6845_v1  ;;  %6363 = vmatpush3.bf16.msra.mxu1 %v6691_v23 }
0x115c   :  { %6364 = vmatprep.subr.bf16.mxu1 %v6845_v1 }
0x115f   :  { %6365 = vmatpush3.bf16.msra.mxu1 %v6692_v26 }
0x1160   :  { %6382 = vmatprep.subr.bf16.mxu1 %v6845_v1 }
0x122d   :  { %v2734_v10 = vpop.f32.mrb[88].mxu1 }
0x122e   :  { %v2740_v13 = vpack.c.bf16 %v2734_v10, %v2734_v10  ;;  %v6354_v12 = vpop.f32.mrb[89].mxu1 }
0x122f   :  { %v2737_v9 = vpop.f32.mrb[90].mxu1 }
0x1230   :  { %v6355_v15 = vpop.f32.mrb[91].mxu1  ;;  %6359 = vmatmul.mubr.msk.bf16.vlgmr.msra.gmra.mrb[92].mxu0 %vm1547_vm4, %v2740_v13 }
0x1231   :  { %6378 = vmatprep.mubr.msk.bf16.mxu0 %vm6846_vm0, %v6845_v1  ;;  %6371 = vmatpush3.bf16.msra.mxu0 %v6693_v42  ;;  %v5633_v15 = vld [vmem:[%s8159_s15] ss:$0 sm:$0xff] }
0x1232   :  { %6372 = vmatprep.subr.bf16.mxu0 %v6845_v1 }
0x1235   :  { %6373 = vmatpush3.bf16.msra.mxu0 %v6694_v45 }
0x1236   :  { %6374 = vmatprep.subr.bf16.mxu0 %v6845_v1 }
0x1239   :  { %6375 = vmatpush3.bf16.msra.mxu0 %v6695_v46 }
0x123a   :  { %6376 = vmatprep.subr.bf16.mxu0 %v6845_v1 }
0x123d   :  { %6377 = vmatpush3.bf16.msra.mxu0 %v6696_v34 }
0x123e   :  { %6398 = vmatprep.subr.bf16.mxu0 %v6845_v1 }
0x1303   :  { %v2778_v14 = vpop.f32.mrb[92].mxu0 }
0x1304   :  { %v2784_v11 = vadd.f32 %v2778_v14, %v2631_v0  ;;  %v6360_v16 = vpop.f32.mrb[93].mxu0 }
0x1305   :  { %v2781_v43 = vpop.f32.mrb[94].mxu0 }
0x1306   :  { %v2793_v17 = vadd.f32 %v5626_v56, %v2784_v11  ;;  %v6361_v19 = vpop.f32.mrb[95].mxu0 }
0x1308   :  { %v2795_v20 = vadd.f32 %v2793_v17, %v7109_v25  ;;  %v2811_v25 = vpop.xlane.xlu0 %2810 }
0x1309   :  { %v2815_v27 = vmul.f32 0.03125, %v2811_v25 }
0x130a   :  { %v2799_v4 = vsel %vm96_vm1, %v2795_v20, 0.0 }
0x130b   :  { %2800 = vadd.xlane.f32.xlu1 %v2799_v4  ;;  %v2817_v48 = vadd.f32 1e-05, %v2815_v27 }
0x130d   :  { %6765 = vrsqrt.f32 %v2817_v48 }
0x1317   :  { %v6766_v3 = vpop.eup %6765 }
0x1318   :  { %v2821_v6 = vmul.f32 %v6766_v3, %v2805_v32  ;;  %v6698_v3 = vld [vmem:[%s8150_s6 + $0x140] sm:$0xff]  }
0x131a   :  { %v2830_v39 = vmul.f32 %v5627_v31, %v2821_v6  ;;  %v6699_v6 = vld [vmem:[%s8150_s6 + $0xc8] sm:$0xff]  }
0x131c   :  { %v2839_v56 = vadd.f32 %v5628_v36, %v2830_v39 }
0x1398   :  { %v2801_v61 = vpop.xlane.xlu1 %2800 }
0x1399   :  { %v2804_v2 = vmul.f32 0.03125, %v2801_v61 }
0x139b   :  { %v2806_v21 = vsub.f32 %v2795_v20, %v2804_v2 }
0x139d   :  { %v2808_v47 = vmul.f32 %v2806_v21, %v2806_v21 }
0x139f   :  { %v2812_v51 = vsel %vm96_vm1, %v2808_v47, 0.0 }
0x13a0   :  { %2813 = vadd.xlane.f32.xlu1 %v2812_v51 }
0x142d   :  { %v2814_v52 = vpop.xlane.xlu1 %2813 }
0x142e   :  { %v2816_v30 = vmul.f32 0.03125, %v2814_v52 }
0x1430   :  { %v2818_v62 = vadd.f32 1e-05, %v2816_v30 }
0x1432   :  { %6767 = vrsqrt.f32 %v2818_v62  ;;  %v6697_v62 = vld [vmem:[%s8150_s6 + $0xc0] sm:$0xff]  }
0x143c   :  { %v6768_v35 = vpop.eup %6767 }
0x143d   :  { %v2822_v33 = vmul.f32 %v6768_v35, %v2806_v21 }
0x143f   :  { %v2831_v37 = vmul.f32 %v5627_v31, %v2822_v33  ;;  %v6700_v31 = vld [vmem:[%s8150_s6 + $0x148] sm:$0xff]  }
0x1441   :  { %v2840_v7 = vadd.f32 %v5628_v36, %v2831_v37 }
0x1443   :  { %v2841_v49 = vpack.c.bf16 %v2840_v7, %v2839_v56 }
0x1445   :  { %6367 = vmatmul.mubr.msk.bf16.vlgmr.msra.gmra.mrb[92].mxu1 %vm96_vm1, %v2841_v49  ;;  %v5639_v49 = vld [vmem:[%s8160_s16] ss:$0 sm:$0xff] }
0x1446   :  { %6386 = vmatprep.mubr.msk.bf16.mxu1 %vm6846_vm0, %v6845_v1  ;;  %6383 = vmatpush3.bf16.msra.mxu1 %v6697_v62 }
0x1447   :  { %6384 = vmatprep.subr.bf16.mxu1 %v6845_v1 }
0x144a   :  { %6385 = vmatpush3.bf16.msra.mxu1 %v6699_v6 }
0x144b   :  { %6390 = vmatprep.subr.bf16.mxu1 %v6845_v1 }
0x1518   :  { %v2902_v40 = vpop.f32.mrb[92].mxu1 }
0x1519   :  { %v2903_v50 = vadd.f32 %v5629_v38, %v2902_v40  ;;  %v6368_v41 = vpop.f32.mrb[93].mxu1 }
0x151a   :  { %v2905_v29 = vpop.f32.mrb[94].mxu1 }
0x151b   :  { %v2911_v53 = vmul.f32 0.044715, %v2903_v50  ;;  %v2906_v54 = vadd.f32 %v5629_v38, %v2905_v29  ;;  %v6369_v59 = vpop.f32.mrb[95].mxu1  ;;  %v2909_v8 = vmul.f32 0.5, %v2903_v50  ;;  %v5640_v38 = vld [vmem:[%s8161_s17] ss:$0 sm:$0xff] }
0x151c   :  { %v6701_v29 = vld [vmem:[%s8150_s6 + $0x100] sm:$0xff]   ;;  %v6703_v59 = vld [vmem:[%s8150_s6 + $0x108] sm:$0xff]  }
0x151d   :  { %v2913_v32 = vmul.f32 %v2911_v53, %v2903_v50  ;;  %v2912_v60 = vmul.f32 0.044715, %v2906_v54  ;;  %v2910_v44 = vmul.f32 0.5, %v2906_v54  ;;  %v6702_v53 = vld [vmem:[%s8150_s6 + $0x110] sm:$0xff]  }
0x151f   :  { %v2915_v63 = vmul.f32 %v2913_v32, %v2903_v50  ;;  %v2914_v58 = vmul.f32 %v2912_v60, %v2906_v54  ;;  %v6704_v32 = vld [vmem:[%s8150_s6 + $0x118] sm:$0xff]   ;;  %v6705_v60 = vld [vmem:[%s8150_s6 + $0xd0] sm:$0xff]  }
0x1521   :  { %v2917_v5 = vadd.f32 %v2915_v63, %v2903_v50  ;;  %v2916_v24 = vmul.f32 %v2914_v58, %v2906_v54  ;;  %v6706_v63 = vld [vmem:[%s8150_s6 + $0xe0] sm:$0xff]   ;;  %v6707_v58 = vld [vmem:[%s8150_s6 + $0xd8] sm:$0xff]  }
0x1523   :  { %v2919_v0 = vmul.f32 0.7978846, %v2917_v5  ;;  %v2918_v55 = vadd.f32 %v2916_v24, %v2906_v54  ;;  %v6708_v5 = vld [vmem:[%s8150_s6 + $0xe8] sm:$0xff]   ;;  %v6709_v24 = vld [vmem:[%s8150_s6 + $0x150] sm:$0xff]  }
0x1525   :  { %6769 = vtanh.f32 %v2919_v0  ;;  %v2920_v57 = vmul.f32 0.7978846, %v2918_v55  ;;  %v6710_v0 = vld [vmem:[%s8150_s6 + $0x160] sm:$0xff]   ;;  %v6711_v55 = vld [vmem:[%s8150_s6 + $0x158] sm:$0xff]  }
0x1527   :  { %6771 = vtanh.f32 %v2920_v57  ;;  %v6712_v57 = vld [vmem:[%s8150_s6 + $0x168] sm:$0xff]  }
0x152f   :  { %v6770_v28 = vpop.eup %6769 }
0x1530   :  { %v2923_v18 = vadd.f32 1.0, %v6770_v28  ;;  %v6713_v28 = vld [vmem:[%s8150_s6 + $0x120] sm:$0xff]  }
0x1531   :  { %v6772_v22 = vpop.eup %6771 }
0x1532   :  { %v2924_v10 = vadd.f32 1.0, %v6772_v22  ;;  %v2925_v13 = vmul.f32 %v2923_v18, %v2909_v8  ;;  %v6714_v18 = vld [vmem:[%s8150_s6 + $0x130] sm:$0xff]   ;;  %v6715_v22 = vld [vmem:[%s8150_s6 + $0x128] sm:$0xff]   ;;  %v6716_v8 = vld [vmem:[%s8150_s6 + $0x138] sm:$0xff]  }
0x1534   :  { %v2926_v12 = vmul.f32 %v2924_v10, %v2910_v44  ;;  %v6717_v44 = vld [vmem:[%s8150_s6 + $0xf0] sm:$0xff]   ;;  %v6718_v10 = vld [vmem:[%s8150_s6 + $0xf8] sm:$0xff]  }
0x1536   :  { %v2927_v9 = vpack.c.bf16 %v2926_v12, %v2925_v13  ;;  %v6719_v13 = vld [vmem:[%s8150_s6 + $0x170] sm:$0xff]   ;;  %v6720_v12 = vld [vmem:[%s8150_s6 + $0x178] sm:$0xff]  }
0x1538   :  { %6379 = vmatmul.mubr.msk.bf16.vlgmr.msra.gmra.mrb[96].mxu0 %vm2967_vm6, %v2927_v9  ;;  %v5664_v9 = vld [vmem:[%s8151_s7 + $0x14] ss:$0 sm:$0xff] }
0x1539   :  { %6402 = vmatprep.mubr.msk.bf16.mxu0 %vm6846_vm0, %v6845_v1  ;;  %6399 = vmatpush3.bf16.msra.mxu0 %v6698_v3 }
0x153a   :  { %6400 = vmatprep.subr.bf16.mxu0 %v6845_v1 }
0x153d   :  { %6401 = vmatpush3.bf16.msra.mxu0 %v6700_v31 }
0x153e   :  { %6414 = vmatprep.subr.bf16.mxu0 %v6845_v1 }
0x160b   :  { %v3005_v14 = vpop.f32.mrb[96].mxu0 }
0x160c   :  { %v3006_v11 = vadd.f32 %v5633_v15, %v3005_v14  ;;  %v6380_v16 = vpop.f32.mrb[97].mxu0 }
0x160d   :  { %v3008_v43 = vpop.f32.mrb[98].mxu0 }
0x160e   :  { %v3009_v17 = vadd.f32 %v5633_v15, %v3008_v43  ;;  %v6381_v19 = vpop.f32.mrb[99].mxu0  ;;  %v3012_v20 = vadd.f32 %v3006_v11, %v2839_v56 }
0x1610   :  { %v3014_v4 = vsel %vm96_vm1, %v3012_v20, 0.0  ;;  %v3013_v61 = vadd.f32 %v3009_v17, %v2840_v7  ;;  %v5646_v17 = vld [vmem:[%s8151_s7 + $0xc] ss:$0 sm:$0xff] }
0x1611   :  { %3015 = vadd.xlane.f32.xlu0 %v3014_v4 }
0x1612   :  { %v3017_v2 = vsel %vm96_vm1, %v3013_v61, 0.0 }
0x1613   :  { %3018 = vadd.xlane.f32.xlu1 %v3017_v2 }
0x169e   :  { %v3016_v21 = vpop.xlane.xlu0 %3015 }
0x169f   :  { %v3020_v47 = vmul.f32 0.03125, %v3016_v21 }
0x16a0   :  { %v3019_v51 = vpop.xlane.xlu1 %3018 }
0x16a1   :  { %v3022_v23 = vsub.f32 %v3012_v20, %v3020_v47  ;;  %v3021_v26 = vmul.f32 0.03125, %v3019_v51 }
0x16a3   :  { %v3023_v25 = vsub.f32 %v3013_v61, %v3021_v26  ;;  %v3024_v27 = vmul.f32 %v3022_v23, %v3022_v23 }
0x16a5   :  { %v3026_v48 = vsel %vm96_vm1, %v3024_v27, 0.0  ;;  %v3025_v52 = vmul.f32 %v3023_v25, %v3023_v25 }
0x16a6   :  { %3027 = vadd.xlane.f32.xlu0 %v3026_v48 }
0x16a7   :  { %v3029_v30 = vsel %vm96_vm1, %v3025_v52, 0.0 }
0x16a8   :  { %3030 = vadd.xlane.f32.xlu1 %v3029_v30  ;;  %v5682_v30 = vld [vmem:[%s8151_s7 + $0x11] ss:$0 sm:$0xff] }
0x1733   :  { %v3028_v35 = vpop.xlane.xlu0 %3027 }
0x1734   :  { %v3032_v39 = vmul.f32 0.03125, %v3028_v35 }
0x1735   :  { %v3031_v33 = vpop.xlane.xlu1 %3030 }
0x1736   :  { %v3034_v36 = vadd.f32 1e-05, %v3032_v39  ;;  %v3033_v37 = vmul.f32 0.03125, %v3031_v33 }
0x1738   :  { %6773 = vrsqrt.f32 %v3034_v36  ;;  %v3035_v56 = vadd.f32 1e-05, %v3033_v37 }
0x173a   :  { %6775 = vrsqrt.f32 %v3035_v56 }
0x1742   :  { %v6774_v7 = vpop.eup %6773 }
0x1743   :  { %v3038_v42 = vmul.f32 %v6774_v7, %v3022_v23  ;;  %v5655_v23 = vld [vmem:[%s8151_s7 + $0x10] ss:$0 sm:$0xff] }
0x1744   :  { %v6776_v45 = vpop.eup %6775 }
0x1745   :  { %v3047_v46 = vmul.f32 %v5639_v49, %v3038_v42  ;;  %v3039_v34 = vmul.f32 %v6776_v45, %v3023_v25 }
0x1747   :  { %v3048_v40 = vmul.f32 %v5639_v49, %v3039_v34  ;;  %v7625_v50 = vadd.f32 %v5640_v38, %v3047_v46  ;;  %v5673_v34 = vld [vmem:[%s8151_s7 + $0xd] ss:$0 sm:$0xff] }
0x1749   :  { %v7627_v41 = vadd.f32 %v5640_v38, %v3048_v40  ;;  %v7793_v38 = vld [vmem:[%s8151_s7 + $0xe] ss:$0 sm:$0xff] }
0x174b   :  { %v7637_v54 = vpack.c.bf16 %v7627_v41, %v7625_v50 }
0x174d   :  { %6387 = vmatmul.mubr.msk.bf16.vlgmr.msra.gmra.mrb[96].mxu1 %vm96_vm1, %v7637_v54  ;;  %6403 = vmatmul.mubr.msk.bf16.vlgmr.msra.gmra.mrb[100].mxu0 %vm96_vm1, %v7637_v54 }
0x174e   :  { %6391 = vmatpush3.bf16.msra.mxu1 %v6701_v29  ;;  %6415 = vmatpush3.bf16.msra.mxu0 %v6702_v53 }
0x174f   :  { %6392 = vmatprep.subr.bf16.mxu1 %v6845_v1  ;;  %6416 = vmatprep.subr.bf16.mxu0 %v6845_v1 }
0x1750   :  { %6394 = vmatprep.mubr.msk.bf16.mxu1 %vm6846_vm0, %v6845_v1  ;;  %6418 = vmatprep.mubr.msk.bf16.mxu0 %vm6846_vm0, %v6845_v1 }
0x1752   :  { %6393 = vmatpush3.bf16.msra.mxu1 %v6703_v59  ;;  %6417 = vmatpush3.bf16.msra.mxu0 %v6704_v32 }
0x1753   :  { %6406 = vmatprep.subr.bf16.mxu1 %v6845_v1  ;;  %6430 = vmatprep.subr.bf16.mxu0 %v6845_v1 }
0x1755   :  { %6395 = vmatmul.mubr.msk.bf16.vlgmr.msra.gmra.mrb[100].mxu1 %vm96_vm1, %v7637_v54  ;;  %6419 = vmatmul.mubr.msk.bf16.vlgmr.msra.gmra.mrb[104].mxu0 %vm96_vm1, %v7637_v54 }
0x1756   :  { %6407 = vmatpush3.bf16.msra.mxu1 %v6705_v60  ;;  %6431 = vmatpush3.bf16.msra.mxu0 %v6706_v63 }
0x1757   :  { %6408 = vmatprep.subr.bf16.mxu1 %v6845_v1  ;;  %6432 = vmatprep.subr.bf16.mxu0 %v6845_v1 }
0x1758   :  { %6410 = vmatprep.mubr.msk.bf16.mxu1 %vm6846_vm0, %v6845_v1  ;;  %6434 = vmatprep.mubr.msk.bf16.mxu0 %vm6846_vm0, %v6845_v1 }
0x175a   :  { %6409 = vmatpush3.bf16.msra.mxu1 %v6707_v58  ;;  %6433 = vmatpush3.bf16.msra.mxu0 %v6708_v5 }
0x175b   :  { %6422 = vmatprep.subr.bf16.mxu1 %v6845_v1  ;;  %6446 = vmatprep.subr.bf16.mxu0 %v6845_v1 }
0x175d   :  { %6411 = vmatmul.mubr.msk.bf16.vlgmr.msra.gmra.mrb[104].mxu1 %vm96_vm1, %v7637_v54  ;;  %6435 = vmatmul.mubr.msk.bf16.vlgmr.msra.gmra.mrb[108].mxu0 %vm96_vm1, %v7637_v54 }
0x175e   :  { %6423 = vmatpush3.bf16.msra.mxu1 %v6709_v24  ;;  %6447 = vmatpush3.bf16.msra.mxu0 %v6710_v0 }
0x175f   :  { %6424 = vmatprep.subr.bf16.mxu1 %v6845_v1  ;;  %6448 = vmatprep.subr.bf16.mxu0 %v6845_v1 }
0x1760   :  { %6426 = vmatprep.mubr.msk.bf16.mxu1 %vm6846_vm0, %v6845_v1  ;;  %6450 = vmatprep.mubr.msk.bf16.mxu0 %vm6846_vm0, %v6845_v1 }
0x1762   :  { %6425 = vmatpush3.bf16.msra.mxu1 %v6711_v55  ;;  %6449 = vmatpush3.bf16.msra.mxu0 %v6712_v57  ;;  %v7812_v57 = vld [vmem:[%s8151_s7 + $0x15] ss:$0 sm:$0xff] }
0x1763   :  { %6438 = vmatprep.subr.bf16.mxu1 %v6845_v1  ;;  %6462 = vmatprep.subr.bf16.mxu0 %v6845_v1 }
0x1765   :  { %6427 = vmatmul.mubr.msk.bf16.vlgmr.msra.gmra.mrb[108].mxu1 %vm96_vm1, %v7637_v54  ;;  %6451 = vmatmul.mubr.msk.bf16.vlgmr.msra.gmra.mrb[112].mxu0 %vm96_vm1, %v7637_v54 }
0x1766   :  { %6439 = vmatpush3.bf16.msra.mxu1 %v6713_v28  ;;  %6463 = vmatpush3.bf16.msra.mxu0 %v6714_v18  ;;  %v7817_v28 = vld [vmem:[%s8151_s7 + $0x16] ss:$0 sm:$0xff] }
0x1767   :  { %6440 = vmatprep.subr.bf16.mxu1 %v6845_v1  ;;  %6464 = vmatprep.subr.bf16.mxu0 %v6845_v1 }
0x1768   :  { %6442 = vmatprep.mubr.msk.bf16.mxu1 %vm6846_vm0, %v6845_v1  ;;  %6466 = vmatprep.mubr.msk.bf16.mxu0 %vm6846_vm0, %v6845_v1 }
0x176a   :  { %6441 = vmatpush3.bf16.msra.mxu1 %v6715_v22  ;;  %6465 = vmatpush3.bf16.msra.mxu0 %v6716_v8 }
0x176b   :  { %6454 = vmatprep.subr.bf16.mxu1 %v6845_v1  ;;  %6478 = vmatprep.subr.bf16.mxu0 %v6845_v1 }
0x176d   :  { %6443 = vmatmul.mubr.msk.bf16.vlgmr.msra.gmra.mrb[112].mxu1 %vm96_vm1, %v7637_v54  ;;  %6467 = vmatmul.mubr.msk.bf16.vlgmr.msra.gmra.mrb[116].mxu0 %vm96_vm1, %v7637_v54 }
0x176e   :  { %6455 = vmatpush3.bf16.msra.mxu1 %v6717_v44  ;;  %6458 = vmatprep.mubr.msk.bf16.mxu1 %vm6846_vm0, %v6845_v1 }
0x176f   :  { %6456 = vmatprep.subr.bf16.mxu1 %v6845_v1  ;;  %6480 = vmatprep.mubr.msk.bf16.mxu0 %vm6846_vm0, %v6845_v1 }
0x1772   :  { %6457 = vmatpush3.bf16.msra.mxu1 %v6718_v10 }
0x1773   :  { %6470 = vmatprep.subr.bf16.mxu1 %v6845_v1 }
0x1775   :  { %6459 = vmatmul.mubr.msk.bf16.vlgmr.msra.gmra.mrb[116].mxu1 %vm96_vm1, %v7637_v54 }
0x1776   :  { %6471 = vmatpush3.bf16.msra.mxu1 %v6719_v13  ;;  %6474 = vmatprep.mubr.msk.bf16.mxu1 %vm6846_vm0, %v6845_v1 }
0x1777   :  { %6472 = vmatprep.subr.bf16.mxu1 %v6845_v1 }
0x177a   :  { %6473 = vmatpush3.bf16.msra.mxu1 %v6720_v12 }
0x177b   :  { %6484 = vmatprep.subr.bf16.mxu1 %v6845_v1 }
0x177d   :  { %6475 = vmatmul.mubr.msk.bf16.vlgmr.msra.gmra.mrb[120].mxu1 %vm96_vm1, %v7637_v54 }
0x177e   :  { %6486 = vmatprep.mubr.msk.bf16.mxu1 %vm6846_vm0, %v6845_v1 }
0x1820   :  { %v3121_v15 = vpop.f32.mrb[96].mxu1  ;;  %v3253_v14 = vpop.f32.mrb[100].mxu0 }
0x1821   :  { %v3254_v11 = vadd.f32 %v5664_v9, %v3253_v14  ;;  %v6388_v16 = vpop.f32.mrb[97].mxu1  ;;  %v6404_v43 = vpop.f32.mrb[101].mxu0  ;;  %v3122_v56 = vadd.f32 %v5646_v17, %v3121_v15 }
0x1822   :  { %v3124_v19 = vpop.f32.mrb[98].mxu1  ;;  %v3256_v20 = vpop.f32.mrb[102].mxu0  ;;  %v7835_v16 = vld [vmem:[%s8151_s7 + $0x12] ss:$0 sm:$0xff]  ;;  %v7840_v43 = vld [vmem:[%s8151_s7 + $0x13] ss:$0 sm:$0xff] }
0x1823   :  { %v3856_v4 = vpack.c.bf16 %v3254_v11, %v3254_v11  ;;  %v7767_v61 = vadd.f32 %v5646_v17, %v3124_v19  ;;  %v7769_v2 = vadd.f32 %v5664_v9, %v3256_v20  ;;  %v6389_v21 = vpop.f32.mrb[99].mxu1  ;;  %v6405_v47 = vpop.f32.mrb[103].mxu0  ;;  %v3854_v53 = vpack.c.bf16 %v3122_v56, %v3122_v56 }
0x1825   :  { %v3920_v51 = vsel %vm1610_vm5, %v3856_v4, 0 }
0x1826   :  { %6485 = vmatpush3.bf16.msra.mxu1 %v3920_v51 }
0x1827   :  { %6496 = vmatprep.subr.bf16.mxu1 %v6845_v1 }
0x1828   :  { %v3187_v26 = vpop.f32.mrb[100].mxu1  ;;  %v3385_v25 = vpop.f32.mrb[104].mxu0 }
0x1829   :  { %v3188_v27 = vadd.f32 %v5655_v23, %v3187_v26  ;;  %v6396_v48 = vpop.f32.mrb[101].mxu1  ;;  %v6420_v52 = vpop.f32.mrb[105].mxu0  ;;  %v3386_v37 = vadd.f32 %v5682_v30, %v3385_v25  ;;  %v7853_v26 = vld [vmem:[%s8151_s7 + $0xf] ss:$0 sm:$0xff] }
0x182a   :  { %v3190_v62 = vpop.f32.mrb[102].mxu1  ;;  %v3388_v3 = vpop.f32.mrb[106].mxu0 }
0x182b   :  { %v3855_v6 = vpack.c.bf16 %v3188_v27, %v3188_v27  ;;  %v7779_v31 = vadd.f32 %v5655_v23, %v3190_v62  ;;  %v7781_v35 = vadd.f32 %v5682_v30, %v3388_v3  ;;  %v6397_v39 = vpop.f32.mrb[103].mxu1  ;;  %v6421_v33 = vpop.f32.mrb[107].mxu0  ;;  %v3966_v42 = vpack.c.bf16 %v3386_v37, %v3386_v37  ;;  %v7863_v62 = vld [vmem:[%s8151_s7 + $0x17] ss:$0 sm:$0xff] }
0x182d   :  { %v3861_v36 = vsel %vm1547_vm4, %v3855_v6, 0  ;;  %v3972_v63 = vsel %vm1547_vm4, %v3966_v42, 0 }
0x182e   :  { %6479 = vmatpush3.bf16.xpose.msra.mxu0 %v3861_v36 }
0x182f   :  { %6490 = vmatprep.subr.bf16.mxu0 %v6845_v1 }
0x1830   :  { %v3319_v7 = vpop.f32.mrb[104].mxu1  ;;  %v7785_v49 = vpop.f32.mrb[108].mxu0 }
0x1831   :  { %v6412_v45 = vpop.f32.mrb[105].mxu1  ;;  %v6436_v46 = vpop.f32.mrb[109].mxu0  ;;  %v3320_v58 = vadd.f32 %v5673_v34, %v3319_v7 }
0x1832   :  { %v3322_v40 = vpop.f32.mrb[106].mxu1  ;;  %v3520_v29 = vpop.f32.mrb[110].mxu0 }
0x1833   :  { %v7795_v54 = vadd.f32 %v5673_v34, %v3322_v40  ;;  %v7798_v59 = vadd.f32 %v7793_v38, %v3520_v29  ;;  %v6413_v32 = vpop.f32.mrb[107].mxu1  ;;  %v6437_v60 = vpop.f32.mrb[111].mxu0  ;;  %v3965_v8 = vpack.c.bf16 %v3320_v58, %v3320_v58 }
0x1835   :  { %6481 = vmatmul.mubr.msk.bf16.vlgmr.msra.gmra.mrb[120].mxu0 %vm1547_vm4, %v3854_v53 }
0x1836   :  { %6491 = vmatpush3.bf16.xpose.msra.mxu0 %v3972_v63  ;;  %6492 = vmatprep.mubr.msk.bf16.mxu0 %vm6846_vm0, %v6845_v1 }
0x1837   :  { %6502 = vmatprep.subr.bf16.mxu0 %v6845_v1 }
0x1838   :  { %v7805_v5 = vpop.f32.mrb[108].mxu1  ;;  %v7807_v24 = vpop.f32.mrb[112].mxu0 }
0x1839   :  { %v6428_v0 = vpop.f32.mrb[109].mxu1  ;;  %v6452_v55 = vpop.f32.mrb[113].mxu0 }
0x183a   :  { %v3454_v18 = vpop.f32.mrb[110].mxu1  ;;  %v3652_v22 = vpop.f32.mrb[114].mxu0 }
0x183b   :  { %v7820_v44 = vadd.f32 %v7812_v57, %v3454_v18  ;;  %v7823_v10 = vadd.f32 %v7817_v28, %v3652_v22  ;;  %v6429_v13 = vpop.f32.mrb[111].mxu1  ;;  %v6453_v12 = vpop.f32.mrb[115].mxu0 }
0x183d   :  { %6493 = vmatmul.mubr.msk.bf16.vlgmr.msra.gmra.mrb[124].mxu0 %vm1547_vm4, %v3965_v8 }
0x183e   :  { %6504 = vmatprep.mubr.msk.bf16.mxu0 %vm6846_vm0, %v6845_v1 }
0x1840   :  { %v7828_v9 = vpop.f32.mrb[112].mxu1  ;;  %v7830_v15 = vpop.f32.mrb[116].mxu0 }
0x1841   :  { %v6444_v14 = vpop.f32.mrb[113].mxu1  ;;  %v6468_v11 = vpop.f32.mrb[117].mxu0 }
0x1842   :  { %v3586_v17 = vpop.f32.mrb[114].mxu1  ;;  %v3784_v19 = vpop.f32.mrb[118].mxu0  ;;  %v3452_v14 = vadd.f32 %v7812_v57, %v7805_v5  ;;  %v5751_v5 = vld [vmem:[%s8152_s8 + $0x10] sm:$0xf] }
0x1843   :  { %v7843_v20 = vadd.f32 %v7835_v16, %v3586_v17  ;;  %v7846_v4 = vadd.f32 %v7840_v43, %v3784_v19  ;;  %v6445_v21 = vpop.f32.mrb[115].mxu1  ;;  %v6469_v47 = vpop.f32.mrb[119].mxu0 }
0x1844   :  { %v3967_v19 = vpack.c.bf16 %v3452_v14, %v3452_v14 }
0x1848   :  { %v7848_v51 = vpop.f32.mrb[116].mxu1 }
0x1849   :  { %v6460_v23 = vpop.f32.mrb[117].mxu1 }
0x184a   :  { %v3718_v25 = vpop.f32.mrb[118].mxu1  ;;  %v4031_v23 = vsel %vm1610_vm5, %v3967_v19, 0 }
0x184b   :  { %v7856_v27 = vadd.f32 %v7853_v26, %v3718_v25  ;;  %v6461_v48 = vpop.f32.mrb[119].mxu1 }
0x1850   :  { %v7858_v52 = vpop.f32.mrb[120].mxu1 }
0x1851   :  { %v6476_v30 = vpop.f32.mrb[121].mxu1 }
0x1852   :  { %v3850_v3 = vpop.f32.mrb[122].mxu1  ;;  %v7883_v30 = vsel %vm1610_vm5, %v5751_v5, 0 }
0x1853   :  { %v7866_v6 = vadd.f32 %v7863_v62, %v3850_v3  ;;  %v6477_v39 = vpop.f32.mrb[123].mxu1  ;;  %v5754_v3 = vld [vmem:[%s8152_s8 + $0x14] sm:$0xf] }
0x1854   :  { %v7894_v39 = vsel %vm1610_vm5, %v5754_v3, 0 }
0x1855   :  { %6503 = vmatpush3.bf16.msra.mxu0 %v7894_v39 }
0x1856   :  { %6514 = vmatprep.subr.bf16.mxu0 %v6845_v1 }
0x1908   :  { %v3897_v33 = vpop.f32.mrb[120].mxu0 }
0x1909   :  { %v3903_v36 = vmul.f32 0.35355338, %v3897_v33  ;;  %v6482_v37 = vpop.f32.mrb[121].mxu0  ;;  %v3650_v33 = vadd.f32 %v7817_v28, %v7807_v24 }
0x190a   :  { %v3900_v56 = vpop.f32.mrb[122].mxu0 }
0x190b   :  { %v6483_v7 = vpop.f32.mrb[123].mxu0  ;;  %v3904_v42 = vsel %vm1547_vm4, %v3903_v36, -inf }
0x190c   :  { %3905 = vmax.xlane.f32.xlu0 %v3904_v42 }
0x1910   :  { %v4008_v45 = vpop.f32.mrb[124].mxu0 }
0x1911   :  { %v4014_v46 = vmul.f32 0.35355338, %v4008_v45  ;;  %v6494_v34 = vpop.f32.mrb[125].mxu0 }
0x1912   :  { %v4011_v40 = vpop.f32.mrb[126].mxu0 }
0x1913   :  { %v6495_v29 = vpop.f32.mrb[127].mxu0  ;;  %v4015_v53 = vsel %vm1547_vm4, %v4014_v46, -inf }
0x1914   :  { %4016 = vmax.xlane.f32.xlu1 %v4015_v53 }
0x1999   :  { %v3906_v32 = vpop.xlane.xlu0 %3905 }
0x199a   :  { %v3907_v60 = vsub.f32 %v3903_v36, %v3906_v32  ;;  %v4170_v36 = vpack.c.bf16 %v3650_v33, %v3650_v33  ;;  %v3782_v33 = vadd.f32 %v7840_v43, %v7830_v15  ;;  %v3848_v15 = vadd.f32 %v7863_v62, %v7858_v52 }
0x199c   :  { %v3908_v63 = vmul.f32 1.442695, %v3907_v60  ;;  %v4234_v45 = vsel %vm1610_vm5, %v4170_v36, 0  ;;  %v4328_v43 = vpack.c.bf16 %v3848_v15, %v3848_v15 }
0x199e   :  { %6777 = vpow2.f32 %v3908_v63 }
0x19a1   :  { %v4017_v58 = vpop.xlane.xlu1 %4016 }
0x19a2   :  { %v4018_v0 = vsub.f32 %v4014_v46, %v4017_v58  ;;  %v3584_v46 = vadd.f32 %v7835_v16, %v7828_v9  ;;  %v3518_v9 = vadd.f32 %v7793_v38, %v7785_v49 }
0x19a4   :  { %v4019_v55 = vmul.f32 1.442695, %v4018_v0  ;;  %v4169_v24 = vpack.c.bf16 %v3584_v46, %v3584_v46  ;;  %v4168_v16 = vpack.c.bf16 %v3518_v9, %v3518_v9 }
0x19a6   :  { %6779 = vpow2.f32 %v4019_v55  ;;  %v4175_v32 = vsel %vm1547_vm4, %v4169_v24, 0 }
0x19a8   :  { %v6778_v18 = vpop.eup %6777 }
0x19a9   :  { %v3910_v22 = vsel %vm1547_vm4, %v6778_v18, 0.0 }
0x19aa   :  { %3911 = vadd.xlane.f32.xlu0 %v3910_v22 }
0x19b0   :  { %v6780_v8 = vpop.eup %6779 }
0x19b1   :  { %v4021_v13 = vsel %vm1547_vm4, %v6780_v8, 0.0 }
0x19b2   :  { %4022 = vadd.xlane.f32.xlu1 %v4021_v13 }
0x1a37   :  { %v3912_v12 = vpop.xlane.xlu0 %3911 }
0x1a38   :  { %6781 = vrcp.f32 %v3912_v12 }
0x1a3f   :  { %v4023_v11 = vpop.xlane.xlu1 %4022 }
0x1a40   :  { %6783 = vrcp.f32 %v4023_v11 }
0x1a42   :  { %v6782_v17 = vpop.eup %6781 }
0x1a43   :  { %v3914_v21 = vmul.f32 %v6782_v17, %v6778_v18 }
0x1a45   :  { %v3915_v47 = vpack.c.bf16 %v3914_v21, %v3914_v21 }
0x1a47   :  { %6487 = vmatmul.mubr.msk.bf16.vlgmr.msra.gmra.mrb[124].mxu1 %vm1547_vm4, %v3915_v47 }
0x1a48   :  { %6497 = vmatpush3.bf16.msra.mxu1 %v4031_v23  ;;  %6498 = vmatprep.mubr.msk.bf16.mxu1 %vm6846_vm0, %v6845_v1 }
0x1a49   :  { %6508 = vmatprep.subr.bf16.mxu1 %v6845_v1 }
0x1a4a   :  { %v6784_v25 = vpop.eup %6783 }
0x1a4b   :  { %v4025_v57 = vmul.f32 %v6784_v25, %v6780_v8 }
0x1a4d   :  { %v4026_v48 = vpack.c.bf16 %v4025_v57, %v4025_v57  ;;  %v5759_v57 = vld [vmem:[%s8152_s8 + $0x18] sm:$0xf] }
0x1a4f   :  { %6499 = vmatmul.mubr.msk.bf16.vlgmr.msra.gmra.mrb[128].mxu1 %vm1547_vm4, %v4026_v48  ;;  %v7925_v48 = vsel %vm1610_vm5, %v5759_v57, 0 }
0x1a50   :  { %6509 = vmatpush3.bf16.msra.mxu1 %v7883_v30  ;;  %6510 = vmatprep.mubr.msk.bf16.mxu1 %vm6846_vm0, %v6845_v1 }
0x1a51   :  { %6520 = vmatprep.subr.bf16.mxu1 %v6845_v1 }
0x1b1a   :  { %v3956_v37 = vpop.f32.mrb[124].mxu1 }
0x1b1b   :  { %v3962_v56 = vpack.c.bf16 %v3956_v37, %v3956_v37  ;;  %v6488_v7 = vpop.f32.mrb[125].mxu1  ;;  %v4327_v37 = vpack.c.bf16 %v3782_v33, %v3782_v33 }
0x1b1c   :  { %v3959_v42 = vpop.f32.mrb[126].mxu1 }
0x1b1d   :  { %v6489_v34 = vpop.f32.mrb[127].mxu1  ;;  %6511 = vmatmul.mubr.msk.bf16.vlgmr.msra.gmra.mrb[132].mxu1 %vm1547_vm4, %v3962_v56  ;;  %v4333_v42 = vsel %vm1547_vm4, %v4327_v37, 0 }
0x1b1e   :  { %6521 = vmatpush3.bf16.msra.mxu1 %v4234_v45  ;;  %6522 = vmatprep.mubr.msk.bf16.mxu1 %vm6846_vm0, %v6845_v1  ;;  %v3716_v45 = vadd.f32 %v7853_v26, %v7848_v51 }
0x1b1f   :  { %6532 = vmatprep.subr.bf16.mxu1 %v6845_v1 }
0x1b20   :  { %v4326_v46 = vpack.c.bf16 %v3716_v45, %v3716_v45 }
0x1b22   :  { %v4067_v28 = vpop.f32.mrb[128].mxu1 }
0x1b23   :  { %v4073_v40 = vpack.c.bf16 %v4067_v28, %v4067_v28  ;;  %v6500_v29 = vpop.f32.mrb[129].mxu1 }
0x1b24   :  { %v4070_v53 = vpop.f32.mrb[130].mxu1  ;;  %v4392_v29 = vsel %vm1610_vm5, %v4328_v43, 0 }
0x1b25   :  { %v6501_v60 = vpop.f32.mrb[131].mxu1  ;;  %6505 = vmatmul.mubr.msk.bf16.vlgmr.msra.gmra.mrb[128].mxu0 %vm1547_vm4, %v4073_v40 }
0x1b26   :  { %6515 = vmatpush3.bf16.xpose.msra.mxu0 %v4175_v32  ;;  %6516 = vmatprep.mubr.msk.bf16.mxu0 %vm6846_vm0, %v6845_v1 }
0x1b27   :  { %6526 = vmatprep.subr.bf16.mxu0 %v6845_v1 }
0x1b2d   :  { %6517 = vmatmul.mubr.msk.bf16.vlgmr.msra.gmra.mrb[132].mxu0 %vm1547_vm4, %v4168_v16 }
0x1b2e   :  { %6528 = vmatprep.mubr.msk.bf16.mxu0 %vm6846_vm0, %v6845_v1  ;;  %6527 = vmatpush3.bf16.msra.mxu0 %v7925_v48 }
0x1b2f   :  { %6538 = vmatprep.subr.bf16.mxu0 %v6845_v1 }
0x1bf0   :  { %v4162_v63 = vpop.f32.mrb[132].mxu1 }
0x1bf1   :  { %v6512_v58 = vpop.f32.mrb[133].mxu1 }
0x1bf2   :  { %v4165_v0 = vpop.f32.mrb[134].mxu1 }
0x1bf3   :  { %v6513_v55 = vpop.f32.mrb[135].mxu1 }
0x1bf8   :  { %v4116_v18 = vpop.f32.mrb[128].mxu0 }
0x1bf9   :  { %v7917_v22 = vadd.f32 %v4162_v63, %v4116_v18  ;;  %v6506_v8 = vpop.f32.mrb[129].mxu0 }
0x1bfa   :  { %v4119_v13 = vpop.f32.mrb[130].mxu0 }
0x1bfb   :  { %v6507_v12 = vpop.f32.mrb[131].mxu0  ;;  %v5763_v13 = vld [vmem:[%s8152_s8 + $0x1c] sm:$0xf] }
0x1c00   :  { %v4211_v14 = vpop.f32.mrb[132].mxu0 }
0x1c01   :  { %v4217_v49 = vmul.f32 0.35355338, %v4211_v14  ;;  %v6518_v38 = vpop.f32.mrb[133].mxu0  ;;  %v7957_v14 = vsel %vm1610_vm5, %v5763_v13, 0  ;;  %v4595_v13 = vpack.c.bf16 %v7820_v44, %v7820_v44  ;;  %v4790_v44 = vpack.c.bf16 %v7823_v10, %v7823_v10 }
0x1c02   :  { %v4214_v11 = vpop.f32.mrb[134].mxu0 }
0x1c03   :  { %v6519_v17 = vpop.f32.mrb[135].mxu0  ;;  %v4218_v19 = vsel %vm1547_vm4, %v4217_v49, -inf }
0x1c04   :  { %4219 = vmax.xlane.f32.xlu0 %v4218_v19 }
0x1c91   :  { %v4220_v21 = vpop.xlane.xlu0 %4219 }
0x1c92   :  { %v4221_v47 = vsub.f32 %v4217_v49, %v4220_v21 }
0x1c94   :  { %v4222_v23 = vmul.f32 1.442695, %v4221_v47  ;;  %v4594_v47 = vpack.c.bf16 %v7781_v35, %v7781_v35 }
0x1c96   :  { %6785 = vpow2.f32 %v4222_v23  ;;  %v4484_v23 = vpack.c.bf16 %v7767_v61, %v7767_v61  ;;  %v4486_v61 = vpack.c.bf16 %v7769_v2, %v7769_v2 }
0x1c98   :  { %v4550_v33 = vsel %vm1610_vm5, %v4486_v61, 0 }
0x1ca0   :  { %v6786_v25 = vpop.eup %6785 }
0x1ca1   :  { %v4224_v5 = vsel %vm1547_vm4, %v6786_v25, 0.0 }
0x1ca2   :  { %4225 = vadd.xlane.f32.xlu1 %v4224_v5 }
0x1d2f   :  { %v4226_v3 = vpop.xlane.xlu1 %4225 }
0x1d30   :  { %6787 = vrcp.f32 %v4226_v3 }
0x1d3a   :  { %v6788_v36 = vpop.eup %6787 }
0x1d3b   :  { %v4228_v56 = vmul.f32 %v6788_v36, %v6786_v25  ;;  %v4593_v25 = vpack.c.bf16 %v7795_v54, %v7795_v54 }
0x1d3d   :  { %v4229_v7 = vpack.c.bf16 %v4228_v56, %v4228_v56 }
0x1d3f   :  { %6523 = vmatmul.mubr.msk.bf16.vlgmr.msra.gmra.mrb[136].mxu1 %vm1547_vm4, %v4229_v7 }
0x1d40   :  { %6533 = vmatpush3.bf16.xpose.msra.mxu1 %v4333_v42  ;;  %6534 = vmatprep.mubr.msk.bf16.mxu1 %vm6846_vm0, %v6845_v1 }
0x1d41   :  { %6544 = vmatprep.subr.bf16.mxu1 %v6845_v1 }
0x1d47   :  { %6535 = vmatmul.mubr.msk.bf16.vlgmr.msra.gmra.mrb[140].mxu1 %vm1547_vm4, %v4326_v46 }
0x1d48   :  { %6546 = vmatprep.mubr.msk.bf16.mxu1 %vm6846_vm0, %v6845_v1  ;;  %6545 = vmatpush3.bf16.msra.mxu1 %v7957_v14 }
0x1d49   :  { %6556 = vmatprep.subr.bf16.mxu1 %v6845_v1 }
0x1e12   :  { %v4270_v34 = vpop.f32.mrb[136].mxu1 }
0x1e13   :  { %v4276_v24 = vpack.c.bf16 %v4270_v34, %v4270_v34  ;;  %v6524_v28 = vpop.f32.mrb[137].mxu1 }
0x1e14   :  { %v4273_v40 = vpop.f32.mrb[138].mxu1 }
0x1e15   :  { %v6525_v53 = vpop.f32.mrb[139].mxu1  ;;  %6529 = vmatmul.mubr.msk.bf16.vlgmr.msra.gmra.mrb[136].mxu0 %vm1547_vm4, %v4276_v24 }
0x1e16   :  { %6539 = vmatpush3.bf16.msra.mxu0 %v4392_v29  ;;  %6540 = vmatprep.mubr.msk.bf16.mxu0 %vm6846_vm0, %v6845_v1 }
0x1e17   :  { %6550 = vmatprep.subr.bf16.mxu0 %v6845_v1 }
0x1e1a   :  { %v4369_v51 = vpop.f32.mrb[140].mxu1 }
0x1e1b   :  { %v4375_v26 = vmul.f32 0.35355338, %v4369_v51  ;;  %v6536_v32 = vpop.f32.mrb[141].mxu1 }
0x1e1c   :  { %v4372_v52 = vpop.f32.mrb[142].mxu1 }
0x1e1d   :  { %v6537_v62 = vpop.f32.mrb[143].mxu1  ;;  %v4376_v60 = vsel %vm1547_vm4, %v4375_v26, -inf }
0x1e1e   :  { %4377 = vmax.xlane.f32.xlu0 %v4376_v60 }
0x1eab   :  { %v4378_v9 = vpop.xlane.xlu0 %4377 }
0x1eac   :  { %v4379_v16 = vsub.f32 %v4375_v26, %v4378_v9 }
0x1eae   :  { %v4380_v63 = vmul.f32 1.442695, %v4379_v16 }
0x1eb0   :  { %6789 = vpow2.f32 %v4380_v63 }
0x1eba   :  { %v6790_v58 = vpop.eup %6789 }
0x1ebb   :  { %v4382_v0 = vsel %vm1547_vm4, %v6790_v58, 0.0 }
0x1ebc   :  { %4383 = vadd.xlane.f32.xlu1 %v4382_v0 }
0x1ee8   :  { %v4319_v55 = vpop.f32.mrb[136].mxu0 }
0x1ee9   :  { %v7951_v18 = vadd.f32 %v4319_v55, %v7917_v22  ;;  %v6530_v8 = vpop.f32.mrb[137].mxu0  ;;  %v4485_v22 = vpack.c.bf16 %v7779_v31, %v7779_v31  ;;  %v4600_v31 = vsel %vm1547_vm4, %v4594_v47, 0 }
0x1eea   :  { %v4322_v12 = vpop.f32.mrb[138].mxu0 }
0x1eeb   :  { %v6531_v49 = vpop.f32.mrb[139].mxu0  ;;  %v4491_v21 = vsel %vm1547_vm4, %v4485_v22, 0 }
0x1f49   :  { %v4384_v38 = vpop.xlane.xlu1 %4383 }
0x1f4a   :  { %6791 = vrcp.f32 %v4384_v38  ;;  %v4659_v38 = vsel %vm1610_vm5, %v4595_v13, 0 }
0x1f54   :  { %v6792_v11 = vpop.eup %6791 }
0x1f55   :  { %v4386_v17 = vmul.f32 %v6792_v11, %v6790_v58 }
0x1f57   :  { %v4387_v19 = vpack.c.bf16 %v4386_v17, %v4386_v17 }
0x1f59   :  { %6541 = vmatmul.mubr.msk.bf16.vlgmr.msra.gmra.mrb[140].mxu0 %vm1547_vm4, %v4387_v19 }
0x1f5a   :  { %6551 = vmatpush3.bf16.xpose.msra.mxu0 %v4491_v21  ;;  %6552 = vmatprep.mubr.msk.bf16.mxu0 %vm6846_vm0, %v6845_v1 }
0x1f5b   :  { %6562 = vmatprep.subr.bf16.mxu0 %v6845_v1 }
0x1f61   :  { %6553 = vmatmul.mubr.msk.bf16.vlgmr.msra.gmra.mrb[144].mxu0 %vm1547_vm4, %v4484_v23  ;;  %v4854_v23 = vsel %vm1610_vm5, %v4790_v44, 0 }
0x1f62   :  { %6563 = vmatpush3.bf16.xpose.msra.mxu0 %v4600_v31  ;;  %6564 = vmatprep.mubr.msk.bf16.mxu0 %vm6846_vm0, %v6845_v1 }
0x1f63   :  { %6574 = vmatprep.subr.bf16.mxu0 %v6845_v1 }
0x1f69   :  { %6565 = vmatmul.mubr.msk.bf16.vlgmr.msra.gmra.mrb[148].mxu0 %vm1547_vm4, %v4593_v25 }
0x1f6a   :  { %6575 = vmatpush3.bf16.msra.mxu0 %v7894_v39  ;;  %6576 = vmatprep.mubr.msk.bf16.mxu0 %vm6846_vm0, %v6845_v1 }
0x1f6b   :  { %6586 = vmatprep.subr.bf16.mxu0 %v6845_v1 }
0x202c   :  { %v4428_v35 = vpop.f32.mrb[140].mxu0 }
0x202d   :  { %v4434_v5 = vpack.c.bf16 %v4428_v35, %v4428_v35  ;;  %v6542_v57 = vpop.f32.mrb[141].mxu0 }
0x202e   :  { %v4431_v3 = vpop.f32.mrb[142].mxu0 }
0x202f   :  { %v6543_v36 = vpop.f32.mrb[143].mxu0  ;;  %6547 = vmatmul.mubr.msk.bf16.vlgmr.msra.gmra.mrb[144].mxu1 %vm1547_vm4, %v4434_v5  ;;  %v4788_v3 = vpack.c.bf16 %v7798_v59, %v7798_v59 }
0x2030   :  { %6557 = vmatpush3.bf16.msra.mxu1 %v4550_v33  ;;  %6558 = vmatprep.mubr.msk.bf16.mxu1 %vm6846_vm0, %v6845_v1 }
0x2031   :  { %6568 = vmatprep.subr.bf16.mxu1 %v6845_v1 }
0x2034   :  { %v4527_v54 = vpop.f32.mrb[144].mxu0 }
0x2035   :  { %v4533_v39 = vmul.f32 0.35355338, %v4527_v54  ;;  %v6554_v37 = vpop.f32.mrb[145].mxu0 }
0x2036   :  { %v4530_v56 = vpop.f32.mrb[146].mxu0 }
0x2037   :  { %v6555_v2 = vpop.f32.mrb[147].mxu0  ;;  %v4534_v7 = vsel %vm1547_vm4, %v4533_v39, -inf }
0x2038   :  { %4535 = vmax.xlane.f32.xlu0 %v4534_v7 }
0x203c   :  { %v4636_v42 = vpop.f32.mrb[148].mxu0 }
0x203d   :  { %v4642_v45 = vmul.f32 0.35355338, %v4636_v42  ;;  %v6566_v46 = vpop.f32.mrb[149].mxu0 }
0x203e   :  { %v4639_v15 = vpop.f32.mrb[150].mxu0 }
0x203f   :  { %v6567_v43 = vpop.f32.mrb[151].mxu0  ;;  %v4643_v34 = vsel %vm1547_vm4, %v4642_v45, -inf }
0x2040   :  { %4644 = vmax.xlane.f32.xlu1 %v4643_v34 }
0x20c5   :  { %v4536_v24 = vpop.xlane.xlu0 %4535 }
0x20c6   :  { %v4537_v28 = vsub.f32 %v4533_v39, %v4536_v24 }
0x20c8   :  { %v4538_v40 = vmul.f32 1.442695, %v4537_v28 }
0x20ca   :  { %6793 = vpow2.f32 %v4538_v40 }
0x20cd   :  { %v4645_v29 = vpop.xlane.xlu1 %4644 }
0x20ce   :  { %v4646_v53 = vsub.f32 %v4642_v45, %v4645_v29 }
0x20d0   :  { %v4647_v51 = vmul.f32 1.442695, %v4646_v53 }
0x20d2   :  { %6795 = vpow2.f32 %v4647_v51  ;;  %v4942_v51 = vpack.c.bf16 %v7846_v4, %v7846_v4  ;;  %v4943_v4 = vpack.c.bf16 %v7866_v6, %v7866_v6 }
0x20d4   :  { %v6794_v26 = vpop.eup %6793 }
0x20d5   :  { %v4540_v32 = vsel %vm1547_vm4, %v6794_v26, 0.0 }
0x20d6   :  { %4541 = vadd.xlane.f32.xlu0 %v4540_v32 }
0x20dc   :  { %v6796_v52 = vpop.eup %6795 }
0x20dd   :  { %v4649_v62 = vsel %vm1547_vm4, %v6796_v52, 0.0 }
0x20de   :  { %4650 = vadd.xlane.f32.xlu1 %v4649_v62  ;;  %v4941_v62 = vpack.c.bf16 %v7856_v27, %v7856_v27  ;;  %v5778_v27 = vld [vmem:[%s8153_s9 + $0x1] ss:$0 sm:$0xff]  ;;  %s6847_s9 = smov [#allocation2]  }
0x20df   :  { %s5442_s27 = sshll.u32 %s6847_s9, 4  ;;  %s5443_s27 = int_to_ptr.vmem [resolvable:$true] %s5442_s27 }
0x20e0   :  { %p6826_p1 = scmp.lt.s32.totalorder %s5443_s27, %s5443_s27 }
0x2102   :  { %v4477_v60 = vpop.f32.mrb[144].mxu1 }
0x2103   :  { %v7996_v9 = vadd.f32 %v4477_v60, %v7951_v18  ;;  %v6548_v16 = vpop.f32.mrb[145].mxu1 }
0x2104   :  { %v4480_v63 = vpop.f32.mrb[146].mxu1 }
0x2105   :  { %v6549_v58 = vpop.f32.mrb[147].mxu1  ;;  %v5102_v6 = vadd.f32 %v5778_v27, %v7996_v9 }
0x2163   :  { %v4542_v0 = vpop.xlane.xlu0 %4541 }
0x2164   :  { %6797 = vrcp.f32 %v4542_v0  ;;  %v5007_v0 = vsel %vm1610_vm5, %v4943_v4, 0 }
0x216b   :  { %v4651_v55 = vpop.xlane.xlu1 %4650 }
0x216c   :  { %6799 = vrcp.f32 %v4651_v55 }
0x216e   :  { %v6798_v8 = vpop.eup %6797 }
0x216f   :  { %v4544_v12 = vmul.f32 %v6798_v8, %v6794_v26 }
0x2171   :  { %v4545_v49 = vpack.c.bf16 %v4544_v12, %v4544_v12 }
0x2173   :  { %6559 = vmatmul.mubr.msk.bf16.vlgmr.msra.gmra.mrb[148].mxu1 %vm1547_vm4, %v4545_v49 }
0x2174   :  { %6569 = vmatpush3.bf16.msra.mxu1 %v4659_v38  ;;  %6570 = vmatprep.mubr.msk.bf16.mxu1 %vm6846_vm0, %v6845_v1 }
0x2175   :  { %6580 = vmatprep.subr.bf16.mxu1 %v6845_v1 }
0x2176   :  { %v6800_v18 = vpop.eup %6799 }
0x2177   :  { %v4653_v11 = vmul.f32 %v6800_v18, %v6796_v52  ;;  %v4948_v52 = vsel %vm1547_vm4, %v4942_v51, 0  ;;  %v5104_v18 = vadd.f32 %v5102_v6, %v7625_v50 }
0x2179   :  { %v4654_v22 = vpack.c.bf16 %v4653_v11, %v4653_v11  ;;  %v5106_v11 = vsel %vm96_vm1, %v5104_v18, 0.0 }
0x217b   :  { %6571 = vmatmul.mubr.msk.bf16.vlgmr.msra.gmra.mrb[152].mxu1 %vm1547_vm4, %v4654_v22 }
0x217c   :  { %6581 = vmatpush3.bf16.msra.mxu1 %v7883_v30  ;;  %6582 = vmatprep.mubr.msk.bf16.mxu1 %vm6846_vm0, %v6845_v1  ;;  %v4789_v30 = vpack.c.bf16 %v7843_v20, %v7843_v20 }
0x217d   :  { %6592 = vmatprep.subr.bf16.mxu1 %v6845_v1 }
0x217e   :  { %v4795_v5 = vsel %vm1547_vm4, %v4789_v30, 0 }
0x2246   :  { %v4586_v17 = vpop.f32.mrb[148].mxu1 }
0x2247   :  { %v4592_v19 = vpack.c.bf16 %v4586_v17, %v4586_v17  ;;  %v6560_v21 = vpop.f32.mrb[149].mxu1 }
0x2248   :  { %v4589_v47 = vpop.f32.mrb[150].mxu1 }
0x2249   :  { %v6561_v31 = vpop.f32.mrb[151].mxu1  ;;  %6583 = vmatmul.mubr.msk.bf16.vlgmr.msra.gmra.mrb[156].mxu1 %vm1547_vm4, %v4592_v19 }
0x224a   :  { %6593 = vmatpush3.bf16.msra.mxu1 %v4854_v23  ;;  %6594 = vmatprep.mubr.msk.bf16.mxu1 %vm6846_vm0, %v6845_v1 }
0x224b   :  { %6604 = vmatprep.subr.bf16.mxu1 %v6845_v1 }
0x224e   :  { %v4695_v25 = vpop.f32.mrb[152].mxu1 }
0x224f   :  { %v4701_v10 = vpack.c.bf16 %v4695_v25, %v4695_v25  ;;  %v6572_v61 = vpop.f32.mrb[153].mxu1 }
0x2250   :  { %v4698_v35 = vpop.f32.mrb[154].mxu1 }
0x2251   :  { %v6573_v57 = vpop.f32.mrb[155].mxu1  ;;  %6577 = vmatmul.mubr.msk.bf16.vlgmr.msra.gmra.mrb[152].mxu0 %vm1547_vm4, %v4701_v10 }
0x2252   :  { %6587 = vmatpush3.bf16.xpose.msra.mxu0 %v4795_v5  ;;  %6588 = vmatprep.mubr.msk.bf16.mxu0 %vm6846_vm0, %v6845_v1 }
0x2253   :  { %6598 = vmatprep.subr.bf16.mxu0 %v6845_v1 }
0x2259   :  { %6589 = vmatmul.mubr.msk.bf16.vlgmr.msra.gmra.mrb[156].mxu0 %vm1547_vm4, %v4788_v3 }
0x225a   :  { %6599 = vmatpush3.bf16.msra.mxu0 %v7925_v48  ;;  %6600 = vmatprep.mubr.msk.bf16.mxu0 %vm6846_vm0, %v6845_v1 }
0x225b   :  { %6610 = vmatprep.subr.bf16.mxu0 %v6845_v1 }
0x231c   :  { %v4782_v20 = vpop.f32.mrb[156].mxu1 }
0x231d   :  { %v6584_v33 = vpop.f32.mrb[157].mxu1 }
0x231e   :  { %v4785_v36 = vpop.f32.mrb[158].mxu1 }
0x231f   :  { %v6585_v54 = vpop.f32.mrb[159].mxu1 }
0x2324   :  { %v4739_v39 = vpop.f32.mrb[152].mxu0 }
0x2325   :  { %v8031_v37 = vadd.f32 %v4782_v20, %v4739_v39  ;;  %v6578_v56 = vpop.f32.mrb[153].mxu0 }
0x2326   :  { %v4742_v2 = vpop.f32.mrb[154].mxu0 }
0x2327   :  { %v6579_v7 = vpop.f32.mrb[155].mxu0 }
0x232c   :  { %v4831_v59 = vpop.f32.mrb[156].mxu0 }
0x232d   :  { %v4837_v42 = vmul.f32 0.35355338, %v4831_v59  ;;  %v6590_v45 = vpop.f32.mrb[157].mxu0 }
0x232e   :  { %v4834_v46 = vpop.f32.mrb[158].mxu0 }
0x232f   :  { %v6591_v48 = vpop.f32.mrb[159].mxu0  ;;  %v4838_v15 = vsel %vm1547_vm4, %v4837_v42, -inf }
0x2330   :  { %4839 = vmax.xlane.f32.xlu0 %v4838_v15 }
0x23bd   :  { %v4840_v43 = vpop.xlane.xlu0 %4839 }
0x23be   :  { %v4841_v34 = vsub.f32 %v4837_v42, %v4840_v43 }
0x23c0   :  { %v4842_v24 = vmul.f32 1.442695, %v4841_v34 }
0x23c2   :  { %6801 = vpow2.f32 %v4842_v24 }
0x23cc   :  { %v6802_v28 = vpop.eup %6801 }
0x23cd   :  { %v4844_v40 = vsel %vm1547_vm4, %v6802_v28, 0.0 }
0x23ce   :  { %4845 = vadd.xlane.f32.xlu1 %v4844_v40  ;;  %v6721_v40 = vld [vmem:[%s8156_s12 + $0x10] sm:$0xff]  }
0x245b   :  { %v4846_v29 = vpop.xlane.xlu1 %4845 }
0x245c   :  { %6803 = vrcp.f32 %v4846_v29  ;;  %v6722_v29 = vld [vmem:[%s8156_s12 + $0x18] sm:$0xff]  }
0x2466   :  { %v6804_v53 = vpop.eup %6803 }
0x2467   :  { %v4848_v26 = vmul.f32 %v6804_v53, %v6802_v28 }
0x2469   :  { %v4849_v32 = vpack.c.bf16 %v4848_v26, %v4848_v26 }
0x246b   :  { %6595 = vmatmul.mubr.msk.bf16.vlgmr.msra.gmra.mrb[160].mxu1 %vm1547_vm4, %v4849_v32 }
0x246c   :  { %6605 = vmatpush3.bf16.xpose.msra.mxu1 %v4948_v52  ;;  %6606 = vmatprep.mubr.msk.bf16.mxu1 %vm6846_vm0, %v6845_v1 }
0x246d   :  { %6616 = vmatprep.subr.bf16.mxu1 %v6845_v1 }
0x2473   :  { %6607 = vmatmul.mubr.msk.bf16.vlgmr.msra.gmra.mrb[164].mxu1 %vm1547_vm4, %v4941_v62 }
0x2474   :  { %6617 = vmatpush3.bf16.msra.mxu1 %v7957_v14  ;;  %6618 = vmatprep.mubr.msk.bf16.mxu1 %vm6846_vm0, %v6845_v1 }
0x2475   :  { %6630 = vmatprep.subr.bf16.mxu1 %v6845_v1 }
0x253e   :  { %v4890_v60 = vpop.f32.mrb[160].mxu1 }
0x253f   :  { %v4896_v16 = vpack.c.bf16 %v4890_v60, %v4890_v60  ;;  %v6596_v63 = vpop.f32.mrb[161].mxu1  ;;  %v5780_v60 = vld [vmem:[%s8154_s10 + $0x1] ss:$0 sm:$0xff] }
0x2540   :  { %v4893_v58 = vpop.f32.mrb[162].mxu1 }
0x2541   :  { %v6597_v55 = vpop.f32.mrb[163].mxu1  ;;  %6601 = vmatmul.mubr.msk.bf16.vlgmr.msra.gmra.mrb[160].mxu0 %vm1547_vm4, %v4896_v16 }
0x2542   :  { %6611 = vmatpush3.bf16.msra.mxu0 %v5007_v0  ;;  %6612 = vmatprep.mubr.msk.bf16.mxu0 %vm6846_vm0, %v6845_v1  ;;  %v5782_v0 = vld [vmem:[%s8155_s11 + $0x1] ss:$0 sm:$0xff] }
0x2543   :  { %6622 = vmatprep.subr.bf16.mxu0 %v6845_v1 }
0x2546   :  { %v4984_v14 = vpop.f32.mrb[164].mxu1 }
0x2547   :  { %v4990_v8 = vmul.f32 0.35355338, %v4984_v14  ;;  %v6608_v13 = vpop.f32.mrb[165].mxu1 }
0x2548   :  { %v4987_v12 = vpop.f32.mrb[166].mxu1  ;;  %v6724_v13 = vld [vmem:[%s8158_s14 + $0x28] sm:$0xff]  }
0x2549   :  { %v6609_v49 = vpop.f32.mrb[167].mxu1  ;;  %v4991_v38 = vsel %vm1547_vm4, %v4990_v8, -inf  ;;  %v6725_v12 = vld [vmem:[%s8158_s14 + $0x30] sm:$0xff]  }
0x254a   :  { %4992 = vmax.xlane.f32.xlu0 %v4991_v38  ;;  %v6726_v49 = vld [vmem:[%s8158_s14 + $0x38] sm:$0xff]   ;;  %v5788_v38 = vld [vmem:[%s8157_s13 + $0x1] ss:$0 sm:$0xff] }
0x254e   :  { %5107 = vadd.xlane.f32.xlu0 %v5106_v11 }
0x25d7   :  { %v4993_v22 = vpop.xlane.xlu0 %4992 }
0x25d8   :  { %v4994_v44 = vsub.f32 %v4990_v8, %v4993_v22  ;;  %v6723_v8 = vld [vmem:[%s8158_s14 + $0x20] sm:$0xff]  }
0x25da   :  { %v4995_v17 = vmul.f32 1.442695, %v4994_v44 }
0x25db   :  { %v5108_v19 = vpop.xlane.xlu0 %5107 }
0x25dc   :  { %6805 = vpow2.f32 %v4995_v17  ;;  %v5112_v21 = vmul.f32 0.03125, %v5108_v19 }
0x25de   :  { %v5114_v9 = vsub.f32 %v5104_v18, %v5112_v21 }
0x25e0   :  { %v5116_v47 = vmul.f32 %v5114_v9, %v5114_v9 }
0x25e2   :  { %v5118_v23 = vsel %vm96_vm1, %v5116_v47, 0.0 }
0x25e3   :  { %5119 = vadd.xlane.f32.xlu0 %v5118_v23 }
0x25e6   :  { %v6806_v31 = vpop.eup %6805 }
0x25e7   :  { %v4997_v30 = vsel %vm1547_vm4, %v6806_v31, 0.0 }
0x25e8   :  { %4998 = vadd.xlane.f32.xlu1 %v4997_v30 }
0x2614   :  { %v4934_v50 = vpop.f32.mrb[160].mxu0 }
0x2615   :  { %v4940_v25 = vadd.f32 %v4934_v50, %v8031_v37  ;;  %v6602_v10 = vpop.f32.mrb[161].mxu0 }
0x2616   :  { %v4937_v61 = vpop.f32.mrb[162].mxu0 }
0x2617   :  { %v6603_v35 = vpop.f32.mrb[163].mxu0 }
0x2675   :  { %v4999_v5 = vpop.xlane.xlu1 %4998 }
0x2676   :  { %6807 = vrcp.f32 %v4999_v5 }
0x2680   :  { %v6808_v57 = vpop.eup %6807 }
0x2681   :  { %v5001_v3 = vmul.f32 %v6808_v57, %v6806_v31 }
0x2683   :  { %v5002_v20 = vpack.c.bf16 %v5001_v3, %v5001_v3 }
0x2685   :  { %6613 = vmatmul.mubr.msk.bf16.vlgmr.msra.gmra.mrb[164].mxu0 %vm1547_vm4, %v5002_v20 }
0x2686   :  { %6626 = vmatprep.mubr.msk.bf16.mxu0 %vm6846_vm0, %v6845_v1  ;;  %6623 = vmatpush3.bf16.msra.mxu0 %v6721_v40 }
0x2687   :  { %6624 = vmatprep.subr.bf16.mxu0 %v6845_v1 }
0x268a   :  { %6625 = vmatpush3.bf16.msra.mxu0 %v6722_v29 }
0x268b   :  { %6642 = vmatprep.subr.bf16.mxu0 %v6845_v1 }
0x2758   :  { %v5043_v33 = vpop.f32.mrb[164].mxu0 }
0x2759   :  { %v5049_v36 = vpack.c.bf16 %v5043_v33, %v5043_v33  ;;  %v6614_v54 = vpop.f32.mrb[165].mxu0 }
0x275a   :  { %v5046_v39 = vpop.f32.mrb[166].mxu0 }
0x275b   :  { %v6615_v56 = vpop.f32.mrb[167].mxu0  ;;  %6619 = vmatmul.mubr.msk.bf16.vlgmr.msra.gmra.mrb[168].mxu1 %vm1547_vm4, %v5049_v36 }
0x275c   :  { %6638 = vmatprep.mubr.msk.bf16.mxu1 %vm6846_vm0, %v6845_v1  ;;  %6631 = vmatpush3.bf16.msra.mxu1 %v6723_v8  ;;  %v5801_v56 = vld [vmem:[%s8159_s15 + $0x1] ss:$0 sm:$0xff] }
0x275d   :  { %6632 = vmatprep.subr.bf16.mxu1 %v6845_v1 }
0x2760   :  { %6633 = vmatpush3.bf16.msra.mxu1 %v6724_v13 }
0x2761   :  { %6634 = vmatprep.subr.bf16.mxu1 %v6845_v1 }
0x2764   :  { %6635 = vmatpush3.bf16.msra.mxu1 %v6725_v12 }
0x2765   :  { %6636 = vmatprep.subr.bf16.mxu1 %v6845_v1 }
0x2768   :  { %6637 = vmatpush3.bf16.msra.mxu1 %v6726_v49 }
0x282e   :  { %v5087_v37 = vpop.f32.mrb[168].mxu1 }
0x282f   :  { %v5093_v2 = vadd.f32 %v5087_v37, %v4940_v25  ;;  %v6620_v7 = vpop.f32.mrb[169].mxu1 }
0x2830   :  { %v5090_v59 = vpop.f32.mrb[170].mxu1 }
0x2831   :  { %v5103_v42 = vadd.f32 %v5778_v27, %v5093_v2  ;;  %v6621_v45 = vpop.f32.mrb[171].mxu1 }
0x2833   :  { %v5105_v46 = vadd.f32 %v5103_v42, %v7627_v41  ;;  %v5120_v41 = vpop.xlane.xlu0 %5119 }
0x2834   :  { %v5124_v53 = vmul.f32 0.03125, %v5120_v41 }
0x2835   :  { %v5109_v48 = vsel %vm96_vm1, %v5105_v46, 0.0 }
0x2836   :  { %5110 = vadd.xlane.f32.xlu1 %v5109_v48  ;;  %v5126_v51 = vadd.f32 1e-05, %v5124_v53 }
0x2838   :  { %6809 = vrsqrt.f32 %v5126_v51 }
0x2842   :  { %v6810_v62 = vpop.eup %6809 }
0x2843   :  { %v5130_v4 = vmul.f32 %v6810_v62, %v5114_v9  ;;  %v6728_v62 = vld [vmem:[%s8162_s18 + $0x8] sm:$0xff]  }
0x2845   :  { %v5140_v63 = vmul.f32 %v5780_v60, %v5130_v4 }
0x2847   :  { %v5150_v27 = vadd.f32 %v5782_v0, %v5140_v63 }
0x28c3   :  { %v5111_v15 = vpop.xlane.xlu1 %5110 }
0x28c4   :  { %v5113_v43 = vmul.f32 0.03125, %v5111_v15 }
0x28c6   :  { %v5115_v34 = vsub.f32 %v5105_v46, %v5113_v43 }
0x28c8   :  { %v5117_v24 = vmul.f32 %v5115_v34, %v5115_v34 }
0x28ca   :  { %v5121_v28 = vsel %vm96_vm1, %v5117_v24, 0.0 }
0x28cb   :  { %5122 = vadd.xlane.f32.xlu1 %v5121_v28 }
0x2958   :  { %v5123_v26 = vpop.xlane.xlu1 %5122 }
0x2959   :  { %v5125_v32 = vmul.f32 0.03125, %v5123_v26 }
0x295b   :  { %v5127_v52 = vadd.f32 1e-05, %v5125_v32 }
0x295d   :  { %6811 = vrsqrt.f32 %v5127_v52  ;;  %v6727_v52 = vld [vmem:[%s8162_s18] sm:$0xff]  }
0x2967   :  { %v6812_v16 = vpop.eup %6811 }
0x2968   :  { %v5131_v58 = vmul.f32 %v6812_v16, %v5115_v34 }
0x296a   :  { %v5141_v55 = vmul.f32 %v5780_v60, %v5131_v58 }
0x296c   :  { %v5151_v6 = vadd.f32 %v5782_v0, %v5141_v55 }
0x296e   :  { %v5152_v14 = vpack.c.bf16 %v5151_v6, %v5150_v27 }
0x2970   :  { %6627 = vmatmul.mubr.msk.bf16.vlgmr.msra.gmra.mrb[168].mxu0 %vm96_vm1, %v5152_v14 }
0x2971   :  { %6646 = vmatprep.mubr.msk.bf16.mxu0 %vm6846_vm0, %v6845_v1  ;;  %6643 = vmatpush3.bf16.msra.mxu0 %v6727_v52 }
0x2972   :  { %6644 = vmatprep.subr.bf16.mxu0 %v6845_v1  ;;  %v5810_v1 = vld [vmem:[%s8161_s17 + $0x1] ss:$0 sm:$0xff] }
0x2975   :  { %6645 = vmatpush3.bf16.msra.mxu0 %v6728_v62 }
0x2a43   :  { %v5215_v18 = vpop.f32.mrb[168].mxu0 }
0x2a44   :  { %v5216_v11 = vadd.f32 %v5788_v38, %v5215_v18  ;;  %v6628_v22 = vpop.f32.mrb[169].mxu0 }
0x2a45   :  { %v5218_v44 = vpop.f32.mrb[170].mxu0 }
0x2a46   :  { %v5224_v17 = vmul.f32 0.044715, %v5216_v11  ;;  %v5219_v19 = vadd.f32 %v5788_v38, %v5218_v44  ;;  %v6629_v21 = vpop.f32.mrb[171].mxu0  ;;  %v5222_v3 = vmul.f32 0.5, %v5216_v11 }
0x2a48   :  { %v5226_v9 = vmul.f32 %v5224_v17, %v5216_v11  ;;  %v5225_v47 = vmul.f32 0.044715, %v5219_v19  ;;  %v5223_v20 = vmul.f32 0.5, %v5219_v19 }
0x2a4a   :  { %v5228_v23 = vmul.f32 %v5226_v9, %v5216_v11  ;;  %v5227_v31 = vmul.f32 %v5225_v47, %v5219_v19 }
0x2a4c   :  { %v5230_v30 = vadd.f32 %v5228_v23, %v5216_v11  ;;  %v5229_v50 = vmul.f32 %v5227_v31, %v5219_v19 }
0x2a4e   :  { %v5232_v25 = vmul.f32 0.7978846, %v5230_v30  ;;  %v5231_v10 = vadd.f32 %v5229_v50, %v5219_v19 }
0x2a50   :  { %6813 = vtanh.f32 %v5232_v25  ;;  %v5233_v61 = vmul.f32 0.7978846, %v5231_v10 }
0x2a52   :  { %6815 = vtanh.f32 %v5233_v61 }
0x2a5a   :  { %v6814_v35 = vpop.eup %6813 }
0x2a5b   :  { %v5236_v5 = vadd.f32 1.0, %v6814_v35 }
0x2a5c   :  { %v6816_v57 = vpop.eup %6815 }
0x2a5d   :  { %v5237_v33 = vadd.f32 1.0, %v6816_v57  ;;  %v5238_v36 = vmul.f32 %v5236_v5, %v5222_v3 }
0x2a5f   :  { %v5239_v54 = vmul.f32 %v5237_v33, %v5223_v20 }
0x2a61   :  { %v5240_v39 = vpack.c.bf16 %v5239_v54, %v5238_v36 }
0x2a63   :  { %6639 = vmatmul.mubr.msk.bf16.vlgmr.msra.gmra.mrb[172].mxu1 %vm2967_vm6, %v5240_v39 }
0x2b36   :  { %v5319_v37 = vpop.f32.mrb[172].mxu1 }
0x2b37   :  { %v5320_v2 = vadd.f32 %v5801_v56, %v5319_v37  ;;  %v6640_v7 = vpop.f32.mrb[173].mxu1 }
0x2b38   :  { %v5322_v59 = vpop.f32.mrb[174].mxu1 }
0x2b39   :  { %v5323_v42 = vadd.f32 %v5801_v56, %v5322_v59  ;;  %v6641_v45 = vpop.f32.mrb[175].mxu1  ;;  %v5326_v46 = vadd.f32 %v5320_v2, %v5150_v27  ;;  %v5808_v27 = vld [vmem:[%s8160_s16 + $0x1] ss:$0 sm:$0xff]  ;;  %s6821_s16 = scalar_lea.vmem %s5443_s27, 256 }
0x2b3a   :  { %p6822_p0 = scmp.ne.s32.totalorder %s5443_s27, %s6821_s16  ;;  %p6827_p2 = scmp.lt.s32.totalorder %s6821_s16, %s6821_s16 }
0x2b3b   :  { %v5328_v48 = vsel %vm96_vm1, %v5326_v46, 0.0  ;;  %v5327_v15 = vadd.f32 %v5323_v42, %v5151_v6 }
0x2b3c   :  { %5329 = vadd.xlane.f32.xlu0 %v5328_v48  ;;  %p6828_p3 = por %p6827_p2, %p6826_p1 }
0x2b3d   :  { %v5331_v43 = vsel %vm96_vm1, %v5327_v15, 0.0 }
0x2b3e   :  { %5332 = vadd.xlane.f32.xlu1 %v5331_v43  ;;  %p6829_p4 = pnand %p6828_p3, %p6822_p0 }
0x2bc9   :  { %v5330_v34 = vpop.xlane.xlu0 %5329 }
0x2bca   :  { %v5334_v24 = vmul.f32 0.03125, %v5330_v34 }
0x2bcb   :  { %v5333_v28 = vpop.xlane.xlu1 %5332 }
0x2bcc   :  { %v5336_v40 = vsub.f32 %v5326_v46, %v5334_v24  ;;  %v5335_v29 = vmul.f32 0.03125, %v5333_v28 }
0x2bce   :  { %v5337_v41 = vsub.f32 %v5327_v15, %v5335_v29  ;;  %v5338_v53 = vmul.f32 %v5336_v40, %v5336_v40 }
0x2bd0   :  { %v5340_v51 = vsel %vm96_vm1, %v5338_v53, 0.0  ;;  %v5339_v26 = vmul.f32 %v5337_v41, %v5337_v41 }
0x2bd1   :  { %5341 = vadd.xlane.f32.xlu0 %v5340_v51 }
0x2bd2   :  { %v5343_v32 = vsel %vm96_vm1, %v5339_v26, 0.0 }
0x2bd3   :  { %5344 = vadd.xlane.f32.xlu1 %v5343_v32 }
0x2c5e   :  { %v5342_v4 = vpop.xlane.xlu0 %5341 }
0x2c5f   :  { %v5346_v60 = vmul.f32 0.03125, %v5342_v4 }
0x2c60   :  { %v5345_v16 = vpop.xlane.xlu1 %5344 }
0x2c61   :  { %v5348_v63 = vadd.f32 1e-05, %v5346_v60  ;;  %v5347_v58 = vmul.f32 0.03125, %v5345_v16 }
0x2c63   :  { %6817 = vrsqrt.f32 %v5348_v63  ;;  %v5349_v0 = vadd.f32 1e-05, %v5347_v58 }
0x2c65   :  { %6819 = vrsqrt.f32 %v5349_v0 }
0x2c6d   :  { %v6818_v55 = vpop.eup %6817 }
0x2c6e   :  { %v5352_v6 = vmul.f32 %v6818_v55, %v5336_v40 }
0x2c6f   :  { %v6820_v14 = vpop.eup %6819 }
0x2c70   :  { %v5362_v8 = vmul.f32 %v5808_v27, %v5352_v6  ;;  %v5353_v13 = vmul.f32 %v6820_v14, %v5337_v41 }
0x2c72   :  { %v5363_v12 = vmul.f32 %v5808_v27, %v5353_v13  ;;  %v5372_v49 = vadd.f32 %v5810_v1, %v5362_v8 }
0x2c74   :  { %v5373_v38 = vadd.f32 %v5810_v1, %v5363_v12 }
0x2c76   :  { %v5374_v18 = vpack.c.bf16 %v5373_v38, %v5372_v49 }
0x2c78   :  { %6647 = vmatmul.mubr.msk.bf16.vlgmr.msra.gmra.mrb[172].mxu0 %vm96_vm1, %v5374_v18 }
0x2d4b   :  { %v5428_v11 = vpop.f32.mrb[172].mxu0 }
0x2d4c   :  { %5435 = vst [vmem:[#allocation2] sm:$0xff] %v5428_v11  ;;  %v6648_v22 = vpop.f32.mrb[173].mxu0 }
0x2d4d   :  { %v5431_v44 = vpop.f32.mrb[174].mxu0 }
0x2d4e   :  { %5436 = vst [vmem:[#allocation2 + $0x8] sm:$0xff] %v5431_v44  ;;  %v6649_v17 = vpop.f32.mrb[175].mxu0 }
0x2d4f   :  { %6832 = shalt.err (!%p6829_p4)
}
0x2d50   :  { %s6833_s28 = scalar_lea.hbm %s8163_s19, 256 }
0x2d51   :  { %p6834_p5 = scmp.ne.s32.totalorder %s8163_s19, %s6833_s28  ;;  %p6837_p6 = scmp.lt.u32.totalorder %s6833_s28, %s8163_s19 }
0x2d53   :  { %p6839_p7 = pnand %p6837_p6, %p6834_p5 }
0x2d55   :  { %6842 = shalt.err (!%p6839_p7)
}
0x2d56   :  { %s6848_s6 = smov 128   ;;  %s6849_s30 = smov 8  }
0x2d57   :  { %5448 = dma.vmem_to_hbm [thread:$0]  %s5443_s27, 256, %s8163_s19, [#allocation3], %s6848_s6, %s6848_s6, %s6849_s30  }
0x2d58   :  { %6843 = dma.done.wait [#allocation3], 256  }
0x2d59   :  { %6844 = vsyncadd [#allocation3], 4294967040 }
0x2d5a   :  { %5452 = vsyncpa [#allocation3], 1 }

</bundles_post_ra>
